<compile_context>
chip_gen: v7x
topology: tpu7x:2x2x1
jax: 0.10.0
libtpu: 0.0.40
codegen_flags: <defaults>
</compile_context>

<pallas_src>
import functools

import jax
import jax.numpy as jnp
from jax import lax
from jax.experimental import pallas as pl
from jax.experimental.pallas import tpu as pltpu


def _silu(x):
    return x * jax.nn.sigmoid(x)


# --------------------------- stage 1: GN1 -> SiLU -> conv_in (+ emb) ---------------------------
def fc_in_kernel(x_ref, scale1_ref, shift1_ref, w_in_ref, bias_ref,
                 h_ref, s_ref, s2_ref):
    # x_ref: [1, TN, C] bf16 tile. GN1 folded into per-(batch,channel) scale/shift.
    x = x_ref[0].astype(jnp.float32)                          # [TN, C]
    xn = x * scale1_ref[0] + shift1_ref[0]                    # GroupNorm affine (folded)
    xn = xn * jax.nn.sigmoid(xn)                              # SiLU
    h = jnp.dot(xn.astype(jnp.bfloat16), w_in_ref[...],
                preferred_element_type=jnp.float32)           # bf16 MXU, f32 acc
    h = h + bias_ref[0]                                       # conv_in bias + emb MLP out
    h_ref[0] = h.astype(jnp.bfloat16)
    # per-tile GroupNorm-2 partial statistics (kept in f32)
    s_ref[0, 0] = jnp.sum(h, axis=0, keepdims=True)           # [1, Co]
    s2_ref[0, 0] = jnp.sum(h * h, axis=0, keepdims=True)      # [1, Co]


# --------------------------- stage 2: GN2 -> SiLU -> conv_out + skip ---------------------------
def fc_out_kernel(h_ref, x_ref, scale2_ref, shift2_ref, w_out_ref, bias_ref,
                  *rest, use_skip_conv):
    if use_skip_conv:
        w_skip_ref, o_ref = rest
    else:
        (o_ref,) = rest
    h = h_ref[0].astype(jnp.float32)                          # [TN, Co]
    hn = h * scale2_ref[0] + shift2_ref[0]                    # GroupNorm affine (folded)
    hn = hn * jax.nn.sigmoid(hn)                              # SiLU
    # TODO(synk): nn.Dropout is identity in eval mode; training-mode stochastic dropout not implemented.
    hh = jnp.dot(hn.astype(jnp.bfloat16), w_out_ref[...],
                 preferred_element_type=jnp.float32)          # bf16 MXU, f32 acc
    if use_skip_conv:
        skip = jnp.dot(x_ref[0], w_skip_ref[...],
                       preferred_element_type=jnp.float32)
    else:
        skip = x_ref[0].astype(jnp.float32)
    o_ref[0] = skip + hh + bias_ref[...]                      # bias = b_out (+ b_skip)


def _pick_tile(n):
    """Spatial rows per tile: MXU/vreg friendly (multiple of 256/128) and divides N."""
    for t in (512, 384, 256, 128):
        if n >= t and n % t == 0:
            return t
    for t in range((min(n, 512) // 8) * 8, 0, -8):
        if n % t == 0:
            return t
    return n


def _vmem_limit(nbytes):
    return int(min(max(nbytes, 32 << 20), 48 << 20))


@functools.partial(jax.jit, static_argnames=("num_groups", "eps", "tile"))
def fc_block_forward(x, emb, params, *, num_groups=32, eps=1e-5, tile=None):
    # Matches the PyTorch module: 2D input is promoted to [B, C, 1, 1]
    # (and, because forward() rebinds `x`, a 4D tensor is returned).
    if x.ndim == 2:
        x = x[:, :, None, None]
    assert x.ndim == 4
    B, C, H, W = x.shape
    N = H * W
    Co = params["w_in"].shape[1]
    G = num_groups
    use_skip_conv = "w_skip" in params
    f32 = jnp.float32

    xf = jnp.transpose(x, (0, 2, 3, 1)).reshape(B, N, C).astype(f32)

    # ---- GroupNorm-1 statistics (cheap wrapper reduction, f32), folded into scale/shift ----
    xg = xf.reshape(B, N, G, C // G)
    mean1 = jnp.mean(xg, axis=(1, 3))                                     # [B, G]
    var1 = jnp.maximum(jnp.mean(xg * xg, axis=(1, 3)) - mean1 * mean1, 0.0)
    inv1 = lax.rsqrt(var1 + eps)
    gamma1 = params["gamma1"].astype(f32)[None, :]
    beta1 = params["beta1"].astype(f32)[None, :]
    scale1 = gamma1 * jnp.repeat(inv1, C // G, axis=1)                    # [B, C]
    shift1 = beta1 - jnp.repeat(mean1, C // G, axis=1) * scale1
    scale1, shift1 = scale1[:, None, :], shift1[:, None, :]               # [B, 1, C]

    # ---- emb MLP hoisted out of the kernel; conv_in bias folded in ----
    e = _silu(emb.astype(f32)) @ params["w_emb"].astype(f32) + params["b_emb"].astype(f32)
    bias_in = (e + params["b_in"].astype(f32)[None, :])[:, None, :]       # [B, 1, Co]

    x_bf = xf.astype(jnp.bfloat16)
    w_in = params["w_in"].astype(jnp.bfloat16)

    TN = tile or _pick_tile(N)
    nt = N // TN
    assert TN * nt == N

    vmem1 = _vmem_limit(2 * (TN * C * 2 + 2 * C * 4 + Co * 4 + TN * Co * 2 + 2 * Co * 4)
                        + 2 * C * Co * 2 + 6 * TN * max(C, Co) * 4 + (8 << 20))
    h_bf, s_h, s_h2 = pl.pallas_call(
        fc_in_kernel,
        out_shape=(jax.ShapeDtypeStruct((B, N, Co), jnp.bfloat16),
                   jax.ShapeDtypeStruct((B, nt, 1, Co), f32),
                   jax.ShapeDtypeStruct((B, nt, 1, Co), f32)),
        grid=(B, nt),
        in_specs=[
            pl.BlockSpec((1, TN, C), lambda b, t: (b, t, 0)),
            pl.BlockSpec((1, 1, C), lambda b, t: (b, 0, 0)),
            pl.BlockSpec((1, 1, C), lambda b, t: (b, 0, 0)),
            pl.BlockSpec((C, Co), lambda b, t: (0, 0)),
            pl.BlockSpec((1, 1, Co), lambda b, t: (b, 0, 0)),
        ],
        out_specs=(
            pl.BlockSpec((1, TN, Co), lambda b, t: (b, t, 0)),
            pl.BlockSpec((1, 1, 1, Co), lambda b, t: (b, t, 0, 0)),
            pl.BlockSpec((1, 1, 1, Co), lambda b, t: (b, t, 0, 0)),
        ),
        compiler_params=pltpu.CompilerParams(
            dimension_semantics=("parallel", "parallel"),
            vmem_limit_bytes=vmem1),
    )(x_bf, scale1, shift1, w_in, bias_in)

    # ---- combine GroupNorm-2 partial statistics (f32), fold into scale/shift ----
    cnt = float(N * (Co // G))
    gsum = jnp.sum(s_h[:, :, 0, :], axis=1).reshape(B, G, Co // G).sum(-1)     # [B, G]
    gsum2 = jnp.sum(s_h2[:, :, 0, :], axis=1).reshape(B, G, Co // G).sum(-1)
    mean2 = gsum / cnt
    var2 = jnp.maximum(gsum2 / cnt - mean2 * mean2, 0.0)
    inv2 = lax.rsqrt(var2 + eps)
    gamma2 = params["gamma2"].astype(f32)[None, :]
    beta2 = params["beta2"].astype(f32)[None, :]
    scale2 = gamma2 * jnp.repeat(inv2, Co // G, axis=1)
    shift2 = beta2 - jnp.repeat(mean2, Co // G, axis=1) * scale2
    scale2, shift2 = scale2[:, None, :], shift2[:, None, :]                    # [B, 1, Co]

    w_out = params["w_out"].astype(jnp.bfloat16)
    if use_skip_conv:
        bias2 = (params["b_out"].astype(f32) + params["b_skip"].astype(f32)).reshape(1, Co)
        extra = (params["w_skip"].astype(jnp.bfloat16),)
        extra_specs = [pl.BlockSpec((C, Co), lambda b, t: (0, 0))]
    else:
        bias2 = params["b_out"].astype(f32).reshape(1, Co)
        extra = ()
        extra_specs = []

    wbytes2 = Co * Co * 2 + (C * Co * 2 if use_skip_conv else 0)
    vmem2 = _vmem_limit(2 * (TN * Co * 2 + TN * C * 2 + 2 * Co * 4 + Co * 4 + TN * Co * 4)
                        + 2 * wbytes2 + 6 * TN * Co * 4 + (8 << 20))
    out = pl.pallas_call(
        functools.partial(fc_out_kernel, use_skip_conv=use_skip_conv),
        out_shape=jax.ShapeDtypeStruct((B, N, Co), f32),
        grid=(B, nt),
        in_specs=[
            pl.BlockSpec((1, TN, Co), lambda b, t: (b, t, 0)),
            pl.BlockSpec((1, TN, C), lambda b, t: (b, t, 0)),
            pl.BlockSpec((1, 1, Co), lambda b, t: (b, 0, 0)),
            pl.BlockSpec((1, 1, Co), lambda b, t: (b, 0, 0)),
            pl.BlockSpec((Co, Co), lambda b, t: (0, 0)),
            pl.BlockSpec((1, Co), lambda b, t: (0, 0)),
        ] + extra_specs,
        out_specs=pl.BlockSpec((1, TN, Co), lambda b, t: (b, t, 0)),
        compiler_params=pltpu.CompilerParams(
            dimension_semantics=("parallel", "parallel"),
            vmem_limit_bytes=vmem2),
    )(h_bf, x_bf, scale2, shift2, w_out, bias2, *extra)

    return jnp.transpose(out.reshape(B, H, W, Co), (0, 3, 1, 2))


# ----------------------- pure-JAX reference for verification -----------------------
def fc_block_reference(x, emb, params, *, num_groups=32, eps=1e-5):
    if x.ndim == 2:
        x = x[:, :, None, None]

    def gn(h, gamma, beta):
        B, C, H, W = h.shape
        hg = h.reshape(B, num_groups, C // num_groups, H, W)
        mean = hg.mean(axis=(2, 3, 4), keepdims=True)
        var = ((hg - mean) ** 2).mean(axis=(2, 3, 4), keepdims=True)
        hg = (hg - mean) / jnp.sqrt(var + eps)
        h = hg.reshape(B, C, H, W)
        return h * gamma[None, :, None, None] + beta[None, :, None, None]

    def conv1x1(h, w, b):
        return jnp.einsum("bchw,cd->bdhw", h, w) + b[None, :, None, None]

    h = conv1x1(_silu(gn(x, params["gamma1"], params["beta1"])), params["w_in"], params["b_in"])
    e = _silu(emb) @ params["w_emb"] + params["b_emb"]
    h = h + e[:, :, None, None]
    h = _silu(gn(h, params["gamma2"], params["beta2"]))
    h = conv1x1(h, params["w_out"], params["b_out"])
    skip = conv1x1(x, params["w_skip"], params["b_skip"]) if "w_skip" in params else x
    return skip + h


def init_params(key, channels, emb_channels, out_channels=None):
    out_channels = out_channels or channels
    ks = jax.random.split(key, 12)
    p = {
        "gamma1": 1.0 + 0.1 * jax.random.normal(ks[0], (channels,), jnp.float32),
        "beta1": 0.1 * jax.random.normal(ks[1], (channels,), jnp.float32),
        "w_in": jax.random.normal(ks[2], (channels, out_channels), jnp.float32) * channels ** -0.5,
        "b_in": 0.1 * jax.random.normal(ks[3], (out_channels,), jnp.float32),
        "w_emb": jax.random.normal(ks[4], (emb_channels, out_channels), jnp.float32) * emb_channels ** -0.5,
        "b_emb": 0.1 * jax.random.normal(ks[5], (out_channels,), jnp.float32),
        "gamma2": 1.0 + 0.1 * jax.random.normal(ks[6], (out_channels,), jnp.float32),
        "beta2": 0.1 * jax.random.normal(ks[7], (out_channels,), jnp.float32),
        # NOTE: the PyTorch module zero-inits this conv (zero_module); small random
        # values are used here so the out_layers path is numerically exercised.
        "w_out": 0.1 * jax.random.normal(ks[8], (out_channels, out_channels), jnp.float32) * out_channels ** -0.5,
        "b_out": 0.1 * jax.random.normal(ks[9], (out_channels,), jnp.float32),
    }
    if out_channels != channels:
        p["w_skip"] = jax.random.normal(ks[10], (channels, out_channels), jnp.float32) * channels ** -0.5
        p["b_skip"] = 0.1 * jax.random.normal(ks[11], (out_channels,), jnp.float32)
    return p


if __name__ == "__main__":
    key = jax.random.PRNGKey(0)
    kx, ke, kp1, kp2 = jax.random.split(key, 4)

    B, C, H, W = 2, 32, 32, 32        # channels must be divisible by 32 (GroupNorm32)
    Ce = 16                           # N = 1024 -> tile 512, 2 spatial tiles per sample
    x = jax.random.normal(kx, (B, C, H, W), jnp.float32)
    emb = jax.random.normal(ke, (B, Ce), jnp.float32)

    ok = True

    # Case 1: out_channels == channels -> identity skip
    p1 = init_params(kp1, C, Ce, out_channels=None)
    y1 = jax.block_until_ready(fc_block_forward(x, emb, p1))
    r1 = fc_block_reference(x, emb, p1)
    ok &= y1.shape == (B, C, H, W)
    ok &= bool(jnp.allclose(y1, r1, atol=5e-2, rtol=5e-2))

    # Case 2: out_channels != channels -> 1x1 conv skip
    p2 = init_params(kp2, C, Ce, out_channels=64)
    y2 = jax.block_until_ready(fc_block_forward(x, emb, p2))
    r2 = fc_block_reference(x, emb, p2)
    ok &= y2.shape == (B, 64, H, W)
    ok &= bool(jnp.allclose(y2, r2, atol=5e-2, rtol=5e-2))

    if ok:
        print("KERNEL_OK")
    else:
        print("MISMATCH", float(jnp.max(jnp.abs(y1 - r1))), float(jnp.max(jnp.abs(y2 - r2))))
</pallas_src>

<mosaic_0001>
module attributes {stable_mosaic.version = 11 : i64} {
  func.func @fc_in_kernel(%arg0: i32, %arg1: i32, %arg2: memref<1x512x32xbf16, #tpu.memory_space<vmem>>, %arg3: memref<1x1x32xf32, #tpu.memory_space<vmem>>, %arg4: memref<1x1x32xf32, #tpu.memory_space<vmem>>, %arg5: memref<32x32xbf16, #tpu.memory_space<vmem>>, %arg6: memref<1x1x32xf32, #tpu.memory_space<vmem>>, %arg7: memref<1x512x32xbf16, #tpu.memory_space<vmem>>, %arg8: memref<1x1x1x32xf32, #tpu.memory_space<vmem>>, %arg9: memref<1x1x1x32xf32, #tpu.memory_space<vmem>>) attributes {dimension_semantics = [#tpu.dimension_semantics<parallel>, #tpu.dimension_semantics<parallel>], iteration_bounds = array<i64: 2, 2>, scalar_prefetch = 0 : i64, scratch_operands = 0 : i64, tpu.core_type = #tpu.core_type<tc>, window_params = [{transform_indices = @transform_0, window_bounds = array<i64: 1, 512, 32>}, {transform_indices = @transform_1, window_bounds = array<i64: 1, 1, 32>}, {transform_indices = @transform_2, window_bounds = array<i64: 1, 1, 32>}, {pipeline_mode = #tpu.pipeline_mode<synchronous>, transform_indices = @transform_3, window_bounds = array<i64: 32, 32>}, {transform_indices = @transform_4, window_bounds = array<i64: 1, 1, 32>}, {transform_indices = @transform_5, window_bounds = array<i64: 1, 512, 32>}, {transform_indices = @transform_6, window_bounds = array<i64: 1, 1, 1, 32>}, {transform_indices = @transform_7, window_bounds = array<i64: 1, 1, 1, 32>}]} {
    %c0 = arith.constant 0 : index
    %c0_0 = arith.constant 0 : index
    %c0_1 = arith.constant 0 : index
    %0 = vector.load %arg2[%c0, %c0_0, %c0_1] : memref<1x512x32xbf16, #tpu.memory_space<vmem>>, vector<1x512x32xbf16>
    %1 = vector.shape_cast %0 : vector<1x512x32xbf16> to vector<512x32xbf16>
    %2 = arith.extf %1 : vector<512x32xbf16> to vector<512x32xf32>
    %c0_2 = arith.constant 0 : index
    %c0_3 = arith.constant 0 : index
    %c0_4 = arith.constant 0 : index
    %3 = vector.load %arg3[%c0_2, %c0_3, %c0_4] : memref<1x1x32xf32, #tpu.memory_space<vmem>>, vector<1x1x32xf32>
    %4 = vector.shape_cast %3 : vector<1x1x32xf32> to vector<1x32xf32>
    %5 = vector.broadcast %4 : vector<1x32xf32> to vector<512x32xf32>
    %6 = arith.mulf %2, %5 : vector<512x32xf32>
    %c0_5 = arith.constant 0 : index
    %c0_6 = arith.constant 0 : index
    %c0_7 = arith.constant 0 : index
    %7 = vector.load %arg4[%c0_5, %c0_6, %c0_7] : memref<1x1x32xf32, #tpu.memory_space<vmem>>, vector<1x1x32xf32>
    %8 = vector.shape_cast %7 : vector<1x1x32xf32> to vector<1x32xf32>
    %9 = vector.broadcast %8 : vector<1x32xf32> to vector<512x32xf32>
    %10 = arith.addf %6, %9 : vector<512x32xf32>
    %11 = arith.negf %10 : vector<512x32xf32>
    %12 = math.exp %11 : vector<512x32xf32>
    %cst = arith.constant 1.000000e+00 : f32
    %13 = vector.broadcast %cst : f32 to vector<512x32xf32>
    %14 = arith.addf %13, %12 : vector<512x32xf32>
    %15 = arith.divf %13, %14 : vector<512x32xf32>
    %16 = arith.mulf %10, %15 : vector<512x32xf32>
    %17 = arith.truncf %16 : vector<512x32xf32> to vector<512x32xbf16>
    %c0_8 = arith.constant 0 : index
    %c0_9 = arith.constant 0 : index
    %18 = vector.load %arg5[%c0_8, %c0_9] : memref<32x32xbf16, #tpu.memory_space<vmem>>, vector<32x32xbf16>
    %cst_10 = arith.constant dense<0.000000e+00> : vector<512x32xf32>
    %19 = tpu.matmul %17, %18, %cst_10 {dimension_numbers = #tpu.dot_dimension_numbers<[1], [0], [0], [1], [0, 0, 1, 1], [], []>} : vector<512x32xbf16>, vector<32x32xbf16>, vector<512x32xf32> -> vector<512x32xf32>
    %c0_11 = arith.constant 0 : index
    %c0_12 = arith.constant 0 : index
    %c0_13 = arith.constant 0 : index
    %20 = vector.load %arg6[%c0_11, %c0_12, %c0_13] : memref<1x1x32xf32, #tpu.memory_space<vmem>>, vector<1x1x32xf32>
    %21 = vector.shape_cast %20 : vector<1x1x32xf32> to vector<1x32xf32>
    %22 = vector.broadcast %21 : vector<1x32xf32> to vector<512x32xf32>
    %23 = arith.addf %19, %22 : vector<512x32xf32>
    %24 = arith.truncf %23 : vector<512x32xf32> to vector<512x32xbf16>
    %c0_14 = arith.constant 0 : index
    %c0_15 = arith.constant 0 : index
    %c0_16 = arith.constant 0 : index
    %25 = vector.load %arg7[%c0_14, %c0_15, %c0_16] : memref<1x512x32xbf16, #tpu.memory_space<vmem>>, vector<1x512x32xbf16>
    %26 = vector.shape_cast %25 : vector<1x512x32xbf16> to vector<512x32xbf16>
    %27 = vector.shape_cast %24 : vector<512x32xbf16> to vector<1x512x32xbf16>
    tpu.vector_store %arg7[%c0_14, %c0_15, %c0_16], %27 {strides = array<i32>} : memref<1x512x32xbf16, #tpu.memory_space<vmem>>, vector<1x512x32xbf16>,
    %cst_17 = arith.constant dense<0.000000e+00> : vector<32xf32>
    %28 = vector.multi_reduction <add>, %23, %cst_17 [0] : vector<512x32xf32> to vector<32xf32>
    %29 = vector.shape_cast %28 : vector<32xf32> to vector<1x32xf32>
    %c0_18 = arith.constant 0 : index
    %c0_19 = arith.constant 0 : index
    %c0_20 = arith.constant 0 : index
    %c0_21 = arith.constant 0 : index
    %30 = vector.load %arg8[%c0_18, %c0_19, %c0_20, %c0_21] : memref<1x1x1x32xf32, #tpu.memory_space<vmem>>, vector<1x1x1x32xf32>
    %31 = vector.shape_cast %30 : vector<1x1x1x32xf32> to vector<1x32xf32>
    %32 = vector.shape_cast %29 : vector<1x32xf32> to vector<1x1x1x32xf32>
    tpu.vector_store %arg8[%c0_18, %c0_19, %c0_20, %c0_21], %32 {strides = array<i32>} : memref<1x1x1x32xf32, #tpu.memory_space<vmem>>, vector<1x1x1x32xf32>,
    %33 = arith.mulf %23, %23 : vector<512x32xf32>
    %cst_22 = arith.constant dense<0.000000e+00> : vector<32xf32>
    %34 = vector.multi_reduction <add>, %33, %cst_22 [0] : vector<512x32xf32> to vector<32xf32>
    %35 = vector.shape_cast %34 : vector<32xf32> to vector<1x32xf32>
    %c0_23 = arith.constant 0 : index
    %c0_24 = arith.constant 0 : index
    %c0_25 = arith.constant 0 : index
    %c0_26 = arith.constant 0 : index
    %36 = vector.load %arg9[%c0_23, %c0_24, %c0_25, %c0_26] : memref<1x1x1x32xf32, #tpu.memory_space<vmem>>, vector<1x1x1x32xf32>
    %37 = vector.shape_cast %36 : vector<1x1x1x32xf32> to vector<1x32xf32>
    %38 = vector.shape_cast %35 : vector<1x32xf32> to vector<1x1x1x32xf32>
    tpu.vector_store %arg9[%c0_23, %c0_24, %c0_25, %c0_26], %38 {strides = array<i32>} : memref<1x1x1x32xf32, #tpu.memory_space<vmem>>, vector<1x1x1x32xf32>,
    return
  }
  func.func @transform_0(%arg0: i32, %arg1: i32) -> (i32, i32, i32) {
    %c0_i32 = arith.constant 0 : i32
    %c0_i32_0 = arith.constant 0 : i32
    return %arg0, %arg1, %c0_i32 : i32, i32, i32
  }
  func.func @transform_1(%arg0: i32, %arg1: i32) -> (i32, i32, i32) {
    %c0_i32 = arith.constant 0 : i32
    %c0_i32_0 = arith.constant 0 : i32
    %c0_i32_1 = arith.constant 0 : i32
    return %arg0, %c0_i32, %c0_i32_0 : i32, i32, i32
  }
  func.func @transform_2(%arg0: i32, %arg1: i32) -> (i32, i32, i32) {
    %c0_i32 = arith.constant 0 : i32
    %c0_i32_0 = arith.constant 0 : i32
    %c0_i32_1 = arith.constant 0 : i32
    return %arg0, %c0_i32, %c0_i32_0 : i32, i32, i32
  }
  func.func @transform_3(%arg0: i32, %arg1: i32) -> (i32, i32) {
    %c0_i32 = arith.constant 0 : i32
    %c0_i32_0 = arith.constant 0 : i32
    %c0_i32_1 = arith.constant 0 : i32
    return %c0_i32, %c0_i32_0 : i32, i32
  }
  func.func @transform_4(%arg0: i32, %arg1: i32) -> (i32, i32, i32) {
    %c0_i32 = arith.constant 0 : i32
    %c0_i32_0 = arith.constant 0 : i32
    %c0_i32_1 = arith.constant 0 : i32
    return %arg0, %c0_i32, %c0_i32_0 : i32, i32, i32
  }
  func.func @transform_5(%arg0: i32, %arg1: i32) -> (i32, i32, i32) {
    %c0_i32 = arith.constant 0 : i32
    %c0_i32_0 = arith.constant 0 : i32
    return %arg0, %arg1, %c0_i32 : i32, i32, i32
  }
  func.func @transform_6(%arg0: i32, %arg1: i32) -> (i32, i32, i32, i32) {
    %c0_i32 = arith.constant 0 : i32
    %c0_i32_0 = arith.constant 0 : i32
    %c0_i32_1 = arith.constant 0 : i32
    return %arg0, %arg1, %c0_i32, %c0_i32_0 : i32, i32, i32, i32
  }
  func.func @transform_7(%arg0: i32, %arg1: i32) -> (i32, i32, i32, i32) {
    %c0_i32 = arith.constant 0 : i32
    %c0_i32_0 = arith.constant 0 : i32
    %c0_i32_1 = arith.constant 0 : i32
    return %arg0, %arg1, %c0_i32, %c0_i32_0 : i32, i32, i32, i32
  }
}

module attributes {stable_mosaic.version = 11 : i64} {
  func.func @fc_out_kernel(%arg0: i32, %arg1: i32, %arg2: memref<1x512x32xbf16, #tpu.memory_space<vmem>>, %arg3: memref<1x512x32xbf16, #tpu.memory_space<vmem>>, %arg4: memref<1x1x32xf32, #tpu.memory_space<vmem>>, %arg5: memref<1x1x32xf32, #tpu.memory_space<vmem>>, %arg6: memref<32x32xbf16, #tpu.memory_space<vmem>>, %arg7: memref<1x32xf32, #tpu.memory_space<vmem>>, %arg8: memref<1x512x32xf32, #tpu.memory_space<vmem>>) attributes {dimension_semantics = [#tpu.dimension_semantics<parallel>, #tpu.dimension_semantics<parallel>], iteration_bounds = array<i64: 2, 2>, scalar_prefetch = 0 : i64, scratch_operands = 0 : i64, tpu.core_type = #tpu.core_type<tc>, window_params = [{transform_indices = @transform_0, window_bounds = array<i64: 1, 512, 32>}, {transform_indices = @transform_1, window_bounds = array<i64: 1, 512, 32>}, {transform_indices = @transform_2, window_bounds = array<i64: 1, 1, 32>}, {transform_indices = @transform_3, window_bounds = array<i64: 1, 1, 32>}, {pipeline_mode = #tpu.pipeline_mode<synchronous>, transform_indices = @transform_4, window_bounds = array<i64: 32, 32>}, {pipeline_mode = #tpu.pipeline_mode<synchronous>, transform_indices = @transform_5, window_bounds = array<i64: 1, 32>}, {transform_indices = @transform_6, window_bounds = array<i64: 1, 512, 32>}]} {
    %c0 = arith.constant 0 : index
    %c0_0 = arith.constant 0 : index
    %c0_1 = arith.constant 0 : index
    %0 = vector.load %arg2[%c0, %c0_0, %c0_1] : memref<1x512x32xbf16, #tpu.memory_space<vmem>>, vector<1x512x32xbf16>
    %1 = vector.shape_cast %0 : vector<1x512x32xbf16> to vector<512x32xbf16>
    %2 = arith.extf %1 : vector<512x32xbf16> to vector<512x32xf32>
    %c0_2 = arith.constant 0 : index
    %c0_3 = arith.constant 0 : index
    %c0_4 = arith.constant 0 : index
    %3 = vector.load %arg4[%c0_2, %c0_3, %c0_4] : memref<1x1x32xf32, #tpu.memory_space<vmem>>, vector<1x1x32xf32>
    %4 = vector.shape_cast %3 : vector<1x1x32xf32> to vector<1x32xf32>
    %5 = vector.broadcast %4 : vector<1x32xf32> to vector<512x32xf32>
    %6 = arith.mulf %2, %5 : vector<512x32xf32>
    %c0_5 = arith.constant 0 : index
    %c0_6 = arith.constant 0 : index
    %c0_7 = arith.constant 0 : index
    %7 = vector.load %arg5[%c0_5, %c0_6, %c0_7] : memref<1x1x32xf32, #tpu.memory_space<vmem>>, vector<1x1x32xf32>
    %8 = vector.shape_cast %7 : vector<1x1x32xf32> to vector<1x32xf32>
    %9 = vector.broadcast %8 : vector<1x32xf32> to vector<512x32xf32>
    %10 = arith.addf %6, %9 : vector<512x32xf32>
    %11 = arith.negf %10 : vector<512x32xf32>
    %12 = math.exp %11 : vector<512x32xf32>
    %cst = arith.constant 1.000000e+00 : f32
    %13 = vector.broadcast %cst : f32 to vector<512x32xf32>
    %14 = arith.addf %13, %12 : vector<512x32xf32>
    %15 = arith.divf %13, %14 : vector<512x32xf32>
    %16 = arith.mulf %10, %15 : vector<512x32xf32>
    %17 = arith.truncf %16 : vector<512x32xf32> to vector<512x32xbf16>
    %c0_8 = arith.constant 0 : index
    %c0_9 = arith.constant 0 : index
    %18 = vector.load %arg6[%c0_8, %c0_9] : memref<32x32xbf16, #tpu.memory_space<vmem>>, vector<32x32xbf16>
    %cst_10 = arith.constant dense<0.000000e+00> : vector<512x32xf32>
    %19 = tpu.matmul %17, %18, %cst_10 {dimension_numbers = #tpu.dot_dimension_numbers<[1], [0], [0], [1], [0, 0, 1, 1], [], []>} : vector<512x32xbf16>, vector<32x32xbf16>, vector<512x32xf32> -> vector<512x32xf32>
    %c0_11 = arith.constant 0 : index
    %c0_12 = arith.constant 0 : index
    %c0_13 = arith.constant 0 : index
    %20 = vector.load %arg3[%c0_11, %c0_12, %c0_13] : memref<1x512x32xbf16, #tpu.memory_space<vmem>>, vector<1x512x32xbf16>
    %21 = vector.shape_cast %20 : vector<1x512x32xbf16> to vector<512x32xbf16>
    %22 = arith.extf %21 : vector<512x32xbf16> to vector<512x32xf32>
    %23 = arith.addf %22, %19 : vector<512x32xf32>
    %c0_14 = arith.constant 0 : index
    %c0_15 = arith.constant 0 : index
    %24 = vector.load %arg7[%c0_14, %c0_15] : memref<1x32xf32, #tpu.memory_space<vmem>>, vector<1x32xf32>
    %25 = vector.broadcast %24 : vector<1x32xf32> to vector<512x32xf32>
    %26 = arith.addf %23, %25 : vector<512x32xf32>
    %c0_16 = arith.constant 0 : index
    %c0_17 = arith.constant 0 : index
    %c0_18 = arith.constant 0 : index
    %27 = vector.load %arg8[%c0_16, %c0_17, %c0_18] : memref<1x512x32xf32, #tpu.memory_space<vmem>>, vector<1x512x32xf32>
    %28 = vector.shape_cast %27 : vector<1x512x32xf32> to vector<512x32xf32>
    %29 = vector.shape_cast %26 : vector<512x32xf32> to vector<1x512x32xf32>
    tpu.vector_store %arg8[%c0_16, %c0_17, %c0_18], %29 {strides = array<i32>} : memref<1x512x32xf32, #tpu.memory_space<vmem>>, vector<1x512x32xf32>,
    return
  }
  func.func @transform_0(%arg0: i32, %arg1: i32) -> (i32, i32, i32) {
    %c0_i32 = arith.constant 0 : i32
    %c0_i32_0 = arith.constant 0 : i32
    return %arg0, %arg1, %c0_i32 : i32, i32, i32
  }
  func.func @transform_1(%arg0: i32, %arg1: i32) -> (i32, i32, i32) {
    %c0_i32 = arith.constant 0 : i32
    %c0_i32_0 = arith.constant 0 : i32
    return %arg0, %arg1, %c0_i32 : i32, i32, i32
  }
  func.func @transform_2(%arg0: i32, %arg1: i32) -> (i32, i32, i32) {
    %c0_i32 = arith.constant 0 : i32
    %c0_i32_0 = arith.constant 0 : i32
    %c0_i32_1 = arith.constant 0 : i32
    return %arg0, %c0_i32, %c0_i32_0 : i32, i32, i32
  }
  func.func @transform_3(%arg0: i32, %arg1: i32) -> (i32, i32, i32) {
    %c0_i32 = arith.constant 0 : i32
    %c0_i32_0 = arith.constant 0 : i32
    %c0_i32_1 = arith.constant 0 : i32
    return %arg0, %c0_i32, %c0_i32_0 : i32, i32, i32
  }
  func.func @transform_4(%arg0: i32, %arg1: i32) -> (i32, i32) {
    %c0_i32 = arith.constant 0 : i32
    %c0_i32_0 = arith.constant 0 : i32
    %c0_i32_1 = arith.constant 0 : i32
    return %c0_i32, %c0_i32_0 : i32, i32
  }
  func.func @transform_5(%arg0: i32, %arg1: i32) -> (i32, i32) {
    %c0_i32 = arith.constant 0 : i32
    %c0_i32_0 = arith.constant 0 : i32
    %c0_i32_1 = arith.constant 0 : i32
    return %c0_i32, %c0_i32_0 : i32, i32
  }
  func.func @transform_6(%arg0: i32, %arg1: i32) -> (i32, i32, i32) {
    %c0_i32 = arith.constant 0 : i32
    %c0_i32_0 = arith.constant 0 : i32
    return %arg0, %arg1, %c0_i32 : i32, i32, i32
  }
}

</mosaic_0001>

<bundles_post_ra>
// kernel: fc_block_forward.2
= control target key start
LH: loop header
LB: loop body
LE: loop exit
PB: predicated region body
PF: predicated region fallthrough
CT: control target
= control target key end

     0   :  { %s3300_s24 = smov 0   ;;  %s3302_s25 = smov 0   ;;  %s4236_s0 = inlined_call_operand.vmem [shape: bf16[2,1024,32], index: 0, kind: input, shape index: {}]   ;;  %s4237_s1 = inlined_call_operand.vmem [shape: f32[2,1,32], index: 1, kind: input, shape index: {}]   ;;  %s4238_s2 = inlined_call_operand.vmem [shape: f32[2,1,32], index: 2, kind: input, shape index: {}]   ;;  %s4239_s3 = inlined_call_operand.vmem [shape: bf16[32,32], index: 3, kind: input, shape index: {}]   ;;  %s4240_s4 = inlined_call_operand.vmem [shape: f32[2,1,32], index: 4, kind: input, shape index: {}]   ;;  %s4241_s5 = inlined_call_operand.vmem [shape: bf16[2,1024,32], index: 5, kind: output, shape index: {0}]   ;;  %s4242_s6 = inlined_call_operand.vmem [shape: f32[2,2,1,32], index: 6, kind: output, shape index: {1}]   ;;  %s4243_s7 = inlined_call_operand.vmem [shape: f32[2,2,1,32], index: 7, kind: output, shape index: {2}]  }
   0x1   :  { %s3304_s26 = smov 0   ;;  %s3306_s27 = smov 0  }
   0x2   :  { %s3308_s28 = smov 0  }
   0x3 LB: > { %s27_s29 = sadd.s32 1, %s3250_s26  ;;  %s30_s30 = sadd.s32 1, %s3254_s27  ;;  %s3258_s28 = sphi %s3308_s28, %s18_s28   ;;  %s3254_s27 = sphi %s3306_s27, %s4247_s27   ;;  %s3250_s26 = sphi %s3304_s26, %s4246_s26   ;;  %s3246_s25 = sphi %s3302_s25, %s4245_s25   ;;  %s3242_s24 = sphi %s3300_s24, %s4244_s24  }
   0x4   : > { %p28_p0 = scmp.ge.s32.totalorder %s27_s29, 2  ;;  %p2414_p1 = scmp.ge.s32.totalorder %s3258_s28, 1 }
   0x5   : > { %p291_p2 = scmp.lt.s32.totalorder %s3258_s28, 5 }
   0x6   : > { %s4249_s29 = smov (%p28_p0, %s27_s29), 0  ;;  %s4251_s30 = smov (!%p28_p0, %s30_s30), %s3254_s27 }
   0x7   : > { %p292_p3 = pnand %p2414_p1, %p291_p2  ;;  %p32_p4 = scmp.ge.s32.totalorder %s4251_s30, 2 }
   0x8   : > { %v2959_v0 = vld [vmem:[%s4239_s3] sm:$0xff] (!%p292_p3)   ;;  %s2415_s10 = sshll.u32 (!%p292_p3), %s3242_s24, 6  ;;  %v2960_v1 = vld [vmem:[%s4239_s3 + $0x8] sm:$0xff] (!%p292_p3)   ;;  %p355_p5 = scmp.lt.s32.totalorder (!%p292_p3), %s3246_s25, 1  ;;  %vm1171_vm0 = vcmask (!%p292_p3), 261120   ;;  %vm1813_vm1 = vcmask (!%p292_p3), 257024  }
   0x9   : > { %s4253_s30 = smov (%p32_p4, %s4251_s30), 0  ;;  %295 = sbr.rel (%p292_p3) target bundleno = 425 (0x1a9), region = 40 }
   0xa   : > { %2847 = vmatprep.subr.bf16.mxu0 (!%p292_p3), %v2959_v0  ;;  %p357_p6 = scmp.lt.s32.totalorder (!%p292_p3), %s2415_s10, 127  ;;  %2915 = vmatprep.subr.bf16.mxu1 (!%p292_p3), %v2959_v0  ;;  %p385_p7 = scmp.lt.s32.totalorder (!%p292_p3), %s3242_s24, 1  ;;  %vm2011_vm2 = vcmask (!%p292_p3), 253952  }
   0xb   : > { %2848 = vmatpush3.bf16.msra.mxu0 (!%p292_p3), %v2959_v0  ;;  %2917 = vmatpush3.bf16.msra.mxu1 (!%p292_p3), %v2959_v0 }
   0xc   : > { %2849 = vmatprep.subr.bf16.mxu0 (!%p292_p3), %v2960_v1  ;;  %2916 = vmatprep.subr.bf16.mxu1 (!%p292_p3), %v2960_v1 }
   0xf   : > { %2850 = vmatpush3.bf16.msra.mxu0 (!%p292_p3), %v2960_v1  ;;  %2918 = vmatpush3.bf16.msra.mxu1 (!%p292_p3), %v2960_v1 }
  0x10   : > { %s4255_s25 = smov (!%p355_p5, %s3246_s25), 1  ;;  %s4257_s10 = smov (!%p357_p6, %s2415_s10), 127 }
  0x11   : > { %s2416_s13 = sshll.u32 %s4255_s25, 7  ;;  %s3346_s16 = scalar_lea.vmem %s4237_s1, %s4255_s25 }
  0x12   : > { %s3348_s17 = sadd.s32 %s2416_s13, %s4257_s10  ;;  %s3362_s8 = scalar_lea.vmem %s4238_s2, %s4255_s25  ;;  %v3365_v2 = vld [vmem:[%s3346_s16] ss:$0 sm:$0xff] }
  0x13   : > { %s2417_s18 = sshll.u32 %s3348_s17, 2  ;;  %v3372_v11 = vld [vmem:[%s3362_s8] ss:$0 sm:$0xff]  ;;  %s3885_s11 = scalar_lea.vmem %s4240_s4, %s4255_s25 }
  0x14   : > { %s3356_s21 = scalar_lea.vmem %s4236_s0, %s2417_s18  ;;  %s3896_s14 = scalar_lea.vmem %s4241_s5, %s2417_s18 }
  0x15   : > { %v2655_v3 = vld [vmem:[%s3356_s21] sm:$0xff]   ;;  %v2782_v4 = vld [vmem:[%s3356_s21 + $0x8] sm:$0xff]   ;;  %v2783_v5 = vld [vmem:[%s3356_s21 + $0x10] sm:$0xff]   ;;  %s4259_s24 = smov (!%p385_p7, %s3242_s24), 1  ;;  %s2421_s15 = sshll.u32 %s4255_s25, 1 }
  0x16   : > { %v2656_v6 = vunpack.c.l.bf16 %v2655_v3  ;;  %v2657_v7 = vunpack.c.h.bf16 %v2655_v3  ;;  %v2660_v8 = vunpack.c.l.bf16 %v2782_v4  ;;  %v2661_v9 = vunpack.c.h.bf16 %v2782_v4  ;;  %v2784_v10 = vld [vmem:[%s3356_s21 + $0x18] sm:$0xff]   ;;  %v2785_v24 = vld [vmem:[%s3356_s21 + $0x20] sm:$0xff]   ;;  %v2786_v33 = vld [vmem:[%s3356_s21 + $0x28] sm:$0xff]  }
  0x17   : > { %v2664_v12 = vunpack.c.l.bf16 %v2783_v5  ;;  %v2665_v13 = vunpack.c.h.bf16 %v2783_v5  ;;  %v2668_v14 = vunpack.c.l.bf16 %v2784_v10  ;;  %v2669_v15 = vunpack.c.h.bf16 %v2784_v10  ;;  %v2787_v34 = vld [vmem:[%s3356_s21 + $0x30] sm:$0xff]   ;;  %v2788_v55 = vld [vmem:[%s3356_s21 + $0x38] sm:$0xff]   ;;  %v2789_v1 = vld [vmem:[%s3356_s21 + $0x40] sm:$0xff]  }
  0x18   : > { %v533_v16 = vmul.f32 %v2656_v6, %v3365_v2  ;;  %v534_v17 = vmul.f32 %v2657_v7, %v3365_v2  ;;  %v535_v18 = vmul.f32 %v2660_v8, %v3365_v2  ;;  %v536_v19 = vmul.f32 %v2661_v9, %v3365_v2  ;;  %v2790_v6 = vld [vmem:[%s3356_s21 + $0x48] sm:$0xff]  }
  0x19   : > { %v537_v20 = vmul.f32 %v2664_v12, %v3365_v2  ;;  %v538_v21 = vmul.f32 %v2665_v13, %v3365_v2  ;;  %v539_v22 = vmul.f32 %v2668_v14, %v3365_v2  ;;  %v540_v23 = vmul.f32 %v2669_v15, %v3365_v2 }
  0x1a   : > { %v3384_v25 = vadd.f32 %v3372_v11, %v533_v16  ;;  %v3387_v26 = vadd.f32 %v3372_v11, %v534_v17  ;;  %v3390_v27 = vadd.f32 %v3372_v11, %v535_v18  ;;  %v3393_v28 = vadd.f32 %v3372_v11, %v536_v19 }
  0x1b   : > { %v3396_v29 = vadd.f32 %v3372_v11, %v537_v20  ;;  %v3399_v30 = vadd.f32 %v3372_v11, %v538_v21  ;;  %v3402_v31 = vadd.f32 %v3372_v11, %v539_v22  ;;  %v3405_v32 = vadd.f32 %v3372_v11, %v540_v23 }
  0x1c   : > { %v2425_v35 = vmul.f32 -1.442695, %v3384_v25  ;;  %v2426_v36 = vmul.f32 -1.442695, %v3387_v26  ;;  %v2427_v37 = vmul.f32 -1.442695, %v3390_v27  ;;  %v2672_v38 = vunpack.c.l.bf16 %v2785_v24 }
  0x1d   : > { %v2428_v39 = vmul.f32 -1.442695, %v3393_v28  ;;  %v2429_v40 = vmul.f32 -1.442695, %v3396_v29  ;;  %v2430_v41 = vmul.f32 -1.442695, %v3399_v30  ;;  %v2673_v42 = vunpack.c.h.bf16 %v2785_v24 }
  0x1e   : > { %2961 = vpow2.f32 %v2425_v35  ;;  %v2431_v43 = vmul.f32 -1.442695, %v3402_v31  ;;  %v2432_v44 = vmul.f32 -1.442695, %v3405_v32  ;;  %v541_v45 = vmul.f32 %v2672_v38, %v3365_v2 }
  0x1f   : > { %2963 = vpow2.f32 %v2426_v36  ;;  %v542_v46 = vmul.f32 %v2673_v42, %v3365_v2  ;;  %v2676_v47 = vunpack.c.l.bf16 %v2786_v33  ;;  %v2677_v48 = vunpack.c.h.bf16 %v2786_v33  ;;  %v2791_v42 = vld [vmem:[%s3356_s21 + $0x50] sm:$0xff]  }
  0x20   : > { %2965 = vpow2.f32 %v2427_v37  ;;  %v3420_v49 = vadd.f32 %v3372_v11, %v541_v45  ;;  %v2680_v50 = vunpack.c.l.bf16 %v2787_v34  ;;  %v2681_v51 = vunpack.c.h.bf16 %v2787_v34 }
  0x21   : > { %2967 = vpow2.f32 %v2428_v39  ;;  %v3423_v52 = vadd.f32 %v3372_v11, %v542_v46  ;;  %v543_v53 = vmul.f32 %v2676_v47, %v3365_v2  ;;  %v544_v54 = vmul.f32 %v2677_v48, %v3365_v2 }
  0x22   : > { %2969 = vpow2.f32 %v2429_v40  ;;  %v2433_v56 = vmul.f32 -1.442695, %v3420_v49  ;;  %v545_v57 = vmul.f32 %v2680_v50, %v3365_v2  ;;  %v546_v58 = vmul.f32 %v2681_v51, %v3365_v2 }
  0x23   : > { %2971 = vpow2.f32 %v2430_v41  ;;  %v2434_v59 = vmul.f32 -1.442695, %v3423_v52  ;;  %v3433_v60 = vadd.f32 %v3372_v11, %v543_v53  ;;  %v3436_v61 = vadd.f32 %v3372_v11, %v544_v54 }
  0x24   : > { %2973 = vpow2.f32 %v2431_v43  ;;  %v3439_v62 = vadd.f32 %v3372_v11, %v545_v57  ;;  %v3442_v63 = vadd.f32 %v3372_v11, %v546_v58  ;;  %v2684_v0 = vunpack.c.l.bf16 %v2788_v55  ;;  %v2792_v57 = vld [vmem:[%s3356_s21 + $0x58] sm:$0xff]  }
  0x25   : > { %2975 = vpow2.f32 %v2432_v44  ;;  %v2435_v3 = vmul.f32 -1.442695, %v3433_v60  ;;  %v2436_v4 = vmul.f32 -1.442695, %v3436_v61  ;;  %v2685_v5 = vunpack.c.h.bf16 %v2788_v55 }
  0x26   : > { %2977 = vpow2.f32 %v2433_v56  ;;  %v2437_v7 = vmul.f32 -1.442695, %v3439_v62  ;;  %v3450_v8 = vmul.f32 -1.442695, %v3442_v63  ;;  %v547_v9 = vmul.f32 %v2684_v0, %v3365_v2 }
  0x27   : > { %2979 = vpow2.f32 %v2434_v59  ;;  %v548_v10 = vmul.f32 %v2685_v5, %v3365_v2  ;;  %v2688_v12 = vunpack.c.l.bf16 %v2789_v1  ;;  %v2689_v13 = vunpack.c.h.bf16 %v2789_v1 }
  0x28   : > { %v2962_v14 = vpop.eup %2961  ;;  %2981 = vpow2.f32 %v2435_v3  ;;  %v3455_v15 = vadd.f32 %v3372_v11, %v547_v9  ;;  %v2692_v16 = vunpack.c.l.bf16 %v2790_v6  ;;  %v2693_v17 = vunpack.c.h.bf16 %v2790_v6 }
  0x29   : > { %v2964_v18 = vpop.eup %2963  ;;  %v860_v19 = vadd.f32 1.0, %v2962_v14  ;;  %2983 = vpow2.f32 %v2436_v4  ;;  %v3458_v20 = vadd.f32 %v3372_v11, %v548_v10  ;;  %v549_v21 = vmul.f32 %v2688_v12, %v3365_v2 }
  0x2a   : > { %v2966_v22 = vpop.eup %2965  ;;  %v861_v23 = vadd.f32 1.0, %v2964_v18  ;;  %2985 = vpow2.f32 %v2437_v7  ;;  %v3462_v24 = vmul.f32 -1.442695, %v3455_v15  ;;  %v550_v33 = vmul.f32 %v2689_v13, %v3365_v2 }
  0x2b   : > { %v2968_v34 = vpop.eup %2967  ;;  %2987 = vrcp.f32 %v860_v19  ;;  %v862_v35 = vadd.f32 1.0, %v2966_v22  ;;  %v3466_v36 = vmul.f32 -1.442695, %v3458_v20  ;;  %v3469_v37 = vadd.f32 %v3372_v11, %v549_v21 }
  0x2c   : > { %v2970_v38 = vpop.eup %2969  ;;  %2989 = vrcp.f32 %v861_v23  ;;  %v863_v39 = vadd.f32 1.0, %v2968_v34  ;;  %v3472_v40 = vadd.f32 %v3372_v11, %v550_v33  ;;  %v551_v41 = vmul.f32 %v2692_v16, %v3365_v2  ;;  %v2793_v23 = vld [vmem:[%s3356_s21 + $0x60] sm:$0xff]  }
  0x2d   : > { %v2972_v43 = vpop.eup %2971  ;;  %2991 = vrcp.f32 %v862_v35  ;;  %v864_v44 = vadd.f32 1.0, %v2970_v38  ;;  %v3477_v45 = vmul.f32 -1.442695, %v3469_v37  ;;  %v552_v46 = vmul.f32 %v2693_v17, %v3365_v2 }
  0x2e   : > { %v2974_v47 = vpop.eup %2973  ;;  %2993 = vrcp.f32 %v863_v39  ;;  %v865_v48 = vadd.f32 1.0, %v2972_v43  ;;  %v3481_v50 = vmul.f32 -1.442695, %v3472_v40  ;;  %v3484_v51 = vadd.f32 %v3372_v11, %v551_v41 }
  0x2f   : > { %v2976_v53 = vpop.eup %2975  ;;  %2995 = vrcp.f32 %v864_v44  ;;  %v866_v54 = vadd.f32 1.0, %v2974_v47  ;;  %v3487_v55 = vadd.f32 %v3372_v11, %v552_v46  ;;  %v2696_v56 = vunpack.c.l.bf16 %v2791_v42 }
  0x30   : > { %v2978_v58 = vpop.eup %2977  ;;  %2997 = vrcp.f32 %v865_v48  ;;  %v867_v59 = vadd.f32 1.0, %v2976_v53  ;;  %v3491_v0 = vmul.f32 -1.442695, %v3484_v51  ;;  %v2697_v1 = vunpack.c.h.bf16 %v2791_v42 }
  0x31   : > { %v2980_v3 = vpop.eup %2979  ;;  %2999 = vrcp.f32 %v866_v54  ;;  %v868_v4 = vadd.f32 1.0, %v2978_v58  ;;  %v3494_v5 = vmul.f32 -1.442695, %v3487_v55  ;;  %v553_v6 = vmul.f32 %v2696_v56, %v3365_v2 }
  0x32   : > { %v2982_v7 = vpop.eup %2981  ;;  %3001 = vrcp.f32 %v867_v59  ;;  %v869_v9 = vadd.f32 1.0, %v2980_v3  ;;  %v554_v10 = vmul.f32 %v2697_v1, %v3365_v2  ;;  %v2700_v12 = vunpack.c.l.bf16 %v2792_v57 }
  0x33   : > { %v2984_v13 = vpop.eup %2983  ;;  %3003 = vrcp.f32 %v868_v4  ;;  %v870_v14 = vadd.f32 1.0, %v2982_v7  ;;  %v3499_v16 = vadd.f32 %v3372_v11, %v553_v6  ;;  %v2701_v17 = vunpack.c.h.bf16 %v2792_v57  ;;  %v2794_v57 = vld [vmem:[%s3356_s21 + $0x68] sm:$0xff]  }
  0x34   : > { %v2986_v18 = vpop.eup %2985  ;;  %3005 = vrcp.f32 %v869_v9  ;;  %v871_v19 = vadd.f32 1.0, %v2984_v13  ;;  %v3502_v21 = vadd.f32 %v3372_v11, %v554_v10  ;;  %v555_v22 = vmul.f32 %v2700_v12, %v3365_v2 }
  0x35   : > { %v2988_v33 = vpop.eup %2987  ;;  %3007 = vrcp.f32 %v870_v14  ;;  %v872_v34 = vadd.f32 1.0, %v2986_v18  ;;  %v2445_v35 = vmul.f32 -1.442695, %v3499_v16  ;;  %v556_v38 = vmul.f32 %v2701_v17, %v3365_v2  ;;  %v2795_v14 = vld [vmem:[%s3356_s21 + $0x70] sm:$0xff]  }
  0x36   : > { %v2990_v39 = vpop.eup %2989  ;;  %v1052_v41 = vmul.f32 %v2988_v33, %v3384_v25  ;;  %3009 = vrcp.f32 %v871_v19  ;;  %v2446_v42 = vmul.f32 -1.442695, %v3502_v21  ;;  %v3511_v43 = vadd.f32 %v3372_v11, %v555_v22 }
  0x37   : > { %v2992_v44 = vpop.eup %2991  ;;  %v1053_v46 = vmul.f32 %v2990_v39, %v3387_v26  ;;  %3011 = vpow2.f32 %v3450_v8  ;;  %v3516_v47 = vadd.f32 %v3372_v11, %v556_v38  ;;  %v2704_v48 = vunpack.c.l.bf16 %v2793_v23 }
  0x38   : > { %v2994_v53 = vpop.eup %2993  ;;  %v1054_v54 = vmul.f32 %v2992_v44, %v3390_v27  ;;  %3013 = vrcp.f32 %v872_v34  ;;  %v2447_v25 = vmul.f32 -1.442695, %v3511_v43  ;;  %v2705_v56 = vunpack.c.h.bf16 %v2793_v23 }
  0x39   : > { %v2996_v58 = vpop.eup %2995  ;;  %v1116_v59 = vpack.c.bf16 %v1053_v46, %v1052_v41  ;;  %v1055_v1 = vmul.f32 %v2994_v53, %v3393_v28  ;;  %3015 = vpow2.f32 %v3462_v24  ;;  %v2448_v26 = vmul.f32 -1.442695, %v3516_v47 }
  0x3a   : > { %v2998_v8 = vpop.eup %2997  ;;  %v1056_v3 = vmul.f32 %v2996_v58, %v3396_v29  ;;  %3017 = vpow2.f32 %v3466_v36  ;;  %v557_v27 = vmul.f32 %v2704_v48, %v3365_v2  ;;  %v558_v4 = vmul.f32 %v2705_v56, %v3365_v2 }
  0x3b   : > { %v3000_v6 = vpop.eup %2999  ;;  %2851 = vmatprep.mubr.msk.bf16.mxu0 %vm1171_vm0, %v1116_v59  ;;  %v1117_v7 = vpack.c.bf16 %v1055_v1, %v1054_v54  ;;  %v1057_v28 = vmul.f32 %v2998_v8, %v3399_v30  ;;  %3019 = vpow2.f32 %v3477_v45  ;;  %v2708_v24 = vunpack.c.l.bf16 %v2794_v57 }
  0x3c   : > { %v3002_v9 = vpop.eup %3001  ;;  %v1058_v10 = vmul.f32 %v3000_v6, %v3402_v31  ;;  %3021 = vpow2.f32 %v3481_v50  ;;  %v3534_v29 = vadd.f32 %v3372_v11, %v557_v27  ;;  %v3537_v36 = vadd.f32 %v3372_v11, %v558_v4 }
  0x3d   : > { %v3004_v12 = vpop.eup %3003  ;;  %2852 = vmatmul.mubr.msk.bf16.vlgmr.msra.gmra.mrb[0].mxu0 %vm1171_vm0, %v1117_v7  ;;  %v1118_v13 = vpack.c.bf16 %v1057_v28, %v1056_v3  ;;  %v1059_v30 = vmul.f32 %v3002_v9, %v3405_v32  ;;  %3023 = vpow2.f32 %v3491_v0  ;;  %v2709_v45 = vunpack.c.h.bf16 %v2794_v57 }
  0x3e   : > { %v3006_v17 = vpop.eup %3005  ;;  %v1060_v31 = vmul.f32 %v3004_v12, %v3420_v49  ;;  %3025 = vpow2.f32 %v3494_v5  ;;  %v2449_v50 = vmul.f32 -1.442695, %v3534_v29  ;;  %v2450_v18 = vmul.f32 -1.442695, %v3537_v36 }
  0x3f   : > { %v3008_v19 = vpop.eup %3007  ;;  %2855 = vmatprep.mubr.msk.bf16.mxu0 %vm1171_vm0, %v1118_v13  ;;  %v1119_v22 = vpack.c.bf16 %v1059_v30, %v1058_v10  ;;  %v1061_v23 = vmul.f32 %v3006_v17, %v3423_v52  ;;  %3027 = vpow2.f32 %v2445_v35  ;;  %v559_v32 = vmul.f32 %v2708_v24, %v3365_v2  ;;  %v2797_v24 = vld [vmem:[%s3356_s21 + $0x80] sm:$0xff]  }
  0x40   : > { %v3010_v0 = vpop.eup %3009  ;;  %v3551_v33 = vmul.f32 %v3008_v19, %v3433_v60  ;;  %3029 = vpow2.f32 %v2446_v42  ;;  %v560_v49 = vmul.f32 %v2709_v45, %v3365_v2  ;;  %v2712_v5 = vunpack.c.l.bf16 %v2795_v14  ;;  %v2796_v42 = vld [vmem:[%s3356_s21 + $0x78] sm:$0xff]  }
  0x41   : > { %v3012_v34 = vpop.eup %3011  ;;  %v1120_v38 = vpack.c.bf16 %v1061_v23, %v1060_v31  ;;  %v3555_v39 = vmul.f32 %v3010_v0, %v3436_v61  ;;  %3031 = vpow2.f32 %v2447_v25  ;;  %v3558_v52 = vadd.f32 %v3372_v11, %v559_v32 }
  0x42   : > { %v3014_v35 = vpop.eup %3013  ;;  %v873_v41 = vadd.f32 1.0, %v3012_v34  ;;  %3033 = vpow2.f32 %v2448_v26  ;;  %v3561_v44 = vadd.f32 %v3372_v11, %v560_v49  ;;  %v2713_v60 = vunpack.c.h.bf16 %v2795_v14 }
  0x43   : > { %v3016_v46 = vpop.eup %3015  ;;  %v1121_v48 = vpack.c.bf16 %v3555_v39, %v3551_v33  ;;  %v3567_v53 = vmul.f32 %v3014_v35, %v3439_v62  ;;  %3035 = vpow2.f32 %v2449_v50  ;;  %v3570_v61 = vmul.f32 -1.442695, %v3558_v52 }
  0x44   : > { %v3018_v54 = vpop.eup %3017  ;;  %3037 = vrcp.f32 %v873_v41  ;;  %v874_v25 = vadd.f32 1.0, %v3016_v46  ;;  %v3573_v56 = vmul.f32 -1.442695, %v3561_v44  ;;  %v561_v57 = vmul.f32 %v2712_v5, %v3365_v2 }
  0x45   : > { %v3020_v58 = vpop.eup %3019  ;;  %2856 = vmatmul.mubr.msk.bf16.gmra.mrb[4].mxu0 %vm1171_vm0, %v1119_v22  ;;  %v875_v59 = vadd.f32 1.0, %v3018_v54  ;;  %3039 = vpow2.f32 %v2450_v18  ;;  %v562_v62 = vmul.f32 %v2713_v60, %v3365_v2  ;;  %v2716_v1 = vunpack.c.l.bf16 %v2796_v42  ;;  %v2798_v22 = vld [vmem:[%s3356_s21 + $0x88] sm:$0xff]  }
  0x46   : > { %v3022_v26 = vpop.eup %3021  ;;  %2859 = vmatprep.mubr.msk.bf16.mxu0 %vm1171_vm0, %v1120_v38  ;;  %3041 = vrcp.f32 %v874_v25  ;;  %v876_v8 = vadd.f32 1.0, %v3020_v58  ;;  %v3580_v3 = vadd.f32 %v3372_v11, %v561_v57  ;;  %v2717_v27 = vunpack.c.h.bf16 %v2796_v42 }
  0x47   : > { %v3024_v4 = vpop.eup %3023  ;;  %3043 = vrcp.f32 %v875_v59  ;;  %v877_v6 = vadd.f32 1.0, %v3022_v26  ;;  %v3583_v7 = vadd.f32 %v3372_v11, %v562_v62  ;;  %v563_v28 = vmul.f32 %v2716_v1, %v3365_v2 }
  0x48   : > { %v3026_v9 = vpop.eup %3025  ;;  %3045 = vrcp.f32 %v876_v8  ;;  %v878_v10 = vadd.f32 1.0, %v3024_v4  ;;  %v3588_v12 = vmul.f32 -1.442695, %v3580_v3  ;;  %v564_v13 = vmul.f32 %v2717_v27, %v3365_v2  ;;  %v2799_v27 = vld [vmem:[%s3356_s21 + $0x90] sm:$0xff]  }
  0x49   : > { %v3028_v30 = vpop.eup %3027  ;;  %3047 = vrcp.f32 %v877_v6  ;;  %v879_v45 = vadd.f32 1.0, %v3026_v9  ;;  %v3592_v14 = vmul.f32 -1.442695, %v3583_v7  ;;  %v3595_v17 = vadd.f32 %v3372_v11, %v563_v28 }
  0x4a   : > { %v3030_v31 = vpop.eup %3029  ;;  %3049 = vrcp.f32 %v878_v10  ;;  %v880_v50 = vadd.f32 1.0, %v3028_v30  ;;  %v3598_v18 = vadd.f32 %v3372_v11, %v564_v13  ;;  %v2720_v19 = vunpack.c.l.bf16 %v2797_v24 }
  0x4b   : > { %v3032_v23 = vpop.eup %3031  ;;  %3051 = vrcp.f32 %v879_v45  ;;  %v881_v32 = vadd.f32 1.0, %v3030_v31  ;;  %v2455_v0 = vmul.f32 -1.442695, %v3595_v17  ;;  %v2721_v33 = vunpack.c.h.bf16 %v2797_v24 }
  0x4c   : > { %v3034_v49 = vpop.eup %3033  ;;  %3053 = vrcp.f32 %v880_v50  ;;  %v882_v5 = vadd.f32 1.0, %v3032_v23  ;;  %v2456_v34 = vmul.f32 -1.442695, %v3598_v18  ;;  %v565_v38 = vmul.f32 %v2720_v19, %v3365_v2  ;;  %v2800_v19 = vld [vmem:[%s3356_s21 + $0x98] sm:$0xff]  }
  0x4d   : > { %v3036_v39 = vpop.eup %3035  ;;  %2860 = vmatmul.mubr.msk.bf16.gmra.mrb[8].mxu0 %vm1171_vm0, %v1121_v48  ;;  %3055 = vrcp.f32 %v881_v32  ;;  %v883_v35 = vadd.f32 1.0, %v3034_v49  ;;  %v566_v41 = vmul.f32 %v2721_v33, %v3365_v2  ;;  %v2724_v60 = vunpack.c.l.bf16 %v2798_v22 }
  0x4e   : > { %v3038_v42 = vpop.eup %3037  ;;  %3057 = vrcp.f32 %v882_v5  ;;  %v884_v46 = vadd.f32 1.0, %v3036_v39  ;;  %v3607_v54 = vadd.f32 %v3372_v11, %v565_v38  ;;  %v2725_v25 = vunpack.c.h.bf16 %v2798_v22 }
  0x4f   : > { %v3040_v57 = vpop.eup %3039  ;;  %v1065_v58 = vmul.f32 %v3038_v42, %v3442_v63  ;;  %3059 = vrcp.f32 %v883_v35  ;;  %v3611_v59 = vadd.f32 %v3372_v11, %v566_v41  ;;  %v567_v48 = vmul.f32 %v2724_v60, %v3365_v2  ;;  %v2801_v60 = vld [vmem:[%s3356_s21 + $0xa0] sm:$0xff]  }
  0x50   : > { %v3042_v62 = vpop.eup %3041  ;;  %v885_v1 = vadd.f32 1.0, %v3040_v57  ;;  %3061 = vrcp.f32 %v884_v46  ;;  %v2457_v26 = vmul.f32 -1.442695, %v3607_v54  ;;  %v568_v8 = vmul.f32 %v2725_v25, %v3365_v2 }
  0x51   : > { %v3044_v4 = vpop.eup %3043  ;;  %v1122_v6 = vpack.c.bf16 %v1065_v58, %v3567_v53  ;;  %v1066_v28 = vmul.f32 %v3042_v62, %v3455_v15  ;;  %3063 = vpow2.f32 %v3570_v61  ;;  %v2458_v63 = vmul.f32 -1.442695, %v3611_v59 }
  0x52   : > { %v3046_v24 = vpop.eup %3045  ;;  %v1067_v9 = vmul.f32 %v3044_v4, %v3458_v20  ;;  %3065 = vrcp.f32 %v885_v1  ;;  %v3623_v10 = vadd.f32 %v3372_v11, %v567_v48  ;;  %v3626_v13 = vadd.f32 %v3372_v11, %v568_v8 }
  0x53   : > { %v3048_v30 = vpop.eup %3047  ;;  %2863 = vmatprep.mubr.msk.bf16.mxu0 %vm1171_vm0, %v1122_v6  ;;  %v1068_v15 = vmul.f32 %v3046_v24, %v3469_v37  ;;  %3067 = vpow2.f32 %v3573_v56  ;;  %v2728_v53 = vunpack.c.l.bf16 %v2799_v27  ;;  %v2729_v61 = vunpack.c.h.bf16 %v2799_v27 }
  0x54   : > { %v3050_v45 = vpop.eup %3049  ;;  %v1123_v31 = vpack.c.bf16 %v1067_v9, %v1066_v28  ;;  %v1069_v20 = vmul.f32 %v3048_v30, %v3472_v40  ;;  %3069 = vpow2.f32 %v3588_v12  ;;  %v2459_v50 = vmul.f32 -1.442695, %v3623_v10  ;;  %v2802_v9 = vld [vmem:[%s3356_s21 + $0xa8] sm:$0xff]  }
  0x55   : > { %v3052_v22 = vpop.eup %3051  ;;  %v1070_v23 = vmul.f32 %v3050_v45, %v3484_v51  ;;  %3071 = vpow2.f32 %v3592_v14  ;;  %v2460_v37 = vmul.f32 -1.442695, %v3626_v13  ;;  %v569_v56 = vmul.f32 %v2728_v53, %v3365_v2 }
  0x56   : > { %v3054_v32 = vpop.eup %3053  ;;  %2864 = vmatmul.mubr.msk.bf16.gmra.mrb[12].mxu0 %vm1171_vm0, %v1123_v31  ;;  %v1124_v33 = vpack.c.bf16 %v1069_v20, %v1068_v15  ;;  %v1071_v40 = vmul.f32 %v3052_v22, %v3487_v55  ;;  %3073 = vpow2.f32 %v2455_v0  ;;  %v570_v12 = vmul.f32 %v2729_v61, %v3365_v2 }
  0x57   : > { %v3056_v49 = vpop.eup %3055  ;;  %v1072_v5 = vmul.f32 %v3054_v32, %v3499_v16  ;;  %3075 = vpow2.f32 %v2456_v34  ;;  %v3644_v51 = vadd.f32 %v3372_v11, %v569_v56  ;;  %v2732_v14 = vunpack.c.l.bf16 %v2800_v19  ;;  %v2803_v56 = vld [vmem:[%s3356_s21 + $0xb0] sm:$0xff]  }
  0x58   : > { %v3058_v38 = vpop.eup %3057  ;;  %2867 = vmatprep.mubr.msk.bf16.mxu0 %vm1171_vm0, %v1124_v33  ;;  %v1125_v39 = vpack.c.bf16 %v1071_v40, %v1070_v23  ;;  %v1073_v35 = vmul.f32 %v3056_v49, %v3502_v21  ;;  %3077 = vpow2.f32 %v2457_v26  ;;  %v3649_v55 = vadd.f32 %v3372_v11, %v570_v12 }
  0x59   : > { %v3060_v0 = vpop.eup %3059  ;;  %v3652_v41 = vmul.f32 %v3058_v38, %v3511_v43  ;;  %3079 = vpow2.f32 %v2458_v63  ;;  %v2461_v16 = vmul.f32 -1.442695, %v3644_v51  ;;  %v2733_v34 = vunpack.c.h.bf16 %v2800_v19 }
  0x5a   : > { %v3062_v42 = vpop.eup %3061  ;;  %v1126_v46 = vpack.c.bf16 %v1073_v35, %v1072_v5  ;;  %v3657_v25 = vmul.f32 %v3060_v0, %v3516_v47  ;;  %3081 = vpow2.f32 %v2459_v50  ;;  %v2462_v21 = vmul.f32 -1.442695, %v3649_v55 }
  0x5b   : > { %v3064_v57 = vpop.eup %3063  ;;  %v3661_v58 = vmul.f32 %v3062_v42, %v3534_v29  ;;  %3083 = vpow2.f32 %v2460_v37  ;;  %v571_v43 = vmul.f32 %v2732_v14, %v3365_v2  ;;  %v572_v48 = vmul.f32 %v2733_v34, %v3365_v2 }
  0x5c   : > { %v3066_v62 = vpop.eup %3065  ;;  %v1127_v1 = vpack.c.bf16 %v3657_v25, %v3652_v41  ;;  %v886_v26 = vadd.f32 1.0, %v3064_v57  ;;  %3085 = vpow2.f32 %v2461_v16  ;;  %v2736_v47 = vunpack.c.l.bf16 %v2801_v60 }
  0x5d   : > { %v3068_v8 = vpop.eup %3067  ;;  %v1077_v27 = vmul.f32 %v3066_v62, %v3537_v36  ;;  %3087 = vpow2.f32 %v2462_v21  ;;  %v3669_v29 = vadd.f32 %v3372_v11, %v571_v43  ;;  %v3672_v4 = vadd.f32 %v3372_v11, %v572_v48 }
  0x5e   : > { %v3070_v6 = vpop.eup %3069  ;;  %2868 = vmatmul.mubr.msk.bf16.gmra.mrb[16].mxu0 %vm1171_vm0, %v1125_v39  ;;  %v887_v28 = vadd.f32 1.0, %v3068_v8  ;;  %3089 = vrcp.f32 %v886_v26  ;;  %v2737_v63 = vunpack.c.h.bf16 %v2801_v60  ;;  %v573_v24 = vmul.f32 %v2736_v47, %v3365_v2  ;;  %v2805_v47 = vld [vmem:[%s3356_s21 + $0xc0] sm:$0xff]  }
  0x5f   : > { %v3072_v30 = vpop.eup %3071  ;;  %2871 = vmatprep.mubr.msk.bf16.mxu0 %vm1171_vm0, %v1126_v46  ;;  %v1128_v36 = vpack.c.bf16 %v1077_v27, %v3661_v58  ;;  %v888_v15 = vadd.f32 1.0, %v3070_v6  ;;  %v3680_v53 = vmul.f32 -1.442695, %v3669_v29  ;;  %v3683_v61 = vmul.f32 -1.442695, %v3672_v4  ;;  %v2804_v58 = vld [vmem:[%s3356_s21 + $0xb8] sm:$0xff]  }
  0x60   : > { %v3074_v45 = vpop.eup %3073  ;;  %3091 = vrcp.f32 %v887_v28  ;;  %v889_v31 = vadd.f32 1.0, %v3072_v30  ;;  %v574_v20 = vmul.f32 %v2737_v63, %v3365_v2  ;;  %v3687_v50 = vadd.f32 %v3372_v11, %v573_v24 }
  0x61   : > { %v3076_v19 = vpop.eup %3075  ;;  %3093 = vrcp.f32 %v888_v15  ;;  %v890_v22 = vadd.f32 1.0, %v3074_v45  ;;  %v2740_v23 = vunpack.c.l.bf16 %v2802_v9  ;;  %v2741_v37 = vunpack.c.h.bf16 %v2802_v9 }
  0x62   : > { %v3078_v32 = vpop.eup %3077  ;;  %3095 = vrcp.f32 %v889_v31  ;;  %v891_v33 = vadd.f32 1.0, %v3076_v19  ;;  %v3691_v40 = vadd.f32 %v3372_v11, %v574_v20  ;;  %v2465_v12 = vmul.f32 -1.442695, %v3687_v50 }
  0x63   : > { %v3080_v49 = vpop.eup %3079  ;;  %3097 = vrcp.f32 %v890_v22  ;;  %v892_v5 = vadd.f32 1.0, %v3078_v32  ;;  %v575_v14 = vmul.f32 %v2740_v23, %v3365_v2  ;;  %v576_v38 = vmul.f32 %v2741_v37, %v3365_v2 }
  0x64   : > { %v3082_v39 = vpop.eup %3081  ;;  %3099 = vrcp.f32 %v891_v33  ;;  %v893_v35 = vadd.f32 1.0, %v3080_v49  ;;  %v2466_v0 = vmul.f32 -1.442695, %v3691_v40  ;;  %v2744_v41 = vunpack.c.l.bf16 %v2803_v56 }
  0x65   : > { %v3084_v16 = vpop.eup %3083  ;;  %3101 = vrcp.f32 %v892_v5  ;;  %v894_v34 = vadd.f32 1.0, %v3082_v39  ;;  %v3698_v60 = vadd.f32 %v3372_v11, %v575_v14  ;;  %v3701_v42 = vadd.f32 %v3372_v11, %v576_v38 }
  0x66   : > { %v3086_v46 = vpop.eup %3085  ;;  %2872 = vmatmul.mubr.msk.bf16.gmra.mrb[20].mxu0 %vm1171_vm0, %v1127_v1  ;;  %3103 = vrcp.f32 %v893_v35  ;;  %v895_v25 = vadd.f32 1.0, %v3084_v16  ;;  %v2745_v21 = vunpack.c.h.bf16 %v2803_v56  ;;  %v577_v57 = vmul.f32 %v2744_v41, %v3365_v2 }
  0x67   : > { %v3088_v43 = vpop.eup %3087  ;;  %2875 = vmatprep.mubr.msk.bf16.mxu0 %vm1171_vm0, %v1128_v36  ;;  %3105 = vrcp.f32 %v894_v34  ;;  %v896_v48 = vadd.f32 1.0, %v3086_v46  ;;  %v2467_v62 = vmul.f32 -1.442695, %v3698_v60  ;;  %v2468_v26 = vmul.f32 -1.442695, %v3701_v42 }
  0x68   : > { %v3090_v8 = vpop.eup %3089  ;;  %3107 = vrcp.f32 %v895_v25  ;;  %v897_v27 = vadd.f32 1.0, %v3088_v43  ;;  %v578_v1 = vmul.f32 %v2745_v21, %v3365_v2  ;;  %v3712_v6 = vadd.f32 %v3372_v11, %v577_v57 }
  0x69   : > { %v1078_v28 = vmul.f32 %v3090_v8, %v3558_v52  ;;  %3109 = vrcp.f32 %v896_v48  ;;  %v2748_v63 = vunpack.c.l.bf16 %v2804_v58  ;;  %v2749_v24 = vunpack.c.h.bf16 %v2804_v58 }
  0x6a   : > { %v3092_v9 = vpop.eup %3091  ;;  %3111 = vrcp.f32 %v897_v27  ;;  %v3716_v30 = vadd.f32 %v3372_v11, %v578_v1  ;;  %v2469_v36 = vmul.f32 -1.442695, %v3712_v6  ;;  %v2752_v15 = vunpack.c.l.bf16 %v2805_v47 }
  0x6b   : > { %v3094_v45 = vpop.eup %3093  ;;  %v1079_v31 = vmul.f32 %v3092_v9, %v3561_v44  ;;  %3113 = vpow2.f32 %v3680_v53  ;;  %v579_v20 = vmul.f32 %v2748_v63, %v3365_v2  ;;  %v580_v52 = vmul.f32 %v2749_v24, %v3365_v2 }
  0x6c   : > { %v3096_v19 = vpop.eup %3095  ;;  %v1080_v22 = vmul.f32 %v3094_v45, %v3580_v3  ;;  %3115 = vpow2.f32 %v3683_v61  ;;  %v2470_v23 = vmul.f32 -1.442695, %v3716_v30  ;;  %v2753_v37 = vunpack.c.h.bf16 %v2805_v47 }
  0x6d   : > { %v3098_v56 = vpop.eup %3097  ;;  %v1129_v32 = vpack.c.bf16 %v1079_v31, %v1078_v28  ;;  %v1081_v33 = vmul.f32 %v3096_v19, %v3583_v7  ;;  %3117 = vpow2.f32 %v2465_v12  ;;  %v3728_v44 = vadd.f32 %v3372_v11, %v579_v20  ;;  %v2806_v12 = vld [vmem:[%s3356_s21 + $0xc8] sm:$0xff]   ;;  %v3772_v19 = vld [vmem:[%s3346_s16] ss:$0 sm:$0xff]  ;;  %s388_s16 = sadd.s32 %s2421_s15, %s4259_s24 }
  0x6e   : > { %v3100_v53 = vpop.eup %3099  ;;  %v1082_v49 = vmul.f32 %v3098_v56, %v3595_v17  ;;  %3119 = vpow2.f32 %v2466_v0  ;;  %v3732_v3 = vadd.f32 %v3372_v11, %v580_v52  ;;  %v581_v61 = vmul.f32 %v2752_v15, %v3365_v2  ;;  %v3766_v52 = vld [vmem:[%s3362_s8] ss:$0 sm:$0xff]  ;;  %s389_s19 = scalar_lea.vmem %s4242_s6, %s388_s16  ;;  %s396_s22 = scalar_lea.vmem %s4243_s7, %s388_s16 }
  0x6f   : > { %v3102_v5 = vpop.eup %3101  ;;  %2876 = vmatmul.mubr.msk.bf16.gmra.mrb[24].mxu0 %vm1171_vm0, %v1129_v32  ;;  %v1130_v14 = vpack.c.bf16 %v1081_v33, %v1080_v22  ;;  %v1083_v38 = vmul.f32 %v3100_v53, %v3598_v18  ;;  %3121 = vpow2.f32 %v2467_v62  ;;  %v2471_v7 = vmul.f32 -1.442695, %v3728_v44 }
  0x70   : > { %v3104_v39 = vpop.eup %3103  ;;  %v1084_v35 = vmul.f32 %v3102_v5, %v3607_v54  ;;  %3123 = vpow2.f32 %v2468_v26  ;;  %v2472_v17 = vmul.f32 -1.442695, %v3732_v3  ;;  %v582_v0 = vmul.f32 %v2753_v37, %v3365_v2 }
  0x71   : > { %v3106_v41 = vpop.eup %3105  ;;  %2879 = vmatprep.mubr.msk.bf16.mxu0 %vm1171_vm0, %v1130_v14  ;;  %v1131_v16 = vpack.c.bf16 %v1083_v38, %v1082_v49  ;;  %v1085_v34 = vmul.f32 %v3104_v39, %v3611_v59  ;;  %3125 = vpow2.f32 %v2469_v36  ;;  %v3745_v18 = vadd.f32 %v3372_v11, %v581_v61  ;;  %v2807_v59 = vld [vmem:[%s3356_s21 + $0xd0] sm:$0xff]  }
  0x72   : > { %v3108_v46 = vpop.eup %3107  ;;  %v1086_v25 = vmul.f32 %v3106_v41, %v3623_v10  ;;  %3127 = vpow2.f32 %v2470_v23  ;;  %v3749_v54 = vadd.f32 %v3372_v11, %v582_v0  ;;  %v2756_v21 = vunpack.c.l.bf16 %v2806_v12  ;;  %v2808_v23 = vld [vmem:[%s3356_s21 + $0xd8] sm:$0xff]  }
  0x73   : > { %v3110_v57 = vpop.eup %3109  ;;  %v1132_v58 = vpack.c.bf16 %v1085_v34, %v1084_v35  ;;  %v1087_v43 = vmul.f32 %v3108_v46, %v3626_v13  ;;  %3129 = vpow2.f32 %v2471_v7  ;;  %v2473_v48 = vmul.f32 -1.442695, %v3745_v18 }
  0x74   : > { %v3112_v62 = vpop.eup %3111  ;;  %v1088_v26 = vmul.f32 %v3110_v57, %v3644_v51  ;;  %3131 = vpow2.f32 %v2472_v17  ;;  %v2474_v47 = vmul.f32 -1.442695, %v3749_v54  ;;  %v2757_v10 = vunpack.c.h.bf16 %v2806_v12  ;;  %v2809_v12 = vld [vmem:[%s3356_s21 + $0xe0] sm:$0xff]  }
  0x75   : > { %v3114_v8 = vpop.eup %3113  ;;  %2883 = vmatprep.mubr.msk.bf16.mxu1 %vm1171_vm0, %v1132_v58  ;;  %v1133_v27 = vpack.c.bf16 %v1087_v43, %v1086_v25  ;;  %v1089_v1 = vmul.f32 %v3112_v62, %v3649_v55  ;;  %3133 = vpow2.f32 %v2473_v48  ;;  %v583_v13 = vmul.f32 %v2756_v21, %v3365_v2 }
  0x76   : > { %v3116_v28 = vpop.eup %3115  ;;  %v898_v63 = vadd.f32 1.0, %v3114_v8  ;;  %3135 = vpow2.f32 %v2474_v47  ;;  %v584_v51 = vmul.f32 %v2757_v10, %v3365_v2  ;;  %v2760_v24 = vunpack.c.l.bf16 %v2807_v59 }
  0x77   : > { %v3118_v9 = vpop.eup %3117  ;;  %2880 = vmatmul.mubr.msk.bf16.gmra.mrb[28].mxu0 %vm1171_vm0, %v1131_v16  ;;  %2884 = vmatmul.mubr.msk.bf16.vlgmr.msra.gmra.mrb[0].mxu1 %vm1171_vm0, %v1133_v27  ;;  %v1134_v36 = vpack.c.bf16 %v1089_v1, %v1088_v26  ;;  %v899_v15 = vadd.f32 1.0, %v3116_v28  ;;  %v3763_v55 = vadd.f32 %v3372_v11, %v583_v13  ;;  %v2761_v45 = vunpack.c.h.bf16 %v2807_v59  ;;  %v2810_v26 = vld [vmem:[%s3356_s21 + $0xe8] sm:$0xff]  }
  0x78   : > { %v3120_v31 = vpop.eup %3119  ;;  %3137 = vrcp.f32 %v898_v63  ;;  %v900_v20 = vadd.f32 1.0, %v3118_v9  ;;  %v3769_v2 = vadd.f32 %v3766_v52, %v584_v51  ;;  %v585_v22 = vmul.f32 %v3772_v19, %v2760_v24 }
  0x79   : > { %v3122_v37 = vpop.eup %3121  ;;  %2887 = vmatprep.mubr.msk.bf16.mxu1 %vm1171_vm0, %v1134_v36  ;;  %3139 = vrcp.f32 %v899_v15  ;;  %v901_v11 = vadd.f32 1.0, %v3120_v31  ;;  %v2475_v56 = vmul.f32 -1.442695, %v3763_v55  ;;  %v586_v32 = vmul.f32 %v3772_v19, %v2761_v45 }
  0x7a   : > { %v3124_v33 = vpop.eup %3123  ;;  %3141 = vrcp.f32 %v900_v20  ;;  %v902_v53 = vadd.f32 1.0, %v3122_v37  ;;  %v2476_v49 = vmul.f32 -1.442695, %v3769_v2  ;;  %v3781_v61 = vadd.f32 %v3766_v52, %v585_v22 }
  0x7b   : > { %v3126_v5 = vpop.eup %3125  ;;  %3143 = vrcp.f32 %v901_v11  ;;  %v903_v14 = vadd.f32 1.0, %v3124_v33  ;;  %v3784_v38 = vadd.f32 %v3766_v52, %v586_v32  ;;  %v2764_v7 = vunpack.c.l.bf16 %v2808_v23  ;;  %v2811_v11 = vld [vmem:[%s3356_s21 + $0xf0] sm:$0xff]  }
  0x7c   : > { %v3128_v39 = vpop.eup %3127  ;;  %3145 = vrcp.f32 %v902_v53  ;;  %v904_v35 = vadd.f32 1.0, %v3126_v5  ;;  %v2477_v17 = vmul.f32 -1.442695, %v3781_v61  ;;  %v2765_v0 = vunpack.c.h.bf16 %v2808_v23 }
  0x7d   : > { %v3130_v41 = vpop.eup %3129  ;;  %3147 = vrcp.f32 %v903_v14  ;;  %v905_v16 = vadd.f32 1.0, %v3128_v39  ;;  %v2478_v34 = vmul.f32 -1.442695, %v3784_v38  ;;  %v587_v46 = vmul.f32 %v3772_v19, %v2764_v7 }
  0x7e   : > { %v3132_v25 = vpop.eup %3131  ;;  %3149 = vrcp.f32 %v904_v35  ;;  %v906_v21 = vadd.f32 1.0, %v3130_v41  ;;  %v588_v57 = vmul.f32 %v3772_v19, %v2765_v0  ;;  %v2768_v58 = vunpack.c.l.bf16 %v2809_v12 }
  0x7f   : > { %v3134_v43 = vpop.eup %3133  ;;  %3151 = vrcp.f32 %v905_v16  ;;  %v907_v48 = vadd.f32 1.0, %v3132_v25  ;;  %v3792_v59 = vadd.f32 %v3766_v52, %v587_v46  ;;  %v2769_v62 = vunpack.c.h.bf16 %v2809_v12  ;;  %v2812_v16 = vld [vmem:[%s3356_s21 + $0xf8] sm:$0xff]  }
  0x80   : > { %v3136_v47 = vpop.eup %3135  ;;  %3153 = vrcp.f32 %v906_v21  ;;  %v908_v10 = vadd.f32 1.0, %v3134_v43  ;;  %v3796_v8 = vadd.f32 %v3766_v52, %v588_v57  ;;  %v589_v27 = vmul.f32 %v3772_v19, %v2768_v58 }
  0x81   : > { %3155 = vrcp.f32 %v907_v48  ;;  %v909_v1 = vadd.f32 1.0, %v3136_v47  ;;  %v2479_v13 = vmul.f32 -1.442695, %v3792_v59  ;;  %v590_v28 = vmul.f32 %v3772_v19, %v2769_v62 }
  0x82   : > { %v3138_v63 = vpop.eup %3137  ;;  %3157 = vrcp.f32 %v908_v10  ;;  %v2480_v51 = vmul.f32 -1.442695, %v3796_v8  ;;  %v3803_v24 = vadd.f32 %v3766_v52, %v589_v27  ;;  %v2772_v9 = vunpack.c.l.bf16 %v2810_v26 }
  0x83   : > { %v3140_v36 = vpop.eup %3139  ;;  %v1090_v15 = vmul.f32 %v3138_v63, %v3669_v29  ;;  %3159 = vrcp.f32 %v909_v1  ;;  %v3807_v45 = vadd.f32 %v3766_v52, %v590_v28  ;;  %v2773_v31 = vunpack.c.h.bf16 %v2810_v26 }
  0x84   : > { %v3142_v20 = vpop.eup %3141  ;;  %v1091_v22 = vmul.f32 %v3140_v36, %v3672_v4  ;;  %3161 = vpow2.f32 %v2475_v56  ;;  %v2481_v23 = vmul.f32 -1.442695, %v3803_v24  ;;  %v591_v37 = vmul.f32 %v3772_v19, %v2772_v9 }
  0x85   : > { %v3144_v32 = vpop.eup %3143  ;;  %v1092_v33 = vmul.f32 %v3142_v20, %v3687_v50  ;;  %3163 = vpow2.f32 %v2476_v49  ;;  %v2482_v29 = vmul.f32 -1.442695, %v3807_v45  ;;  %v592_v53 = vmul.f32 %v3772_v19, %v2773_v31 }
  0x86   : > { %v3146_v5 = vpop.eup %3145  ;;  %v1135_v14 = vpack.c.bf16 %v1091_v22, %v1090_v15  ;;  %v1093_v7 = vmul.f32 %v3144_v32, %v3691_v40  ;;  %3165 = vpow2.f32 %v2477_v17  ;;  %v3818_v4 = vadd.f32 %v3766_v52, %v591_v37 }
  0x87   : > { %v3148_v56 = vpop.eup %3147  ;;  %v1094_v12 = vmul.f32 %v3146_v5, %v3698_v60  ;;  %3167 = vpow2.f32 %v2478_v34  ;;  %v3822_v50 = vadd.f32 %v3766_v52, %v592_v53  ;;  %v2776_v49 = vunpack.c.l.bf16 %v2811_v11 }
  0x88   : > { %v3150_v39 = vpop.eup %3149  ;;  %2888 = vmatmul.mubr.msk.bf16.gmra.mrb[4].mxu1 %vm1171_vm0, %v1135_v14  ;;  %v1136_v35 = vpack.c.bf16 %v1093_v7, %v1092_v33  ;;  %v1095_v0 = vmul.f32 %v3148_v56, %v3701_v42  ;;  %3169 = vpow2.f32 %v2479_v13  ;;  %v2483_v40 = vmul.f32 -1.442695, %v3818_v4 }
  0x89   : > { %v3152_v17 = vpop.eup %3151  ;;  %v1096_v41 = vmul.f32 %v3150_v39, %v3712_v6  ;;  %3171 = vpow2.f32 %v2480_v51  ;;  %v2484_v60 = vmul.f32 -1.442695, %v3822_v50  ;;  %v593_v25 = vmul.f32 %v3772_v19, %v2776_v49 }
  0x8a   : > { %v3154_v34 = vpop.eup %3153  ;;  %2891 = vmatprep.mubr.msk.bf16.mxu1 %vm1171_vm0, %v1136_v35  ;;  %v1097_v46 = vmul.f32 %v3152_v17, %v3716_v30  ;;  %3173 = vpow2.f32 %v2481_v23  ;;  %v2777_v42 = vunpack.c.h.bf16 %v2811_v11  ;;  %v1137_v58 = vpack.c.bf16 %v1095_v0, %v1094_v12 }
  0x8b   : > { %v3156_v21 = vpop.eup %3155  ;;  %3175 = vpow2.f32 %v2482_v29  ;;  %v3834_v6 = vadd.f32 %v3766_v52, %v593_v25  ;;  %v2780_v43 = vunpack.c.l.bf16 %v2812_v16  ;;  %v2781_v30 = vunpack.c.h.bf16 %v2812_v16 }
  0x8c   : > { %v3158_v57 = vpop.eup %3157  ;;  %3177 = vpow2.f32 %v2483_v40  ;;  %v1138_v62 = vpack.c.bf16 %v1097_v46, %v1096_v41  ;;  %v1098_v27 = vmul.f32 %v3154_v34, %v3728_v44  ;;  %v594_v13 = vmul.f32 %v3772_v19, %v2777_v42 }
  0x8d   : > { %v3160_v48 = vpop.eup %3159  ;;  %3179 = vpow2.f32 %v2484_v60  ;;  %v2485_v47 = vmul.f32 -1.442695, %v3834_v6  ;;  %v1099_v63 = vmul.f32 %v3156_v21, %v3732_v3  ;;  %v595_v9 = vmul.f32 %v3772_v19, %v2780_v43 }
  0x8e   : > { %v3162_v26 = vpop.eup %3161  ;;  %v1100_v15 = vmul.f32 %v3158_v57, %v3745_v18  ;;  %v1101_v31 = vmul.f32 %v3160_v48, %v3749_v54  ;;  %v596_v23 = vmul.f32 %v3772_v19, %v2781_v30  ;;  %v3847_v11 = vadd.f32 %v3766_v52, %v594_v13 }
  0x8f   : > { %v3164_v10 = vpop.eup %3163  ;;  %v910_v1 = vadd.f32 1.0, %v3162_v26  ;;  %3181 = vpow2.f32 %v2485_v47  ;;  %v1139_v33 = vpack.c.bf16 %v1099_v63, %v1098_v27  ;;  %v3850_v18 = vadd.f32 %v3766_v52, %v595_v9 }
  0x90   : > { %v3166_v28 = vpop.eup %3165  ;;  %2892 = vmatmul.mubr.msk.bf16.gmra.mrb[8].mxu1 %vm1171_vm0, %v1137_v58  ;;  %v911_v51 = vadd.f32 1.0, %v3164_v10  ;;  %v1140_v53 = vpack.c.bf16 %v1101_v31, %v1100_v15  ;;  %v3853_v7 = vadd.f32 %v3766_v52, %v596_v23  ;;  %v2486_v49 = vmul.f32 -1.442695, %v3847_v11 }
  0x91   : > { %v3168_v36 = vpop.eup %3167  ;;  %2895 = vmatprep.mubr.msk.bf16.mxu1 %vm1171_vm0, %v1138_v62  ;;  %3183 = vrcp.f32 %v910_v1  ;;  %v912_v44 = vadd.f32 1.0, %v3166_v28  ;;  %v2487_v35 = vmul.f32 -1.442695, %v3850_v18 }
  0x92   : > { %v3170_v20 = vpop.eup %3169  ;;  %3185 = vrcp.f32 %v911_v51  ;;  %v913_v22 = vadd.f32 1.0, %v3168_v36  ;;  %v2488_v40 = vmul.f32 -1.442695, %v3853_v7 }
  0x93   : > { %v3172_v37 = vpop.eup %3171  ;;  %3187 = vrcp.f32 %v912_v44  ;;  %v914_v3 = vadd.f32 1.0, %v3170_v20 }
  0x94   : > { %v3174_v32 = vpop.eup %3173  ;;  %3189 = vrcp.f32 %v913_v22  ;;  %v915_v29 = vadd.f32 1.0, %v3172_v37 }
  0x95   : > { %v3176_v54 = vpop.eup %3175  ;;  %3191 = vrcp.f32 %v914_v3  ;;  %v916_v5 = vadd.f32 1.0, %v3174_v32 }
  0x96   : > { %v3178_v14 = vpop.eup %3177  ;;  %3193 = vrcp.f32 %v915_v29  ;;  %v917_v19 = vadd.f32 1.0, %v3176_v54 }
  0x97   : > { %v3180_v56 = vpop.eup %3179  ;;  %3195 = vrcp.f32 %v916_v5  ;;  %v918_v12 = vadd.f32 1.0, %v3178_v14 }
  0x98   : > { %2896 = vmatmul.mubr.msk.bf16.gmra.mrb[12].mxu1 %vm1171_vm0, %v1139_v33  ;;  %3197 = vrcp.f32 %v917_v19  ;;  %v919_v39 = vadd.f32 1.0, %v3180_v56 }
  0x99   : > { %2899 = vmatprep.mubr.msk.bf16.mxu1 %vm1171_vm0, %v1140_v53  ;;  %3199 = vrcp.f32 %v918_v12  ;;  %v3182_v0 = vpop.eup %3181 }
  0x9a   : > { %3201 = vrcp.f32 %v919_v39  ;;  %v920_v58 = vadd.f32 1.0, %v3182_v0 }
  0x9b   : > { %v3184_v52 = vpop.eup %3183  ;;  %3203 = vpow2.f32 %v2486_v49 }
  0x9c   : > { %v3186_v17 = vpop.eup %3185  ;;  %v1102_v41 = vmul.f32 %v3184_v52, %v3763_v55  ;;  %3205 = vpow2.f32 %v2487_v35 }
  0x9d   : > { %v3188_v60 = vpop.eup %3187  ;;  %v1103_v16 = vmul.f32 %v3186_v17, %v3769_v2  ;;  %3207 = vpow2.f32 %v2488_v40 }
  0x9e   : > { %v3190_v34 = vpop.eup %3189  ;;  %v1104_v46 = vmul.f32 %v3188_v60, %v3781_v61  ;;  %3209 = vrcp.f32 %v920_v58 }
  0x9f   : > { %v3192_v25 = vpop.eup %3191  ;;  %v1141_v21 = vpack.c.bf16 %v1103_v16, %v1102_v41  ;;  %v1105_v42 = vmul.f32 %v3190_v34, %v3784_v38 }
  0xa0   : > { %v3194_v57 = vpop.eup %3193  ;;  %v1106_v55 = vmul.f32 %v3192_v25, %v3792_v59 }
  0xa1   : > { %v3196_v43 = vpop.eup %3195  ;;  %2900 = vmatmul.mubr.msk.bf16.gmra.mrb[16].mxu1 %vm1171_vm0, %v1141_v21  ;;  %v1142_v48 = vpack.c.bf16 %v1105_v42, %v1104_v46  ;;  %v1107_v62 = vmul.f32 %v3194_v57, %v3796_v8 }
  0xa2   : > { %v3198_v26 = vpop.eup %3197  ;;  %v1108_v2 = vmul.f32 %v3196_v43, %v3803_v24 }
  0xa3   : > { %v3200_v47 = vpop.eup %3199  ;;  %2903 = vmatprep.mubr.msk.bf16.mxu1 %vm1171_vm0, %v1142_v48  ;;  %v1109_v61 = vmul.f32 %v3198_v26, %v3807_v45  ;;  %v1143_v10 = vpack.c.bf16 %v1107_v62, %v1106_v55 }
  0xa4   : > { %v3202_v30 = vpop.eup %3201  ;;  %v1110_v59 = vmul.f32 %v3200_v47, %v3818_v4 }
  0xa5   : > { %v3204_v38 = vpop.eup %3203  ;;  %v1144_v1 = vpack.c.bf16 %v1109_v61, %v1108_v2  ;;  %v1111_v8 = vmul.f32 %v3202_v30, %v3822_v50 }
  0xa6   : > { %v3206_v27 = vpop.eup %3205  ;;  %v921_v13 = vadd.f32 1.0, %v3204_v38 }
  0xa7   : > { %v922_v28 = vadd.f32 1.0, %v3206_v27  ;;  %v3208_v63 = vpop.eup %3207  ;;  %v1145_v45 = vpack.c.bf16 %v1111_v8, %v1110_v59 }
  0xa8   : > { %3211 = vrcp.f32 %v921_v13  ;;  %v923_v24 = vadd.f32 1.0, %v3208_v63  ;;  %v3210_v51 = vpop.eup %3209 }
  0xa9   : > { %2904 = vmatmul.mubr.msk.bf16.gmra.mrb[20].mxu1 %vm1171_vm0, %v1143_v10  ;;  %3213 = vrcp.f32 %v922_v28  ;;  %v1112_v9 = vmul.f32 %v3210_v51, %v3834_v6  ;;  %v3888_v6 = vld [vmem:[%s3885_s11] ss:$0 sm:$0xff] }
  0xaa   : > { %2907 = vmatprep.mubr.msk.bf16.mxu1 %vm1171_vm0, %v1144_v1  ;;  %3215 = vrcp.f32 %v923_v24 }
  0xb1   : > { %2908 = vmatmul.mubr.msk.bf16.gmra.mrb[24].mxu1 %vm1171_vm0, %v1145_v45 }
  0xb2   : > { %v3212_v36 = vpop.eup %3211 }
  0xb3   : > { %v3214_v15 = vpop.eup %3213  ;;  %v1113_v31 = vmul.f32 %v3212_v36, %v3847_v11 }
  0xb4   : > { %v1114_v4 = vmul.f32 %v3214_v15, %v3850_v18  ;;  %v3216_v50 = vpop.eup %3215 }
  0xb5   : > { %v1146_v44 = vpack.c.bf16 %v1113_v31, %v1112_v9  ;;  %v1115_v20 = vmul.f32 %v3216_v50, %v3853_v7 }
  0xb7   : > { %2911 = vmatprep.mubr.msk.bf16.mxu1 %vm1171_vm0, %v1146_v44  ;;  %v1147_v22 = vpack.c.bf16 %v1115_v20, %v1114_v4 }
  0xb9   : > { %2912 = vmatmul.mubr.msk.bf16.gmra.mrb[28].mxu1 %vm1171_vm0, %v1147_v22 }
 0x110   : > { %v2853_v23 = vpop.f32.mrb[0].mxu0 }
 0x111   : > { %v1311_v37 = vadd.f32 %v2853_v23, %v3888_v6  ;;  %v1302_v3 = vpop.f32.mrb[1].mxu0 }
 0x112   : > { %v1303_v11 = vadd.f32 %v3888_v6, %v1302_v3  ;;  %v2854_v32 = vpop.f32.mrb[2].mxu0 }
 0x113   : > { %v2592_v33 = vpack.c.bf16 %v1311_v37, %v1311_v37  ;;  %v1314_v29 = vadd.f32 %v2854_v32, %v3888_v6  ;;  %v1305_v18 = vpop.f32.mrb[3].mxu0  ;;  %v2015_v14 = vmul.f32 %v1311_v37, %v1311_v37  ;;  %v1881_v0 = vsel %vm1171_vm0, %v1311_v37, 0.0 }
 0x114   : > { %v2590_v54 = vpack.c.bf16 %v1303_v11, %v1303_v11  ;;  %v2013_v53 = vmul.f32 %v1303_v11, %v1303_v11  ;;  %v1306_v5 = vadd.f32 %v3888_v6, %v1305_v18  ;;  %v1878_v7 = vsel %vm1171_vm0, %v1303_v11, 0.0 }
 0x115   : > { %1816 = vst.msk [vmem:[%s3896_s14 + $0x8] sm:$0xf] %vm1813_vm1, %v2592_v33  ;;  %v2593_v19 = vpack.c.bf16 %v1314_v29, %v1314_v29  ;;  %v2016_v39 = vmul.f32 %v1314_v29, %v1314_v29  ;;  %v2080_v46 = vsel %vm1171_vm0, %v2015_v14, 0.0  ;;  %v1883_v42 = vsel %vm1171_vm0, %v1314_v29, 0.0 }
 0x116   : > { %1814 = vst.msk [vmem:[%s3896_s14] sm:$0xf] %vm1813_vm1, %v2590_v54  ;;  %v2591_v56 = vpack.c.bf16 %v1306_v5, %v1306_v5  ;;  %v1879_v12 = vsel %vm1171_vm0, %v1306_v5, 0.0  ;;  %v2014_v49 = vmul.f32 %v1306_v5, %v1306_v5  ;;  %v2077_v40 = vsel %vm1171_vm0, %v2013_v53, 0.0 }
 0x117   : > { %1817 = vst.msk [vmem:[%s3896_s14 + $0xc] sm:$0xf] %vm1813_vm1, %v2593_v19  ;;  %v1880_v35 = vadd.f32 %v1879_v12, %v1878_v7  ;;  %v2082_v57 = vsel %vm1171_vm0, %v2016_v39, 0.0 }
 0x118   : > { %1815 = vst.msk [vmem:[%s3896_s14 + $0x4] sm:$0xf] %vm1813_vm1, %v2591_v56  ;;  %v2078_v52 = vsel %vm1171_vm0, %v2014_v49, 0.0  ;;  %v2857_v17 = vpop.f32.mrb[4].mxu0 }
 0x119   : > { %v1882_v41 = vadd.f32 %v1881_v0, %v1880_v35  ;;  %v2079_v60 = vadd.f32 %v2078_v52, %v2077_v40  ;;  %v1327_v16 = vadd.f32 %v2857_v17, %v3888_v6  ;;  %v1318_v34 = vpop.f32.mrb[5].mxu0 }
 0x11a   : > { %v1319_v25 = vadd.f32 %v3888_v6, %v1318_v34  ;;  %v2858_v21 = vpop.f32.mrb[6].mxu0 }
 0x11b   : > { %v2081_v58 = vadd.f32 %v2080_v46, %v2079_v60  ;;  %v2596_v43 = vpack.c.bf16 %v1327_v16, %v1327_v16  ;;  %v1321_v48 = vpop.f32.mrb[7].mxu0  ;;  %v1884_v62 = vadd.f32 %v1883_v42, %v1882_v41  ;;  %v1330_v61 = vadd.f32 %v2858_v21, %v3888_v6 }
 0x11c   : > { %v2594_v55 = vpack.c.bf16 %v1319_v25, %v1319_v25  ;;  %v1885_v26 = vsel %vm1171_vm0, %v1319_v25, 0.0  ;;  %v2017_v2 = vmul.f32 %v1319_v25, %v1319_v25  ;;  %v1322_v30 = vadd.f32 %v3888_v6, %v1321_v48 }
 0x11d   : > { %1820 = vst.msk [vmem:[%s3896_s14 + $0x18] sm:$0xf] %vm1813_vm1, %v2596_v43  ;;  %v2083_v47 = vadd.f32 %v2082_v57, %v2081_v58  ;;  %v1886_v38 = vadd.f32 %v1885_v26, %v1884_v62  ;;  %v2019_v27 = vmul.f32 %v1327_v16, %v1327_v16  ;;  %v2597_v13 = vpack.c.bf16 %v1330_v61, %v1330_v61 }
 0x11e   : > { %1818 = vst.msk [vmem:[%s3896_s14 + $0x10] sm:$0xf] %vm1813_vm1, %v2594_v55  ;;  %v2084_v10 = vsel %vm1171_vm0, %v2017_v2, 0.0  ;;  %v2595_v28 = vpack.c.bf16 %v1322_v30, %v1322_v30  ;;  %v1887_v63 = vsel %vm1171_vm0, %v1322_v30, 0.0  ;;  %v2018_v59 = vmul.f32 %v1322_v30, %v1322_v30 }
 0x11f   : > { %v2085_v1 = vadd.f32 %v2084_v10, %v2083_v47  ;;  %1821 = vst.msk [vmem:[%s3896_s14 + $0x1c] sm:$0xf] %vm1813_vm1, %v2597_v13  ;;  %v1888_v24 = vadd.f32 %v1887_v63, %v1886_v38  ;;  %v1889_v9 = vsel %vm1171_vm0, %v1327_v16, 0.0  ;;  %v2020_v36 = vmul.f32 %v1330_v61, %v1330_v61 }
 0x120   : > { %v2861_v8 = vpop.f32.mrb[8].mxu0  ;;  %1819 = vst.msk [vmem:[%s3896_s14 + $0x14] sm:$0xf] %vm1813_vm1, %v2595_v28  ;;  %v2086_v15 = vsel %vm1171_vm0, %v2018_v59, 0.0  ;;  %v2088_v50 = vsel %vm1171_vm0, %v2019_v27, 0.0  ;;  %v1891_v37 = vsel %vm1171_vm0, %v1330_v61, 0.0 }
 0x121   : > { %v1343_v45 = vadd.f32 %v2861_v8, %v3888_v6  ;;  %v1334_v51 = vpop.f32.mrb[9].mxu0  ;;  %v1890_v44 = vadd.f32 %v1889_v9, %v1888_v24  ;;  %v2087_v20 = vadd.f32 %v2086_v15, %v2085_v1  ;;  %v2090_v53 = vsel %vm1171_vm0, %v2020_v36, 0.0 }
 0x122   : > { %v1335_v31 = vadd.f32 %v3888_v6, %v1334_v51  ;;  %v2862_v4 = vpop.f32.mrb[10].mxu0 }
 0x123   : > { %v2600_v22 = vpack.c.bf16 %v1343_v45, %v1343_v45  ;;  %v1337_v23 = vpop.f32.mrb[11].mxu0  ;;  %v2089_v33 = vadd.f32 %v2088_v50, %v2087_v20  ;;  %v1892_v29 = vadd.f32 %v1891_v37, %v1890_v44  ;;  %v1346_v18 = vadd.f32 %v2862_v4, %v3888_v6 }
 0x124   : > { %v2598_v3 = vpack.c.bf16 %v1335_v31, %v1335_v31  ;;  %v1893_v11 = vsel %vm1171_vm0, %v1335_v31, 0.0  ;;  %v2021_v32 = vmul.f32 %v1335_v31, %v1335_v31  ;;  %v1338_v54 = vadd.f32 %v3888_v6, %v1337_v23 }
 0x125   : > { %1824 = vst.msk [vmem:[%s3896_s14 + $0x28] sm:$0xf] %vm1813_vm1, %v2600_v22  ;;  %v1894_v14 = vadd.f32 %v1893_v11, %v1892_v29  ;;  %v2091_v19 = vadd.f32 %v2090_v53, %v2089_v33  ;;  %v2601_v7 = vpack.c.bf16 %v1346_v18, %v1346_v18  ;;  %v2023_v56 = vmul.f32 %v1343_v45, %v1343_v45 }
 0x126   : > { %1822 = vst.msk [vmem:[%s3896_s14 + $0x20] sm:$0xf] %vm1813_vm1, %v2598_v3  ;;  %v2092_v5 = vsel %vm1171_vm0, %v2021_v32, 0.0  ;;  %v2599_v12 = vpack.c.bf16 %v1338_v54, %v1338_v54  ;;  %v1895_v49 = vsel %vm1171_vm0, %v1338_v54, 0.0  ;;  %v2022_v39 = vmul.f32 %v1338_v54, %v1338_v54 }
 0x127   : > { %v2093_v35 = vadd.f32 %v2092_v5, %v2091_v19  ;;  %1825 = vst.msk [vmem:[%s3896_s14 + $0x2c] sm:$0xf] %vm1813_vm1, %v2601_v7  ;;  %v1896_v0 = vadd.f32 %v1895_v49, %v1894_v14  ;;  %v1897_v52 = vsel %vm1171_vm0, %v1343_v45, 0.0  ;;  %v2024_v17 = vmul.f32 %v1346_v18, %v1346_v18 }
 0x128   : > { %1823 = vst.msk [vmem:[%s3896_s14 + $0x24] sm:$0xf] %vm1813_vm1, %v2599_v12  ;;  %v2094_v41 = vsel %vm1171_vm0, %v2022_v39, 0.0  ;;  %v2096_v42 = vsel %vm1171_vm0, %v2023_v56, 0.0  ;;  %v1899_v57 = vsel %vm1171_vm0, %v1346_v18, 0.0 }
 0x129   : > { %v2865_v40 = vpop.f32.mrb[12].mxu0  ;;  %v1898_v34 = vadd.f32 %v1897_v52, %v1896_v0  ;;  %v2095_v46 = vadd.f32 %v2094_v41, %v2093_v35  ;;  %v2098_v47 = vsel %vm1171_vm0, %v2024_v17, 0.0 }
 0x12a   : > { %v1359_v60 = vadd.f32 %v2865_v40, %v3888_v6  ;;  %v1350_v16 = vpop.f32.mrb[13].mxu0 }
 0x12b   : > { %v1351_v25 = vadd.f32 %v3888_v6, %v1350_v16  ;;  %v2866_v21 = vpop.f32.mrb[14].mxu0  ;;  %v2097_v55 = vadd.f32 %v2096_v42, %v2095_v46  ;;  %v1900_v26 = vadd.f32 %v1899_v57, %v1898_v34 }
 0x12c   : > { %v2604_v58 = vpack.c.bf16 %v1359_v60, %v1359_v60  ;;  %v1362_v43 = vadd.f32 %v2866_v21, %v3888_v6  ;;  %v1353_v48 = vpop.f32.mrb[15].mxu0  ;;  %v2027_v38 = vmul.f32 %v1359_v60, %v1359_v60  ;;  %v1905_v36 = vsel %vm1171_vm0, %v1359_v60, 0.0 }
 0x12d   : > { %v2602_v62 = vpack.c.bf16 %v1351_v25, %v1351_v25  ;;  %v1901_v2 = vsel %vm1171_vm0, %v1351_v25, 0.0  ;;  %v2025_v61 = vmul.f32 %v1351_v25, %v1351_v25  ;;  %v2099_v27 = vadd.f32 %v2098_v47, %v2097_v55 }
 0x12e   : > { %1828 = vst.msk [vmem:[%s3896_s14 + $0x38] sm:$0xf] %vm1813_vm1, %v2604_v58  ;;  %v2605_v30 = vpack.c.bf16 %v1362_v43, %v1362_v43  ;;  %v1902_v10 = vadd.f32 %v1901_v2, %v1900_v26  ;;  %v1354_v1 = vadd.f32 %v3888_v6, %v1353_v48  ;;  %v2104_v15 = vsel %vm1171_vm0, %v2027_v38, 0.0 }
 0x12f   : > { %1826 = vst.msk [vmem:[%s3896_s14 + $0x30] sm:$0xf] %vm1813_vm1, %v2602_v62  ;;  %v2100_v13 = vsel %vm1171_vm0, %v2025_v61, 0.0  ;;  %v2028_v50 = vmul.f32 %v1362_v43, %v1362_v43  ;;  %v1907_v37 = vsel %vm1171_vm0, %v1362_v43, 0.0 }
 0x130   : > { %1829 = vst.msk [vmem:[%s3896_s14 + $0x3c] sm:$0xf] %vm1813_vm1, %v2605_v30  ;;  %v2101_v28 = vadd.f32 %v2100_v13, %v2099_v27  ;;  %v2603_v63 = vpack.c.bf16 %v1354_v1, %v1354_v1  ;;  %v1903_v59 = vsel %vm1171_vm0, %v1354_v1, 0.0  ;;  %v2026_v45 = vmul.f32 %v1354_v1, %v1354_v1 }
 0x131   : > { %v2869_v8 = vpop.f32.mrb[16].mxu0  ;;  %v1904_v24 = vadd.f32 %v1903_v59, %v1902_v10  ;;  %v2106_v14 = vsel %vm1171_vm0, %v2028_v50, 0.0 }
 0x132   : > { %v1375_v51 = vadd.f32 %v2869_v8, %v3888_v6  ;;  %v1366_v9 = vpop.f32.mrb[17].mxu0  ;;  %1827 = vst.msk [vmem:[%s3896_s14 + $0x34] sm:$0xf] %vm1813_vm1, %v2603_v63  ;;  %v2102_v20 = vsel %vm1171_vm0, %v2026_v45, 0.0 }
 0x133   : > { %v1367_v31 = vadd.f32 %v3888_v6, %v1366_v9  ;;  %v2870_v4 = vpop.f32.mrb[18].mxu0  ;;  %v1906_v44 = vadd.f32 %v1905_v36, %v1904_v24  ;;  %v2103_v3 = vadd.f32 %v2102_v20, %v2101_v28 }
 0x134   : > { %v2608_v22 = vpack.c.bf16 %v1375_v51, %v1375_v51  ;;  %v1369_v23 = vpop.f32.mrb[19].mxu0  ;;  %v1378_v18 = vadd.f32 %v2870_v4, %v3888_v6  ;;  %v2031_v5 = vmul.f32 %v1375_v51, %v1375_v51  ;;  %v1913_v41 = vsel %vm1171_vm0, %v1375_v51, 0.0 }
 0x135   : > { %v2606_v11 = vpack.c.bf16 %v1367_v31, %v1367_v31  ;;  %v1909_v32 = vsel %vm1171_vm0, %v1367_v31, 0.0  ;;  %v1908_v33 = vadd.f32 %v1907_v37, %v1906_v44  ;;  %v2029_v29 = vmul.f32 %v1367_v31, %v1367_v31 }
 0x136   : > { %1832 = vst.msk [vmem:[%s3896_s14 + $0x48] sm:$0xf] %vm1813_vm1, %v2608_v22  ;;  %v1370_v54 = vadd.f32 %v3888_v6, %v1369_v23  ;;  %v2105_v53 = vadd.f32 %v2104_v15, %v2103_v3  ;;  %v2609_v56 = vpack.c.bf16 %v1378_v18, %v1378_v18  ;;  %v2112_v60 = vsel %vm1171_vm0, %v2031_v5, 0.0 }
 0x137   : > { %1830 = vst.msk [vmem:[%s3896_s14 + $0x40] sm:$0xf] %vm1813_vm1, %v2606_v11  ;;  %v1910_v19 = vadd.f32 %v1909_v32, %v1908_v33  ;;  %v2108_v7 = vsel %vm1171_vm0, %v2029_v29, 0.0  ;;  %v2032_v25 = vmul.f32 %v1378_v18, %v1378_v18  ;;  %v1915_v43 = vsel %vm1171_vm0, %v1378_v18, 0.0 }
 0x138   : > { %v2107_v12 = vadd.f32 %v2106_v14, %v2105_v53  ;;  %v2607_v49 = vpack.c.bf16 %v1370_v54, %v1370_v54  ;;  %v1911_v39 = vsel %vm1171_vm0, %v1370_v54, 0.0  ;;  %1833 = vst.msk [vmem:[%s3896_s14 + $0x4c] sm:$0xf] %vm1813_vm1, %v2609_v56  ;;  %v2030_v40 = vmul.f32 %v1370_v54, %v1370_v54 }
 0x139   : > { %v2873_v35 = vpop.f32.mrb[20].mxu0  ;;  %v1912_v0 = vadd.f32 %v1911_v39, %v1910_v19  ;;  %v2114_v38 = vsel %vm1171_vm0, %v2032_v25, 0.0 }
 0x13a   : > { %v1391_v52 = vadd.f32 %v2873_v35, %v3888_v6  ;;  %v1382_v17 = vpop.f32.mrb[21].mxu0  ;;  %v2109_v16 = vadd.f32 %v2108_v7, %v2107_v12  ;;  %1831 = vst.msk [vmem:[%s3896_s14 + $0x44] sm:$0xf] %vm1813_vm1, %v2607_v49  ;;  %v2110_v42 = vsel %vm1171_vm0, %v2030_v40, 0.0 }
 0x13b   : > { %v1383_v34 = vadd.f32 %v3888_v6, %v1382_v17  ;;  %v2874_v46 = vpop.f32.mrb[22].mxu0  ;;  %v1914_v21 = vadd.f32 %v1913_v41, %v1912_v0 }
 0x13c   : > { %v2612_v57 = vpack.c.bf16 %v1391_v52, %v1391_v52  ;;  %v1385_v58 = vpop.f32.mrb[23].mxu0  ;;  %v2111_v48 = vadd.f32 %v2110_v42, %v2109_v16  ;;  %v1394_v47 = vadd.f32 %v2874_v46, %v3888_v6  ;;  %v2035_v13 = vmul.f32 %v1391_v52, %v1391_v52 }
 0x13d   : > { %v2610_v55 = vpack.c.bf16 %v1383_v34, %v1383_v34  ;;  %v1917_v62 = vsel %vm1171_vm0, %v1383_v34, 0.0  ;;  %v1916_v26 = vadd.f32 %v1915_v43, %v1914_v21  ;;  %v2033_v2 = vmul.f32 %v1383_v34, %v1383_v34 }
 0x13e   : > { %1836 = vst.msk [vmem:[%s3896_s14 + $0x58] sm:$0xf] %vm1813_vm1, %v2612_v57  ;;  %v1386_v61 = vadd.f32 %v3888_v6, %v1385_v58  ;;  %v2113_v30 = vadd.f32 %v2112_v60, %v2111_v48  ;;  %v2613_v1 = vpack.c.bf16 %v1394_v47, %v1394_v47  ;;  %v1921_v51 = vsel %vm1171_vm0, %v1391_v52, 0.0 }
 0x13f   : > { %1834 = vst.msk [vmem:[%s3896_s14 + $0x50] sm:$0xf] %vm1813_vm1, %v2610_v55  ;;  %v1918_v10 = vadd.f32 %v1917_v62, %v1916_v26  ;;  %v2116_v27 = vsel %vm1171_vm0, %v2033_v2, 0.0  ;;  %v2036_v31 = vmul.f32 %v1394_v47, %v1394_v47  ;;  %v2120_v22 = vsel %vm1171_vm0, %v2035_v13, 0.0 }
 0x140   : > { %v2115_v28 = vadd.f32 %v2114_v38, %v2113_v30  ;;  %v2611_v63 = vpack.c.bf16 %v1386_v61, %v1386_v61  ;;  %v1919_v59 = vsel %vm1171_vm0, %v1386_v61, 0.0  ;;  %1837 = vst.msk [vmem:[%s3896_s14 + $0x5c] sm:$0xf] %vm1813_vm1, %v2613_v1  ;;  %v2034_v24 = vmul.f32 %v1386_v61, %v1386_v61 }
 0x141   : > { %v1920_v8 = vadd.f32 %v1919_v59, %v1918_v10  ;;  %v1923_v23 = vsel %vm1171_vm0, %v1394_v47, 0.0  ;;  %v2122_v19 = vsel %vm1171_vm0, %v2036_v31, 0.0 }
 0x142   : > { %v2877_v45 = vpop.f32.mrb[24].mxu0  ;;  %v2117_v9 = vadd.f32 %v2116_v27, %v2115_v28  ;;  %1835 = vst.msk [vmem:[%s3896_s14 + $0x54] sm:$0xf] %vm1813_vm1, %v2611_v63  ;;  %v2118_v50 = vsel %vm1171_vm0, %v2034_v24, 0.0 }
 0x143   : > { %v1407_v36 = vadd.f32 %v2877_v45, %v3888_v6  ;;  %v1398_v15 = vpop.f32.mrb[25].mxu0  ;;  %v1922_v4 = vadd.f32 %v1921_v51, %v1920_v8 }
 0x144   : > { %v1399_v44 = vadd.f32 %v3888_v6, %v1398_v15  ;;  %v2878_v20 = vpop.f32.mrb[26].mxu0  ;;  %v2119_v37 = vadd.f32 %v2118_v50, %v2117_v9 }
 0x145   : > { %v2616_v3 = vpack.c.bf16 %v1407_v36, %v1407_v36  ;;  %v1401_v11 = vpop.f32.mrb[27].mxu0  ;;  %v1924_v33 = vadd.f32 %v1923_v23, %v1922_v4  ;;  %v2039_v53 = vmul.f32 %v1407_v36, %v1407_v36  ;;  %v1410_v5 = vadd.f32 %v2878_v20, %v3888_v6 }
 0x146   : > { %v2614_v32 = vpack.c.bf16 %v1399_v44, %v1399_v44  ;;  %v1925_v29 = vsel %vm1171_vm0, %v1399_v44, 0.0  ;;  %v2037_v18 = vmul.f32 %v1399_v44, %v1399_v44  ;;  %v2121_v54 = vadd.f32 %v2120_v22, %v2119_v37 }
 0x147   : > { %1840 = vst.msk [vmem:[%s3896_s14 + $0x68] sm:$0xf] %vm1813_vm1, %v2616_v3  ;;  %v1402_v14 = vadd.f32 %v3888_v6, %v1401_v11  ;;  %v1926_v7 = vadd.f32 %v1925_v29, %v1924_v33  ;;  %v2617_v49 = vpack.c.bf16 %v1410_v5, %v1410_v5  ;;  %v1929_v39 = vsel %vm1171_vm0, %v1407_v36, 0.0 }
 0x148   : > { %1838 = vst.msk [vmem:[%s3896_s14 + $0x60] sm:$0xf] %vm1813_vm1, %v2614_v32  ;;  %v2124_v56 = vsel %vm1171_vm0, %v2037_v18, 0.0  ;;  %v2123_v12 = vadd.f32 %v2122_v19, %v2121_v54  ;;  %v2128_v41 = vsel %vm1171_vm0, %v2039_v53, 0.0  ;;  %v2040_v21 = vmul.f32 %v1410_v5, %v1410_v5 }
 0x149   : > { %v2615_v35 = vpack.c.bf16 %v1402_v14, %v1402_v14  ;;  %v1927_v0 = vsel %vm1171_vm0, %v1402_v14, 0.0  ;;  %v2038_v40 = vmul.f32 %v1402_v14, %v1402_v14  ;;  %1841 = vst.msk [vmem:[%s3896_s14 + $0x6c] sm:$0xf] %vm1813_vm1, %v2617_v49  ;;  %v1931_v55 = vsel %vm1171_vm0, %v1410_v5, 0.0 }
 0x14a   : > { %v2881_v52 = vpop.f32.mrb[28].mxu0  ;;  %v2885_v17 = vpop.f32.mrb[0].mxu1  ;;  %v2125_v60 = vadd.f32 %v2124_v56, %v2123_v12  ;;  %v1928_v16 = vadd.f32 %v1927_v0, %v1926_v7  ;;  %v2130_v59 = vsel %vm1171_vm0, %v2040_v21, 0.0 }
 0x14b   : > { %v1423_v34 = vadd.f32 %v2881_v52, %v3888_v6  ;;  %v1414_v46 = vpop.f32.mrb[29].mxu0  ;;  %v1430_v25 = vpop.f32.mrb[1].mxu1  ;;  %1839 = vst.msk [vmem:[%s3896_s14 + $0x64] sm:$0xf] %vm1813_vm1, %v2615_v35  ;;  %v2126_v42 = vsel %vm1171_vm0, %v2038_v40, 0.0  ;;  %v1439_v43 = vadd.f32 %v2885_v17, %v3888_v6 }
 0x14c   : > { %v1415_v57 = vadd.f32 %v3888_v6, %v1414_v46  ;;  %v2882_v58 = vpop.f32.mrb[30].mxu0  ;;  %v2886_v48 = vpop.f32.mrb[2].mxu1  ;;  %v1930_v62 = vadd.f32 %v1929_v39, %v1928_v16  ;;  %v2127_v26 = vadd.f32 %v2126_v42, %v2125_v60  ;;  %v1431_v27 = vadd.f32 %v3888_v6, %v1430_v25 }
 0x14d   : > { %v2620_v2 = vpack.c.bf16 %v1423_v34, %v1423_v34  ;;  %v1417_v47 = vpop.f32.mrb[31].mxu0  ;;  %v1433_v61 = vpop.f32.mrb[3].mxu1  ;;  %v1426_v28 = vadd.f32 %v2882_v58, %v3888_v6  ;;  %v2624_v24 = vpack.c.bf16 %v1439_v43, %v1439_v43  ;;  %v2043_v36 = vmul.f32 %v1423_v34, %v1423_v34 }
 0x14e   : > { %v2618_v30 = vpack.c.bf16 %v1415_v57, %v1415_v57  ;;  %v1933_v38 = vsel %vm1171_vm0, %v1415_v57, 0.0  ;;  %v2041_v10 = vmul.f32 %v1415_v57, %v1415_v57  ;;  %v2129_v1 = vadd.f32 %v2128_v41, %v2127_v26 }
 0x14f   : > { %1844 = vst.msk [vmem:[%s3896_s14 + $0x78] sm:$0xf] %vm1813_vm1, %v2620_v2  ;;  %v1932_v13 = vadd.f32 %v1931_v55, %v1930_v62  ;;  %v1418_v63 = vadd.f32 %v3888_v6, %v1417_v47  ;;  %v2621_v9 = vpack.c.bf16 %v1426_v28, %v1426_v28  ;;  %1848 = vst.msk [vmem:[%s3896_s14 + $0x88] sm:$0xf] %vm1813_vm1, %v2624_v24  ;;  %v1937_v22 = vsel %vm1171_vm0, %v1423_v34, 0.0 }
 0x150   : > { %1842 = vst.msk [vmem:[%s3896_s14 + $0x70] sm:$0xf] %vm1813_vm1, %v2618_v30  ;;  %v2132_v8 = vsel %vm1171_vm0, %v2041_v10, 0.0  ;;  %v2131_v51 = vadd.f32 %v2130_v59, %v2129_v1  ;;  %v2622_v20 = vpack.c.bf16 %v1431_v27, %v1431_v27  ;;  %v2044_v23 = vmul.f32 %v1426_v28, %v1426_v28 }
 0x151   : > { %v1934_v45 = vadd.f32 %v1933_v38, %v1932_v13  ;;  %v2619_v15 = vpack.c.bf16 %v1418_v63, %v1418_v63  ;;  %v1935_v31 = vsel %vm1171_vm0, %v1418_v63, 0.0  ;;  %v2042_v4 = vmul.f32 %v1418_v63, %v1418_v63  ;;  %1845 = vst.msk [vmem:[%s3896_s14 + $0x7c] sm:$0xf] %vm1813_vm1, %v2621_v9 }
 0x152   : > { %v2133_v50 = vadd.f32 %v2132_v8, %v2131_v51  ;;  %v2045_v3 = vmul.f32 %v1431_v27, %v1431_v27  ;;  %1846 = vst.msk [vmem:[%s3896_s14 + $0x80] sm:$0xf] %vm1813_vm1, %v2622_v20  ;;  %v1442_v33 = vadd.f32 %v2886_v48, %v3888_v6  ;;  %v2136_v29 = vsel %vm1171_vm0, %v2043_v36, 0.0 }
 0x153   : > { %v1936_v44 = vadd.f32 %v1935_v31, %v1934_v45  ;;  %1843 = vst.msk [vmem:[%s3896_s14 + $0x74] sm:$0xf] %vm1813_vm1, %v2619_v15  ;;  %v2134_v37 = vsel %vm1171_vm0, %v2042_v4, 0.0  ;;  %v1939_v18 = vsel %vm1171_vm0, %v1426_v28, 0.0  ;;  %v1941_v54 = vsel %vm1171_vm0, %v1431_v27, 0.0 }
 0x154   : > { %v2135_v32 = vadd.f32 %v2134_v37, %v2133_v50  ;;  %v1434_v53 = vadd.f32 %v3888_v6, %v1433_v61  ;;  %v2625_v19 = vpack.c.bf16 %v1442_v33, %v1442_v33  ;;  %v2138_v7 = vsel %vm1171_vm0, %v2044_v23, 0.0 }
 0x155   : > { %v1938_v11 = vadd.f32 %v1937_v22, %v1936_v44  ;;  %v2140_v56 = vsel %vm1171_vm0, %v2045_v3, 0.0  ;;  %v2047_v0 = vmul.f32 %v1439_v43, %v1439_v43  ;;  %v1945_v60 = vsel %vm1171_vm0, %v1439_v43, 0.0 }
 0x156   : > { %v2137_v5 = vadd.f32 %v2136_v29, %v2135_v32  ;;  %v2623_v12 = vpack.c.bf16 %v1434_v53, %v1434_v53  ;;  %v2046_v49 = vmul.f32 %v1434_v53, %v1434_v53  ;;  %1849 = vst.msk [vmem:[%s3896_s14 + $0x8c] sm:$0xf] %vm1813_vm1, %v2625_v19  ;;  %v1943_v40 = vsel %vm1171_vm0, %v1434_v53, 0.0 }
 0x157   : > { %v1940_v14 = vadd.f32 %v1939_v18, %v1938_v11  ;;  %v2048_v16 = vmul.f32 %v1442_v33, %v1442_v33  ;;  %v2144_v48 = vsel %vm1171_vm0, %v2047_v0, 0.0  ;;  %v1947_v55 = vsel %vm1171_vm0, %v1442_v33, 0.0 }
 0x158   : > { %v2139_v35 = vadd.f32 %v2138_v7, %v2137_v5  ;;  %1847 = vst.msk [vmem:[%s3896_s14 + $0x84] sm:$0xf] %vm1813_vm1, %v2623_v12  ;;  %v2142_v34 = vsel %vm1171_vm0, %v2046_v49, 0.0 }
 0x159   : > { %v1942_v39 = vadd.f32 %v1941_v54, %v1940_v14  ;;  %v2146_v38 = vsel %vm1171_vm0, %v2048_v16, 0.0 }
 0x15a   : > { %v2141_v52 = vadd.f32 %v2140_v56, %v2139_v35 }
 0x15b   : > { %v1944_v17 = vadd.f32 %v1943_v40, %v1942_v39  ;;  %v2889_v41 = vpop.f32.mrb[4].mxu1 }
 0x15c   : > { %v1455_v46 = vadd.f32 %v2889_v41, %v3888_v6  ;;  %v1446_v25 = vpop.f32.mrb[5].mxu1  ;;  %v2143_v42 = vadd.f32 %v2142_v34, %v2141_v52 }
 0x15d   : > { %v1946_v21 = vadd.f32 %v1945_v60, %v1944_v17  ;;  %v1447_v57 = vadd.f32 %v3888_v6, %v1446_v25  ;;  %v2890_v58 = vpop.f32.mrb[6].mxu1 }
 0x15e   : > { %v2628_v62 = vpack.c.bf16 %v1455_v46, %v1455_v46  ;;  %v1458_v43 = vadd.f32 %v2890_v58, %v3888_v6  ;;  %v1449_v26 = vpop.f32.mrb[7].mxu1  ;;  %v2145_v2 = vadd.f32 %v2144_v48, %v2143_v42  ;;  %v2051_v1 = vmul.f32 %v1455_v46, %v1455_v46 }
 0x15f   : > { %v2626_v47 = vpack.c.bf16 %v1447_v57, %v1447_v57  ;;  %v1948_v61 = vadd.f32 %v1947_v55, %v1946_v21  ;;  %v1949_v30 = vsel %vm1171_vm0, %v1447_v57, 0.0  ;;  %v2049_v10 = vmul.f32 %v1447_v57, %v1447_v57 }
 0x160   : > { %1852 = vst.msk [vmem:[%s3896_s14 + $0x98] sm:$0xf] %vm1813_vm1, %v2628_v62  ;;  %v2629_v27 = vpack.c.bf16 %v1458_v43, %v1458_v43  ;;  %v2147_v28 = vadd.f32 %v2146_v38, %v2145_v2  ;;  %v1450_v63 = vadd.f32 %v3888_v6, %v1449_v26  ;;  %v1953_v4 = vsel %vm1171_vm0, %v1455_v46, 0.0 }
 0x161   : > { %1850 = vst.msk [vmem:[%s3896_s14 + $0x90] sm:$0xf] %vm1813_vm1, %v2626_v47  ;;  %v1950_v13 = vadd.f32 %v1949_v30, %v1948_v61  ;;  %v2148_v59 = vsel %vm1171_vm0, %v2049_v10, 0.0  ;;  %v2152_v50 = vsel %vm1171_vm0, %v2051_v1, 0.0  ;;  %v2052_v22 = vmul.f32 %v1458_v43, %v1458_v43 }
 0x162   : > { %1853 = vst.msk [vmem:[%s3896_s14 + $0x9c] sm:$0xf] %vm1813_vm1, %v2629_v27  ;;  %v2149_v8 = vadd.f32 %v2148_v59, %v2147_v28  ;;  %v2627_v24 = vpack.c.bf16 %v1450_v63, %v1450_v63  ;;  %v1951_v45 = vsel %vm1171_vm0, %v1450_v63, 0.0  ;;  %v2050_v36 = vmul.f32 %v1450_v63, %v1450_v63 }
 0x163   : > { %v2893_v51 = vpop.f32.mrb[8].mxu1  ;;  %v1952_v9 = vadd.f32 %v1951_v45, %v1950_v13  ;;  %v1955_v32 = vsel %vm1171_vm0, %v1458_v43, 0.0  ;;  %v2154_v56 = vsel %vm1171_vm0, %v2052_v22, 0.0 }
 0x164   : > { %v1471_v15 = vadd.f32 %v2893_v51, %v3888_v6  ;;  %v1462_v31 = vpop.f32.mrb[9].mxu1  ;;  %1851 = vst.msk [vmem:[%s3896_s14 + $0x94] sm:$0xf] %vm1813_vm1, %v2627_v24  ;;  %v2150_v37 = vsel %vm1171_vm0, %v2050_v36, 0.0 }
 0x165   : > { %v1463_v44 = vadd.f32 %v3888_v6, %v1462_v31  ;;  %v2894_v20 = vpop.f32.mrb[10].mxu1  ;;  %v1954_v23 = vadd.f32 %v1953_v4, %v1952_v9  ;;  %v2151_v33 = vadd.f32 %v2150_v37, %v2149_v8 }
 0x166   : > { %v2632_v3 = vpack.c.bf16 %v1471_v15, %v1471_v15  ;;  %v1465_v11 = vpop.f32.mrb[11].mxu1  ;;  %v1474_v5 = vadd.f32 %v2894_v20, %v3888_v6  ;;  %v2055_v7 = vmul.f32 %v1471_v15, %v1471_v15  ;;  %v1961_v34 = vsel %vm1171_vm0, %v1471_v15, 0.0 }
 0x167   : > { %v2630_v29 = vpack.c.bf16 %v1463_v44, %v1463_v44  ;;  %v1957_v18 = vsel %vm1171_vm0, %v1463_v44, 0.0  ;;  %v1956_v54 = vadd.f32 %v1955_v32, %v1954_v23  ;;  %v2053_v53 = vmul.f32 %v1463_v44, %v1463_v44 }
 0x168   : > { %1856 = vst.msk [vmem:[%s3896_s14 + $0xa8] sm:$0xf] %vm1813_vm1, %v2632_v3  ;;  %v1466_v14 = vadd.f32 %v3888_v6, %v1465_v11  ;;  %v2153_v19 = vadd.f32 %v2152_v50, %v2151_v33  ;;  %v2633_v39 = vpack.c.bf16 %v1474_v5, %v1474_v5  ;;  %v2160_v46 = vsel %vm1171_vm0, %v2055_v7, 0.0 }
 0x169   : > { %1854 = vst.msk [vmem:[%s3896_s14 + $0xa0] sm:$0xf] %vm1813_vm1, %v2630_v29  ;;  %v1958_v12 = vadd.f32 %v1957_v18, %v1956_v54  ;;  %v2156_v49 = vsel %vm1171_vm0, %v2053_v53, 0.0  ;;  %v2056_v57 = vmul.f32 %v1474_v5, %v1474_v5  ;;  %v1963_v43 = vsel %vm1171_vm0, %v1474_v5, 0.0 }
 0x16a   : > { %v2155_v35 = vadd.f32 %v2154_v56, %v2153_v19  ;;  %v2631_v0 = vpack.c.bf16 %v1466_v14, %v1466_v14  ;;  %v1959_v40 = vsel %vm1171_vm0, %v1466_v14, 0.0  ;;  %1857 = vst.msk [vmem:[%s3896_s14 + $0xac] sm:$0xf] %vm1813_vm1, %v2633_v39  ;;  %v2054_v41 = vmul.f32 %v1466_v14, %v1466_v14 }
 0x16b   : > { %v2897_v52 = vpop.f32.mrb[12].mxu1  ;;  %v1960_v17 = vadd.f32 %v1959_v40, %v1958_v12  ;;  %v2162_v1 = vsel %vm1171_vm0, %v2056_v57, 0.0 }
 0x16c   : > { %v1487_v60 = vadd.f32 %v2897_v52, %v3888_v6  ;;  %v1478_v16 = vpop.f32.mrb[13].mxu1  ;;  %v2157_v25 = vadd.f32 %v2156_v49, %v2155_v35  ;;  %1855 = vst.msk [vmem:[%s3896_s14 + $0xa4] sm:$0xf] %vm1813_vm1, %v2631_v0  ;;  %v2158_v48 = vsel %vm1171_vm0, %v2054_v41, 0.0 }
 0x16d   : > { %v1479_v21 = vadd.f32 %v3888_v6, %v1478_v16  ;;  %v2898_v42 = vpop.f32.mrb[14].mxu1  ;;  %v1962_v58 = vadd.f32 %v1961_v34, %v1960_v17 }
 0x16e   : > { %v2636_v55 = vpack.c.bf16 %v1487_v60, %v1487_v60  ;;  %v1481_v62 = vpop.f32.mrb[15].mxu1  ;;  %v2159_v26 = vadd.f32 %v2158_v48, %v2157_v25  ;;  %v1490_v38 = vadd.f32 %v2898_v42, %v3888_v6  ;;  %v2059_v59 = vmul.f32 %v1487_v60, %v1487_v60 }
 0x16f   : > { %v2634_v2 = vpack.c.bf16 %v1479_v21, %v1479_v21  ;;  %v1965_v47 = vsel %vm1171_vm0, %v1479_v21, 0.0  ;;  %v1964_v61 = vadd.f32 %v1963_v43, %v1962_v58  ;;  %v2057_v30 = vmul.f32 %v1479_v21, %v1479_v21 }
 0x170   : > { %1860 = vst.msk [vmem:[%s3896_s14 + $0xb8] sm:$0xf] %vm1813_vm1, %v2636_v55  ;;  %v1482_v10 = vadd.f32 %v3888_v6, %v1481_v62  ;;  %v2161_v27 = vadd.f32 %v2160_v46, %v2159_v26  ;;  %v2637_v63 = vpack.c.bf16 %v1490_v38, %v1490_v38  ;;  %v1969_v15 = vsel %vm1171_vm0, %v1487_v60, 0.0 }
 0x171   : > { %1858 = vst.msk [vmem:[%s3896_s14 + $0xb0] sm:$0xf] %vm1813_vm1, %v2634_v2  ;;  %v1966_v13 = vadd.f32 %v1965_v47, %v1964_v61  ;;  %v2164_v28 = vsel %vm1171_vm0, %v2057_v30, 0.0  ;;  %v2060_v44 = vmul.f32 %v1490_v38, %v1490_v38  ;;  %v2168_v3 = vsel %vm1171_vm0, %v2059_v59, 0.0 }
 0x172   : > { %v2163_v8 = vadd.f32 %v2162_v1, %v2161_v27  ;;  %v2635_v24 = vpack.c.bf16 %v1482_v10, %v1482_v10  ;;  %v1967_v45 = vsel %vm1171_vm0, %v1482_v10, 0.0  ;;  %1861 = vst.msk [vmem:[%s3896_s14 + $0xbc] sm:$0xf] %vm1813_vm1, %v2637_v63  ;;  %v2058_v9 = vmul.f32 %v1482_v10, %v1482_v10 }
 0x173   : > { %v1968_v51 = vadd.f32 %v1967_v45, %v1966_v13  ;;  %v1971_v11 = vsel %vm1171_vm0, %v1490_v38, 0.0  ;;  %v2170_v56 = vsel %vm1171_vm0, %v2060_v44, 0.0 }
 0x174   : > { %v2901_v36 = vpop.f32.mrb[16].mxu1  ;;  %v2165_v31 = vadd.f32 %v2164_v28, %v2163_v8  ;;  %1859 = vst.msk [vmem:[%s3896_s14 + $0xb4] sm:$0xf] %vm1813_vm1, %v2635_v24  ;;  %v2166_v22 = vsel %vm1171_vm0, %v2058_v9, 0.0 }
 0x175   : > { %v1503_v4 = vadd.f32 %v2901_v36, %v3888_v6  ;;  %v1494_v50 = vpop.f32.mrb[17].mxu1  ;;  %v1970_v20 = vadd.f32 %v1969_v15, %v1968_v51 }
 0x176   : > { %v1495_v23 = vadd.f32 %v3888_v6, %v1494_v50  ;;  %v2902_v37 = vpop.f32.mrb[18].mxu1  ;;  %v2167_v32 = vadd.f32 %v2166_v22, %v2165_v31 }
 0x177   : > { %v2640_v33 = vpack.c.bf16 %v1503_v4, %v1503_v4  ;;  %v1497_v29 = vpop.f32.mrb[19].mxu1  ;;  %v1972_v54 = vadd.f32 %v1971_v11, %v1970_v20  ;;  %v1506_v19 = vadd.f32 %v2902_v37, %v3888_v6  ;;  %v2063_v39 = vmul.f32 %v1503_v4, %v1503_v4 }
 0x178   : > { %v2638_v18 = vpack.c.bf16 %v1495_v23, %v1495_v23  ;;  %v1973_v53 = vsel %vm1171_vm0, %v1495_v23, 0.0  ;;  %v2061_v5 = vmul.f32 %v1495_v23, %v1495_v23  ;;  %v2169_v14 = vadd.f32 %v2168_v3, %v2167_v32 }
 0x179   : > { %1864 = vst.msk [vmem:[%s3896_s14 + $0xc8] sm:$0xf] %vm1813_vm1, %v2640_v33  ;;  %v1498_v7 = vadd.f32 %v3888_v6, %v1497_v29  ;;  %v1974_v12 = vadd.f32 %v1973_v53, %v1972_v54  ;;  %v2641_v0 = vpack.c.bf16 %v1506_v19, %v1506_v19  ;;  %v1977_v25 = vsel %vm1171_vm0, %v1503_v4, 0.0 }
 0x17a   : > { %1862 = vst.msk [vmem:[%s3896_s14 + $0xc0] sm:$0xf] %vm1813_vm1, %v2638_v18  ;;  %v2172_v49 = vsel %vm1171_vm0, %v2061_v5, 0.0  ;;  %v2171_v35 = vadd.f32 %v2170_v56, %v2169_v14  ;;  %v2064_v21 = vmul.f32 %v1506_v19, %v1506_v19  ;;  %v2176_v48 = vsel %vm1171_vm0, %v2063_v39, 0.0 }
 0x17b   : > { %v2639_v40 = vpack.c.bf16 %v1498_v7, %v1498_v7  ;;  %v1975_v52 = vsel %vm1171_vm0, %v1498_v7, 0.0  ;;  %v2062_v17 = vmul.f32 %v1498_v7, %v1498_v7  ;;  %1865 = vst.msk [vmem:[%s3896_s14 + $0xcc] sm:$0xf] %vm1813_vm1, %v2641_v0  ;;  %v1979_v2 = vsel %vm1171_vm0, %v1506_v19, 0.0 }
 0x17c   : > { %v2905_v41 = vpop.f32.mrb[20].mxu1  ;;  %v2173_v60 = vadd.f32 %v2172_v49, %v2171_v35  ;;  %v1976_v16 = vadd.f32 %v1975_v52, %v1974_v12  ;;  %v2178_v13 = vsel %vm1171_vm0, %v2064_v21, 0.0 }
 0x17d   : > { %v1519_v34 = vadd.f32 %v2905_v41, %v3888_v6  ;;  %v1510_v46 = vpop.f32.mrb[21].mxu1  ;;  %1863 = vst.msk [vmem:[%s3896_s14 + $0xc4] sm:$0xf] %vm1813_vm1, %v2639_v40  ;;  %v2174_v42 = vsel %vm1171_vm0, %v2062_v17, 0.0 }
 0x17e   : > { %v1511_v57 = vadd.f32 %v3888_v6, %v1510_v46  ;;  %v2906_v58 = vpop.f32.mrb[22].mxu1  ;;  %v1978_v55 = vadd.f32 %v1977_v25, %v1976_v16  ;;  %v2175_v62 = vadd.f32 %v2174_v42, %v2173_v60 }
 0x17f   : > { %v2644_v43 = vpack.c.bf16 %v1519_v34, %v1519_v34  ;;  %v1513_v26 = vpop.f32.mrb[23].mxu1  ;;  %v1522_v27 = vadd.f32 %v2906_v58, %v3888_v6  ;;  %v2067_v63 = vmul.f32 %v1519_v34, %v1519_v34  ;;  %v1985_v44 = vsel %vm1171_vm0, %v1519_v34, 0.0 }
 0x180   : > { %v2642_v47 = vpack.c.bf16 %v1511_v57, %v1511_v57  ;;  %v1981_v61 = vsel %vm1171_vm0, %v1511_v57, 0.0  ;;  %v2065_v30 = vmul.f32 %v1511_v57, %v1511_v57  ;;  %v2177_v38 = vadd.f32 %v2176_v48, %v2175_v62 }
 0x181   : > { %1868 = vst.msk [vmem:[%s3896_s14 + $0xd8] sm:$0xf] %vm1813_vm1, %v2644_v43  ;;  %v1980_v10 = vadd.f32 %v1979_v2, %v1978_v55  ;;  %v1514_v1 = vadd.f32 %v3888_v6, %v1513_v26  ;;  %v2645_v24 = vpack.c.bf16 %v1522_v27, %v1522_v27  ;;  %v2068_v20 = vmul.f32 %v1522_v27, %v1522_v27 }
 0x182   : > { %1866 = vst.msk [vmem:[%s3896_s14 + $0xd0] sm:$0xf] %vm1813_vm1, %v2642_v47  ;;  %v2180_v28 = vsel %vm1171_vm0, %v2065_v30, 0.0  ;;  %v2179_v8 = vadd.f32 %v2178_v13, %v2177_v38  ;;  %v2184_v3 = vsel %vm1171_vm0, %v2067_v63, 0.0  ;;  %v1987_v18 = vsel %vm1171_vm0, %v1522_v27, 0.0 }
 0x183   : > { %v1982_v59 = vadd.f32 %v1981_v61, %v1980_v10  ;;  %v2643_v45 = vpack.c.bf16 %v1514_v1, %v1514_v1  ;;  %v1983_v51 = vsel %vm1171_vm0, %v1514_v1, 0.0  ;;  %v2066_v9 = vmul.f32 %v1514_v1, %v1514_v1  ;;  %1869 = vst.msk [vmem:[%s3896_s14 + $0xdc] sm:$0xf] %vm1813_vm1, %v2645_v24 }
 0x184   : > { %v2909_v36 = vpop.f32.mrb[24].mxu1  ;;  %v2181_v15 = vadd.f32 %v2180_v28, %v2179_v8  ;;  %v2186_v12 = vsel %vm1171_vm0, %v2068_v20, 0.0 }
 0x185   : > { %v1984_v31 = vadd.f32 %v1983_v51, %v1982_v59  ;;  %v1535_v4 = vadd.f32 %v2909_v36, %v3888_v6  ;;  %v1526_v50 = vpop.f32.mrb[25].mxu1  ;;  %1867 = vst.msk [vmem:[%s3896_s14 + $0xd4] sm:$0xf] %vm1813_vm1, %v2643_v45  ;;  %v2182_v22 = vsel %vm1171_vm0, %v2066_v9, 0.0 }
 0x186   : > { %v1527_v23 = vadd.f32 %v3888_v6, %v1526_v50  ;;  %v2910_v37 = vpop.f32.mrb[26].mxu1  ;;  %v2183_v32 = vadd.f32 %v2182_v22, %v2181_v15  ;;  %v3219_v6 = vld [vmem:[%s3885_s11] ss:$0 sm:$0xff] }
 0x187   : > { %v1986_v11 = vadd.f32 %v1985_v44, %v1984_v31  ;;  %v2648_v33 = vpack.c.bf16 %v1535_v4, %v1535_v4  ;;  %v1529_v29 = vpop.f32.mrb[27].mxu1  ;;  %v1538_v7 = vadd.f32 %v3219_v6, %v2910_v37  ;;  %v2071_v40 = vmul.f32 %v1535_v4, %v1535_v4 }
 0x188   : > { %v2646_v54 = vpack.c.bf16 %v1527_v23, %v1527_v23  ;;  %v1989_v53 = vsel %vm1171_vm0, %v1527_v23, 0.0  ;;  %v2069_v5 = vmul.f32 %v1527_v23, %v1527_v23  ;;  %v2185_v14 = vadd.f32 %v2184_v3, %v2183_v32 }
 0x189   : > { %1872 = vst.msk [vmem:[%s3896_s14 + $0xe8] sm:$0xf] %vm1813_vm1, %v2648_v33  ;;  %v1988_v19 = vadd.f32 %v1987_v18, %v1986_v11  ;;  %v1530_v56 = vadd.f32 %v3219_v6, %v1529_v29  ;;  %v2649_v0 = vpack.c.bf16 %v1538_v7, %v1538_v7  ;;  %v1993_v46 = vsel %vm1171_vm0, %v1535_v4, 0.0 }
 0x18a   : > { %1870 = vst.msk [vmem:[%s3896_s14 + $0xe0] sm:$0xf] %vm1813_vm1, %v2646_v54  ;;  %v2188_v49 = vsel %vm1171_vm0, %v2069_v5, 0.0  ;;  %v2187_v35 = vadd.f32 %v2186_v12, %v2185_v14  ;;  %v2072_v25 = vmul.f32 %v1538_v7, %v1538_v7  ;;  %v2192_v43 = vsel %vm1171_vm0, %v2071_v40, 0.0 }
 0x18b   : > { %v1990_v39 = vadd.f32 %v1989_v53, %v1988_v19  ;;  %v2647_v52 = vpack.c.bf16 %v1530_v56, %v1530_v56  ;;  %v1991_v17 = vsel %vm1171_vm0, %v1530_v56, 0.0  ;;  %v2070_v41 = vmul.f32 %v1530_v56, %v1530_v56  ;;  %1873 = vst.msk [vmem:[%s3896_s14 + $0xec] sm:$0xf] %vm1813_vm1, %v2649_v0 }
 0x18c   : > { %v2189_v60 = vadd.f32 %v2188_v49, %v2187_v35  ;;  %v2913_v34 = vpop.f32.mrb[28].mxu1  ;;  %v1995_v26 = vsel %vm1171_vm0, %v1538_v7, 0.0  ;;  %v2194_v1 = vsel %vm1171_vm0, %v2072_v25, 0.0 }
 0x18d   : > { %v1992_v16 = vadd.f32 %v1991_v17, %v1990_v39  ;;  %1871 = vst.msk [vmem:[%s3896_s14 + $0xe4] sm:$0xf] %vm1813_vm1, %v2647_v52  ;;  %v2190_v21 = vsel %vm1171_vm0, %v2070_v41, 0.0  ;;  %v1551_v42 = vadd.f32 %v3219_v6, %v2913_v34  ;;  %v1542_v57 = vpop.f32.mrb[29].mxu1 }
 0x18e   : > { %v2191_v48 = vadd.f32 %v2190_v21, %v2189_v60  ;;  %v1543_v55 = vadd.f32 %v3219_v6, %v1542_v57  ;;  %v2914_v62 = vpop.f32.mrb[30].mxu1 }
 0x18f   : > { %v1994_v58 = vadd.f32 %v1993_v46, %v1992_v16  ;;  %v2652_v2 = vpack.c.bf16 %v1551_v42, %v1551_v42  ;;  %v1554_v47 = vadd.f32 %v3219_v6, %v2914_v62  ;;  %v1545_v61 = vpop.f32.mrb[31].mxu1  ;;  %v2075_v36 = vmul.f32 %v1551_v42, %v1551_v42 }
 0x190   : > { %v2193_v30 = vadd.f32 %v2192_v43, %v2191_v48  ;;  %v2650_v38 = vpack.c.bf16 %v1543_v55, %v1543_v55  ;;  %v1997_v27 = vsel %vm1171_vm0, %v1543_v55, 0.0  ;;  %v2073_v13 = vmul.f32 %v1543_v55, %v1543_v55 }
 0x191   : > { %v1996_v10 = vadd.f32 %v1995_v26, %v1994_v58  ;;  %1876 = vst.msk [vmem:[%s3896_s14 + $0xf8] sm:$0xf] %vm1813_vm1, %v2652_v2  ;;  %v2653_v28 = vpack.c.bf16 %v1554_v47, %v1554_v47  ;;  %v1546_v8 = vadd.f32 %v3219_v6, %v1545_v61  ;;  %v2001_v4 = vsel %vm1171_vm0, %v1551_v42, 0.0 }
 0x192   : > { %1874 = vst.msk [vmem:[%s3896_s14 + $0xf0] sm:$0xf] %vm1813_vm1, %v2650_v38  ;;  %v2195_v59 = vadd.f32 %v2194_v1, %v2193_v30  ;;  %v2196_v24 = vsel %vm1171_vm0, %v2073_v13, 0.0  ;;  %v2076_v50 = vmul.f32 %v1554_v47, %v1554_v47  ;;  %v2003_v22 = vsel %vm1171_vm0, %v1554_v47, 0.0 }
 0x193   : > { %v1998_v63 = vadd.f32 %v1997_v27, %v1996_v10  ;;  %1877 = vst.msk [vmem:[%s3896_s14 + $0xfc] sm:$0xf] %vm1813_vm1, %v2653_v28  ;;  %v2651_v51 = vpack.c.bf16 %v1546_v8, %v1546_v8  ;;  %v1999_v9 = vsel %vm1171_vm0, %v1546_v8, 0.0  ;;  %v2074_v31 = vmul.f32 %v1546_v8, %v1546_v8 }
 0x194   : > { %v2197_v45 = vadd.f32 %v2196_v24, %v2195_v59  ;;  %v2200_v37 = vsel %vm1171_vm0, %v2075_v36, 0.0  ;;  %v2202_v32 = vsel %vm1171_vm0, %v2076_v50, 0.0 }
 0x195   : > { %v2000_v15 = vadd.f32 %v1999_v9, %v1998_v63  ;;  %1875 = vst.msk [vmem:[%s3896_s14 + $0xf4] sm:$0xf] %vm1813_vm1, %v2651_v51  ;;  %v2198_v20 = vsel %vm1171_vm0, %v2074_v31, 0.0 }
 0x196   : > { %v2199_v23 = vadd.f32 %v2198_v20, %v2197_v45 }
 0x197   : > { %v2002_v44 = vadd.f32 %v2001_v4, %v2000_v15 }
 0x198   : > { %v2201_v11 = vadd.f32 %v2200_v37, %v2199_v23 }
 0x199   : > { %v2004_v3 = vadd.f32 %v2003_v22, %v2002_v44 }
 0x19a   : > { %v2203_v29 = vadd.f32 %v2202_v32, %v2201_v11 }
 0x19b   : > { %v2005_v33 = vrot.slane %v2004_v3, 4 }
 0x19c   : > { %v2204_v54 = vrot.slane %v2203_v29, 4 }
 0x19d   : > { %v2006_v18 = vadd.f32 %v2005_v33, %v2004_v3 }
 0x19e   : > { %v2205_v5 = vadd.f32 %v2204_v54, %v2203_v29 }
 0x19f   : > { %v2007_v53 = vrot.slane %v2006_v18, 2 }
 0x1a0   : > { %v2206_v19 = vrot.slane %v2205_v5, 2 }
 0x1a1   : > { %v2008_v14 = vadd.f32 %v2007_v53, %v2006_v18 }
 0x1a2   : > { %v2207_v7 = vadd.f32 %v2206_v19, %v2205_v5 }
 0x1a3   : > { %v2009_v6 = vrot.slane %v2008_v14, 1 }
 0x1a4   : > { %v2208_v12 = vrot.slane %v2207_v7, 1 }
 0x1a5   : > { %v2010_v56 = vadd.f32 %v2009_v6, %v2008_v14 }
 0x1a6   : > { %v2209_v49 = vadd.f32 %v2208_v12, %v2207_v7 }
 0x1a7   : > { %2012 = vst.msk [vmem:[%s389_s19] sm:$0x1] %vm2011_vm2, %v2010_v56 }
 0x1a8   : > { %2210 = vst.msk [vmem:[%s396_s22] sm:$0x1] %vm2011_vm2, %v2209_v49 }
 0x1a9 PF: > { %s18_s28 = sadd.s32 1, %s3258_s28   ;;  %s4244_s24 = smov %s3250_s26 }
 0x1aa   : > { %p15_p8 = scmp.ge.s32.totalorder %s18_s28, 6   ;;  %s4245_s25 = smov %s3254_s27 }
 0x1ab   : > { %s4246_s26 = smov %s4249_s29  ;;  %s4247_s27 = smov %s4253_s30 }
 0x1ac   :  { %17 = sbr.rel (!%p15_p8) target bundleno = 3 (0x3), region = 103 }

// kernel: fc_block_forward.3
= control target key start
LH: loop header
LB: loop body
LE: loop exit
PB: predicated region body
PF: predicated region fallthrough
CT: control target
= control target key end

     0   :  { %s2877_s21 = smov 0   ;;  %s2879_s22 = smov 0   ;;  %s3689_s0 = inlined_call_operand.vmem [shape: bf16[2,1024,32], index: 0, kind: input, shape index: {}]   ;;  %s3690_s1 = inlined_call_operand.vmem [shape: bf16[2,1024,32], index: 1, kind: input, shape index: {}]   ;;  %s3691_s2 = inlined_call_operand.vmem [shape: f32[2,1,32], index: 2, kind: input, shape index: {}]   ;;  %s3692_s3 = inlined_call_operand.vmem [shape: f32[2,1,32], index: 3, kind: input, shape index: {}]   ;;  %s3693_s4 = inlined_call_operand.vmem [shape: bf16[32,32], index: 4, kind: input, shape index: {}]   ;;  %s3694_s5 = inlined_call_operand.vmem [shape: f32[1,32], index: 5, kind: input, shape index: {}]   ;;  %s3695_s6 = inlined_call_operand.vmem [shape: f32[2,1024,32], index: 6, kind: output, shape index: {}]  }
   0x1   :  { %s2881_s23 = smov 0   ;;  %s2883_s24 = smov 0  }
   0x2   :  { %s2885_s25 = smov 0  }
   0x3 LB: > { %s25_s26 = sadd.s32 1, %s2832_s23  ;;  %s28_s27 = sadd.s32 1, %s2836_s24  ;;  %s2840_s25 = sphi %s2885_s25, %s16_s25   ;;  %s2836_s24 = sphi %s2883_s24, %s3699_s24   ;;  %s2832_s23 = sphi %s2881_s23, %s3698_s23   ;;  %s2828_s22 = sphi %s2879_s22, %s3697_s22   ;;  %s2824_s21 = sphi %s2877_s21, %s3696_s21  }
   0x4   : > { %p26_p0 = scmp.ge.s32.totalorder %s25_s26, 2  ;;  %p1965_p1 = scmp.ge.s32.totalorder %s2840_s25, 1 }
   0x5   : > { %p266_p2 = scmp.lt.s32.totalorder %s2840_s25, 5 }
   0x6   : > { %s3701_s26 = smov (%p26_p0, %s25_s26), 0  ;;  %s3703_s27 = smov (!%p26_p0, %s28_s27), %s2836_s24 }
   0x7   : > { %p267_p3 = pnand %p1965_p1, %p266_p2  ;;  %p30_p4 = scmp.ge.s32.totalorder %s3703_s27, 2 }
   0x8   : > { %v2542_v0 = vld [vmem:[%s3693_s4] sm:$0xff] (!%p267_p3)   ;;  %s1966_s30 = sshll.u32 (!%p267_p3), %s2824_s21, 6  ;;  %v2543_v1 = vld [vmem:[%s3693_s4 + $0x8] sm:$0xff] (!%p267_p3)   ;;  %p320_p5 = scmp.lt.s32.totalorder (!%p267_p3), %s2828_s22, 1  ;;  %vm1122_vm0 = vcmask (!%p267_p3), 261120  }
   0x9   : > { %s3705_s27 = smov (%p30_p4, %s3703_s27), 0  ;;  %270 = sbr.rel (%p267_p3) target bundleno = 405 (0x195), region = 44 }
   0xa   : > { %2430 = vmatprep.subr.bf16.mxu0 (!%p267_p3), %v2542_v0  ;;  %2498 = vmatprep.subr.bf16.mxu1 (!%p267_p3), %v2542_v0  ;;  %p322_p6 = scmp.lt.s32.totalorder (!%p267_p3), %s1966_s30, 127 }
   0xb   : > { %2431 = vmatpush3.bf16.msra.mxu0 (!%p267_p3), %v2542_v0  ;;  %2500 = vmatpush3.bf16.msra.mxu1 (!%p267_p3), %v2542_v0 }
   0xc   : > { %2432 = vmatprep.subr.bf16.mxu0 (!%p267_p3), %v2543_v1  ;;  %2499 = vmatprep.subr.bf16.mxu1 (!%p267_p3), %v2543_v1 }
   0xf   : > { %2433 = vmatpush3.bf16.msra.mxu0 (!%p267_p3), %v2543_v1  ;;  %2501 = vmatpush3.bf16.msra.mxu1 (!%p267_p3), %v2543_v1 }
  0x10   : > { %s3707_s22 = smov (!%p320_p5, %s2828_s22), 1  ;;  %s3709_s30 = smov (!%p322_p6, %s1966_s30), 127 }
  0x11   : > { %s1967_s9 = sshll.u32 %s3707_s22, 7  ;;  %s2916_s12 = scalar_lea.vmem %s3691_s2, %s3707_s22 }
  0x12   : > { %s2918_s13 = sadd.s32 %s1967_s9, %s3709_s30  ;;  %s2931_s20 = scalar_lea.vmem %s3692_s3, %s3707_s22  ;;  %v2934_v2 = vld [vmem:[%s2916_s12] ss:$0 sm:$0xff] }
  0x13   : > { %s1968_s14 = sshll.u32 %s2918_s13, 2  ;;  %v2941_v11 = vld [vmem:[%s2931_s20] ss:$0 sm:$0xff]  ;;  %s1974_s29 = sshll.u32 %s2918_s13, 3 }
  0x14   : > { %s2926_s17 = scalar_lea.vmem %s3689_s0, %s1968_s14  ;;  %s3437_s28 = scalar_lea.vmem %s3690_s1, %s1968_s14 }
  0x15   : > { %v2079_v3 = vld [vmem:[%s2926_s17] sm:$0xff]   ;;  %v2334_v5 = vld [vmem:[%s2926_s17 + $0x8] sm:$0xff]   ;;  %v2335_v24 = vld [vmem:[%s2926_s17 + $0x10] sm:$0xff]   ;;  %s3452_s10 = scalar_lea.vmem %s3695_s6, %s1974_s29 }
  0x16   : > { %v2349_v4 = vld [vmem:[%s2926_s17 + $0x80] sm:$0xff]   ;;  %v2080_v6 = vunpack.c.l.bf16 %v2079_v3  ;;  %v2081_v7 = vunpack.c.h.bf16 %v2079_v3  ;;  %v2350_v10 = vld [vmem:[%s2926_s17 + $0x88] sm:$0xff]   ;;  %v2084_v12 = vunpack.c.l.bf16 %v2334_v5  ;;  %v2085_v13 = vunpack.c.h.bf16 %v2334_v5  ;;  %v2351_v33 = vld [vmem:[%s2926_s17 + $0x90] sm:$0xff]  }
  0x17   : > { %v2144_v8 = vunpack.c.l.bf16 %v2349_v4  ;;  %v2145_v9 = vunpack.c.h.bf16 %v2349_v4  ;;  %v2148_v14 = vunpack.c.l.bf16 %v2350_v10  ;;  %v2149_v15 = vunpack.c.h.bf16 %v2350_v10  ;;  %v2336_v34 = vld [vmem:[%s2926_s17 + $0x18] sm:$0xff]   ;;  %v2337_v1 = vld [vmem:[%s2926_s17 + $0x20] sm:$0xff]  }
  0x18   : > { %v491_v16 = vmul.f32 %v2080_v6, %v2934_v2  ;;  %v492_v17 = vmul.f32 %v2081_v7, %v2934_v2  ;;  %v493_v20 = vmul.f32 %v2084_v12, %v2934_v2  ;;  %v494_v21 = vmul.f32 %v2085_v13, %v2934_v2  ;;  %v2352_v55 = vld [vmem:[%s2926_s17 + $0x98] sm:$0xff]   ;;  %v2353_v6 = vld [vmem:[%s2926_s17 + $0xa0] sm:$0xff]  }
  0x19   : > { %v523_v18 = vmul.f32 %v2144_v8, %v2934_v2  ;;  %v524_v19 = vmul.f32 %v2145_v9, %v2934_v2  ;;  %v525_v22 = vmul.f32 %v2148_v14, %v2934_v2  ;;  %v526_v23 = vmul.f32 %v2149_v15, %v2934_v2 }
  0x1a   : > { %v2953_v25 = vadd.f32 %v2941_v11, %v491_v16  ;;  %v2956_v26 = vadd.f32 %v2941_v11, %v492_v17  ;;  %v2965_v29 = vadd.f32 %v2941_v11, %v493_v20  ;;  %v2968_v30 = vadd.f32 %v2941_v11, %v494_v21 }
  0x1b   : > { %v2959_v27 = vadd.f32 %v2941_v11, %v523_v18  ;;  %v2962_v28 = vadd.f32 %v2941_v11, %v524_v19  ;;  %v2971_v31 = vadd.f32 %v2941_v11, %v525_v22  ;;  %v2974_v32 = vadd.f32 %v2941_v11, %v526_v23 }
  0x1c   : > { %v1977_v35 = vmul.f32 -1.442695, %v2953_v25  ;;  %v1978_v36 = vmul.f32 -1.442695, %v2956_v26  ;;  %v2088_v38 = vunpack.c.l.bf16 %v2335_v24  ;;  %v1979_v40 = vmul.f32 -1.442695, %v2965_v29 }
  0x1d   : > { %v2009_v37 = vmul.f32 -1.442695, %v2959_v27  ;;  %v2010_v39 = vmul.f32 -1.442695, %v2962_v28  ;;  %v1980_v41 = vmul.f32 -1.442695, %v2968_v30  ;;  %v2089_v42 = vunpack.c.h.bf16 %v2335_v24 }
  0x1e   : > { %2544 = vpow2.f32 %v1977_v35  ;;  %v2011_v43 = vmul.f32 -1.442695, %v2971_v31  ;;  %v2012_v44 = vmul.f32 -1.442695, %v2974_v32  ;;  %v495_v45 = vmul.f32 %v2088_v38, %v2934_v2 }
  0x1f   : > { %2546 = vpow2.f32 %v1978_v36  ;;  %v496_v46 = vmul.f32 %v2089_v42, %v2934_v2  ;;  %v2152_v47 = vunpack.c.l.bf16 %v2351_v33  ;;  %v2153_v48 = vunpack.c.h.bf16 %v2351_v33  ;;  %v2338_v42 = vld [vmem:[%s2926_s17 + $0x28] sm:$0xff]  }
  0x20   : > { %2548 = vpow2.f32 %v2009_v37  ;;  %v2989_v49 = vadd.f32 %v2941_v11, %v495_v45  ;;  %v2092_v50 = vunpack.c.l.bf16 %v2336_v34  ;;  %v2093_v51 = vunpack.c.h.bf16 %v2336_v34 }
  0x21   : > { %2550 = vpow2.f32 %v2010_v39  ;;  %v2992_v52 = vadd.f32 %v2941_v11, %v496_v46  ;;  %v527_v53 = vmul.f32 %v2152_v47, %v2934_v2  ;;  %v528_v54 = vmul.f32 %v2153_v48, %v2934_v2 }
  0x22   : > { %2552 = vpow2.f32 %v1979_v40  ;;  %v1981_v56 = vmul.f32 -1.442695, %v2989_v49  ;;  %v497_v57 = vmul.f32 %v2092_v50, %v2934_v2  ;;  %v498_v58 = vmul.f32 %v2093_v51, %v2934_v2 }
  0x23   : > { %2554 = vpow2.f32 %v1980_v41  ;;  %v1982_v59 = vmul.f32 -1.442695, %v2992_v52  ;;  %v3002_v60 = vadd.f32 %v2941_v11, %v527_v53  ;;  %v3005_v61 = vadd.f32 %v2941_v11, %v528_v54 }
  0x24   : > { %2556 = vpow2.f32 %v2011_v43  ;;  %v3008_v62 = vadd.f32 %v2941_v11, %v497_v57  ;;  %v3011_v63 = vadd.f32 %v2941_v11, %v498_v58  ;;  %v2156_v0 = vunpack.c.l.bf16 %v2352_v55  ;;  %v2354_v57 = vld [vmem:[%s2926_s17 + $0xa8] sm:$0xff]  }
  0x25   : > { %2558 = vpow2.f32 %v2012_v44  ;;  %v2013_v3 = vmul.f32 -1.442695, %v3002_v60  ;;  %v2014_v4 = vmul.f32 -1.442695, %v3005_v61  ;;  %v2157_v5 = vunpack.c.h.bf16 %v2352_v55 }
  0x26   : > { %2560 = vpow2.f32 %v1981_v56  ;;  %v1983_v7 = vmul.f32 -1.442695, %v3008_v62  ;;  %v3019_v8 = vmul.f32 -1.442695, %v3011_v63  ;;  %v529_v9 = vmul.f32 %v2156_v0, %v2934_v2 }
  0x27   : > { %2562 = vpow2.f32 %v1982_v59  ;;  %v530_v10 = vmul.f32 %v2157_v5, %v2934_v2  ;;  %v2096_v12 = vunpack.c.l.bf16 %v2337_v1  ;;  %v2097_v13 = vunpack.c.h.bf16 %v2337_v1 }
  0x28   : > { %v2545_v14 = vpop.eup %2544  ;;  %2564 = vpow2.f32 %v2013_v3  ;;  %v3024_v15 = vadd.f32 %v2941_v11, %v529_v9  ;;  %v2160_v16 = vunpack.c.l.bf16 %v2353_v6  ;;  %v2161_v17 = vunpack.c.h.bf16 %v2353_v6 }
  0x29   : > { %v2547_v18 = vpop.eup %2546  ;;  %v818_v19 = vadd.f32 1.0, %v2545_v14  ;;  %2566 = vpow2.f32 %v2014_v4  ;;  %v3027_v20 = vadd.f32 %v2941_v11, %v530_v10  ;;  %v499_v21 = vmul.f32 %v2096_v12, %v2934_v2 }
  0x2a   : > { %v2549_v22 = vpop.eup %2548  ;;  %v819_v23 = vadd.f32 1.0, %v2547_v18  ;;  %2568 = vpow2.f32 %v1983_v7  ;;  %v3031_v24 = vmul.f32 -1.442695, %v3024_v15  ;;  %v500_v33 = vmul.f32 %v2097_v13, %v2934_v2 }
  0x2b   : > { %v2551_v34 = vpop.eup %2550  ;;  %2570 = vrcp.f32 %v818_v19  ;;  %v850_v35 = vadd.f32 1.0, %v2549_v22  ;;  %v3035_v36 = vmul.f32 -1.442695, %v3027_v20  ;;  %v3038_v37 = vadd.f32 %v2941_v11, %v499_v21 }
  0x2c   : > { %v2553_v38 = vpop.eup %2552  ;;  %2572 = vrcp.f32 %v819_v23  ;;  %v851_v39 = vadd.f32 1.0, %v2551_v34  ;;  %v3041_v40 = vadd.f32 %v2941_v11, %v500_v33  ;;  %v531_v41 = vmul.f32 %v2160_v16, %v2934_v2  ;;  %v2339_v23 = vld [vmem:[%s2926_s17 + $0x30] sm:$0xff]  }
  0x2d   : > { %v2555_v43 = vpop.eup %2554  ;;  %2574 = vrcp.f32 %v850_v35  ;;  %v820_v44 = vadd.f32 1.0, %v2553_v38  ;;  %v3046_v45 = vmul.f32 -1.442695, %v3038_v37  ;;  %v532_v46 = vmul.f32 %v2161_v17, %v2934_v2 }
  0x2e   : > { %v2557_v47 = vpop.eup %2556  ;;  %2576 = vrcp.f32 %v851_v39  ;;  %v821_v48 = vadd.f32 1.0, %v2555_v43  ;;  %v3050_v50 = vmul.f32 -1.442695, %v3041_v40  ;;  %v3053_v51 = vadd.f32 %v2941_v11, %v531_v41 }
  0x2f   : > { %v2559_v53 = vpop.eup %2558  ;;  %2578 = vrcp.f32 %v820_v44  ;;  %v852_v54 = vadd.f32 1.0, %v2557_v47  ;;  %v3056_v55 = vadd.f32 %v2941_v11, %v532_v46  ;;  %v2100_v56 = vunpack.c.l.bf16 %v2338_v42 }
  0x30   : > { %v2561_v58 = vpop.eup %2560  ;;  %2580 = vrcp.f32 %v821_v48  ;;  %v853_v59 = vadd.f32 1.0, %v2559_v53  ;;  %v3060_v0 = vmul.f32 -1.442695, %v3053_v51  ;;  %v2101_v1 = vunpack.c.h.bf16 %v2338_v42 }
  0x31   : > { %v2563_v3 = vpop.eup %2562  ;;  %2582 = vrcp.f32 %v852_v54  ;;  %v822_v4 = vadd.f32 1.0, %v2561_v58  ;;  %v3063_v5 = vmul.f32 -1.442695, %v3056_v55  ;;  %v501_v6 = vmul.f32 %v2100_v56, %v2934_v2 }
  0x32   : > { %v2565_v7 = vpop.eup %2564  ;;  %2584 = vrcp.f32 %v853_v59  ;;  %v823_v9 = vadd.f32 1.0, %v2563_v3  ;;  %v502_v10 = vmul.f32 %v2101_v1, %v2934_v2  ;;  %v2164_v12 = vunpack.c.l.bf16 %v2354_v57 }
  0x33   : > { %v2567_v13 = vpop.eup %2566  ;;  %2586 = vrcp.f32 %v822_v4  ;;  %v854_v14 = vadd.f32 1.0, %v2565_v7  ;;  %v3068_v16 = vadd.f32 %v2941_v11, %v501_v6  ;;  %v2165_v17 = vunpack.c.h.bf16 %v2354_v57  ;;  %v2355_v57 = vld [vmem:[%s2926_s17 + $0xb0] sm:$0xff]  }
  0x34   : > { %v2569_v18 = vpop.eup %2568  ;;  %2588 = vrcp.f32 %v823_v9  ;;  %v855_v19 = vadd.f32 1.0, %v2567_v13  ;;  %v3071_v21 = vadd.f32 %v2941_v11, %v502_v10  ;;  %v533_v22 = vmul.f32 %v2164_v12, %v2934_v2 }
  0x35   : > { %v2571_v33 = vpop.eup %2570  ;;  %2590 = vrcp.f32 %v854_v14  ;;  %v824_v34 = vadd.f32 1.0, %v2569_v18  ;;  %v1987_v35 = vmul.f32 -1.442695, %v3068_v16  ;;  %v534_v38 = vmul.f32 %v2165_v17, %v2934_v2  ;;  %v2340_v14 = vld [vmem:[%s2926_s17 + $0x38] sm:$0xff]  }
  0x36   : > { %v2573_v39 = vpop.eup %2572  ;;  %v1010_v41 = vmul.f32 %v2571_v33, %v2953_v25  ;;  %2592 = vrcp.f32 %v855_v19  ;;  %v1988_v42 = vmul.f32 -1.442695, %v3071_v21  ;;  %v3080_v43 = vadd.f32 %v2941_v11, %v533_v22 }
  0x37   : > { %v2575_v44 = vpop.eup %2574  ;;  %v1011_v46 = vmul.f32 %v2573_v39, %v2956_v26  ;;  %2594 = vpow2.f32 %v3019_v8  ;;  %v3085_v47 = vadd.f32 %v2941_v11, %v534_v38  ;;  %v2104_v48 = vunpack.c.l.bf16 %v2339_v23 }
  0x38   : > { %v2577_v53 = vpop.eup %2576  ;;  %v1042_v54 = vmul.f32 %v2575_v44, %v2959_v27  ;;  %2596 = vrcp.f32 %v824_v34  ;;  %v2019_v25 = vmul.f32 -1.442695, %v3080_v43  ;;  %v2105_v56 = vunpack.c.h.bf16 %v2339_v23 }
  0x39   : > { %v2579_v58 = vpop.eup %2578  ;;  %v1074_v59 = vpack.c.bf16 %v1011_v46, %v1010_v41  ;;  %v1043_v1 = vmul.f32 %v2577_v53, %v2962_v28  ;;  %2598 = vpow2.f32 %v3031_v24  ;;  %v2020_v26 = vmul.f32 -1.442695, %v3085_v47 }
  0x3a   : > { %v2581_v8 = vpop.eup %2580  ;;  %v1012_v3 = vmul.f32 %v2579_v58, %v2965_v29  ;;  %2600 = vpow2.f32 %v3035_v36  ;;  %v503_v27 = vmul.f32 %v2104_v48, %v2934_v2  ;;  %v504_v4 = vmul.f32 %v2105_v56, %v2934_v2 }
  0x3b   : > { %v2583_v6 = vpop.eup %2582  ;;  %2434 = vmatprep.mubr.msk.bf16.mxu0 %vm1122_vm0, %v1074_v59  ;;  %v1090_v7 = vpack.c.bf16 %v1043_v1, %v1042_v54  ;;  %v1013_v28 = vmul.f32 %v2581_v8, %v2968_v30  ;;  %2602 = vpow2.f32 %v3046_v45  ;;  %v2168_v24 = vunpack.c.l.bf16 %v2355_v57 }
  0x3c   : > { %v2585_v9 = vpop.eup %2584  ;;  %v1044_v10 = vmul.f32 %v2583_v6, %v2971_v31  ;;  %2604 = vpow2.f32 %v3050_v50  ;;  %v3103_v29 = vadd.f32 %v2941_v11, %v503_v27  ;;  %v3106_v36 = vadd.f32 %v2941_v11, %v504_v4 }
  0x3d   : > { %v2587_v12 = vpop.eup %2586  ;;  %2466 = vmatprep.mubr.msk.bf16.mxu1 %vm1122_vm0, %v1090_v7  ;;  %v1075_v13 = vpack.c.bf16 %v1013_v28, %v1012_v3  ;;  %v1045_v30 = vmul.f32 %v2585_v9, %v2974_v32  ;;  %2606 = vpow2.f32 %v3060_v0  ;;  %v2169_v45 = vunpack.c.h.bf16 %v2355_v57 }
  0x3e   : > { %v2589_v17 = vpop.eup %2588  ;;  %v1014_v31 = vmul.f32 %v2587_v12, %v2989_v49  ;;  %2608 = vpow2.f32 %v3063_v5  ;;  %v1989_v50 = vmul.f32 -1.442695, %v3103_v29  ;;  %v1990_v18 = vmul.f32 -1.442695, %v3106_v36 }
  0x3f   : > { %v2591_v19 = vpop.eup %2590  ;;  %2435 = vmatmul.mubr.msk.bf16.vlgmr.msra.gmra.mrb[0].mxu0 %vm1122_vm0, %v1075_v13  ;;  %v1091_v22 = vpack.c.bf16 %v1045_v30, %v1044_v10  ;;  %v1015_v23 = vmul.f32 %v2589_v17, %v2992_v52  ;;  %2610 = vpow2.f32 %v1987_v35  ;;  %v535_v32 = vmul.f32 %v2168_v24, %v2934_v2  ;;  %v2341_v24 = vld [vmem:[%s2926_s17 + $0x40] sm:$0xff]  }
  0x40   : > { %v2593_v0 = vpop.eup %2592  ;;  %v1046_v33 = vmul.f32 %v2591_v19, %v3002_v60  ;;  %2612 = vpow2.f32 %v1988_v42  ;;  %v536_v49 = vmul.f32 %v2169_v45, %v2934_v2  ;;  %v2108_v5 = vunpack.c.l.bf16 %v2340_v14  ;;  %v2356_v42 = vld [vmem:[%s2926_s17 + $0xb8] sm:$0xff]  }
  0x41   : > { %v2595_v34 = vpop.eup %2594  ;;  %2467 = vmatmul.mubr.msk.bf16.vlgmr.msra.gmra.mrb[0].mxu1 %vm1122_vm0, %v1091_v22  ;;  %v1076_v38 = vpack.c.bf16 %v1015_v23, %v1014_v31  ;;  %v1047_v39 = vmul.f32 %v2593_v0, %v3005_v61  ;;  %2614 = vpow2.f32 %v2019_v25  ;;  %v3124_v52 = vadd.f32 %v2941_v11, %v535_v32  ;;  %v2357_v22 = vld [vmem:[%s2926_s17 + $0xc0] sm:$0xff]  }
  0x42   : > { %v2597_v35 = vpop.eup %2596  ;;  %v825_v41 = vadd.f32 1.0, %v2595_v34  ;;  %2616 = vpow2.f32 %v2020_v26  ;;  %v3127_v44 = vadd.f32 %v2941_v11, %v536_v49  ;;  %v2109_v60 = vunpack.c.h.bf16 %v2340_v14 }
  0x43   : > { %v2599_v46 = vpop.eup %2598  ;;  %2438 = vmatprep.mubr.msk.bf16.mxu0 %vm1122_vm0, %v1076_v38  ;;  %v1092_v48 = vpack.c.bf16 %v1047_v39, %v1046_v33  ;;  %v3132_v53 = vmul.f32 %v2597_v35, %v3008_v62  ;;  %2618 = vpow2.f32 %v1989_v50  ;;  %v3135_v61 = vmul.f32 -1.442695, %v3124_v52 }
  0x44   : > { %v2601_v54 = vpop.eup %2600  ;;  %2620 = vrcp.f32 %v825_v41  ;;  %v856_v25 = vadd.f32 1.0, %v2599_v46  ;;  %v3138_v56 = vmul.f32 -1.442695, %v3127_v44  ;;  %v505_v57 = vmul.f32 %v2108_v5, %v2934_v2 }
  0x45   : > { %v2603_v58 = vpop.eup %2602  ;;  %2470 = vmatprep.mubr.msk.bf16.mxu1 %vm1122_vm0, %v1092_v48  ;;  %v857_v59 = vadd.f32 1.0, %v2601_v54  ;;  %2622 = vpow2.f32 %v1990_v18  ;;  %v506_v62 = vmul.f32 %v2109_v60, %v2934_v2  ;;  %v2172_v1 = vunpack.c.l.bf16 %v2356_v42 }
  0x46   : > { %v2605_v26 = vpop.eup %2604  ;;  %2624 = vrcp.f32 %v856_v25  ;;  %v826_v8 = vadd.f32 1.0, %v2603_v58  ;;  %v3144_v3 = vadd.f32 %v2941_v11, %v505_v57  ;;  %v2173_v27 = vunpack.c.h.bf16 %v2356_v42 }
  0x47   : > { %v2607_v4 = vpop.eup %2606  ;;  %2626 = vrcp.f32 %v857_v59  ;;  %v827_v6 = vadd.f32 1.0, %v2605_v26  ;;  %v3147_v7 = vadd.f32 %v2941_v11, %v506_v62  ;;  %v537_v28 = vmul.f32 %v2172_v1, %v2934_v2 }
  0x48   : > { %v2609_v9 = vpop.eup %2608  ;;  %2628 = vrcp.f32 %v826_v8  ;;  %v858_v10 = vadd.f32 1.0, %v2607_v4  ;;  %v3152_v12 = vmul.f32 -1.442695, %v3144_v3  ;;  %v538_v13 = vmul.f32 %v2173_v27, %v2934_v2  ;;  %v2342_v27 = vld [vmem:[%s2926_s17 + $0x48] sm:$0xff]  }
  0x49   : > { %v2611_v30 = vpop.eup %2610  ;;  %2630 = vrcp.f32 %v827_v6  ;;  %v859_v45 = vadd.f32 1.0, %v2609_v9  ;;  %v3156_v14 = vmul.f32 -1.442695, %v3147_v7  ;;  %v3159_v17 = vadd.f32 %v2941_v11, %v537_v28 }
  0x4a   : > { %v2613_v31 = vpop.eup %2612  ;;  %2632 = vrcp.f32 %v858_v10  ;;  %v828_v50 = vadd.f32 1.0, %v2611_v30  ;;  %v3162_v18 = vadd.f32 %v2941_v11, %v538_v13  ;;  %v2112_v19 = vunpack.c.l.bf16 %v2341_v24 }
  0x4b   : > { %v2615_v23 = vpop.eup %2614  ;;  %2634 = vrcp.f32 %v859_v45  ;;  %v829_v32 = vadd.f32 1.0, %v2613_v31  ;;  %v2023_v0 = vmul.f32 -1.442695, %v3159_v17  ;;  %v2113_v33 = vunpack.c.h.bf16 %v2341_v24 }
  0x4c   : > { %v2617_v49 = vpop.eup %2616  ;;  %2636 = vrcp.f32 %v828_v50  ;;  %v860_v5 = vadd.f32 1.0, %v2615_v23  ;;  %v2024_v34 = vmul.f32 -1.442695, %v3162_v18  ;;  %v507_v38 = vmul.f32 %v2112_v19, %v2934_v2  ;;  %v2358_v19 = vld [vmem:[%s2926_s17 + $0xc8] sm:$0xff]  }
  0x4d   : > { %v2619_v39 = vpop.eup %2618  ;;  %2638 = vrcp.f32 %v829_v32  ;;  %v861_v35 = vadd.f32 1.0, %v2617_v49  ;;  %v508_v41 = vmul.f32 %v2113_v33, %v2934_v2  ;;  %v2176_v60 = vunpack.c.l.bf16 %v2357_v22 }
  0x4e   : > { %v2621_v42 = vpop.eup %2620  ;;  %2640 = vrcp.f32 %v860_v5  ;;  %v830_v46 = vadd.f32 1.0, %v2619_v39  ;;  %v3170_v48 = vadd.f32 %v2941_v11, %v507_v38  ;;  %v2177_v54 = vunpack.c.h.bf16 %v2357_v22 }
  0x4f   : > { %v2623_v25 = vpop.eup %2622  ;;  %v1017_v57 = vmul.f32 %v2621_v42, %v3011_v63  ;;  %2642 = vrcp.f32 %v861_v35  ;;  %v3174_v58 = vadd.f32 %v2941_v11, %v508_v41  ;;  %v539_v59 = vmul.f32 %v2176_v60, %v2934_v2  ;;  %v2343_v60 = vld [vmem:[%s2926_s17 + $0x50] sm:$0xff]  }
  0x50   : > { %v2625_v62 = vpop.eup %2624  ;;  %v831_v1 = vadd.f32 1.0, %v2623_v25  ;;  %2644 = vrcp.f32 %v830_v46  ;;  %v1993_v26 = vmul.f32 -1.442695, %v3170_v48  ;;  %v540_v8 = vmul.f32 %v2177_v54, %v2934_v2 }
  0x51   : > { %v2627_v4 = vpop.eup %2626  ;;  %v1077_v6 = vpack.c.bf16 %v1017_v57, %v3132_v53  ;;  %v1048_v28 = vmul.f32 %v2625_v62, %v3024_v15  ;;  %2646 = vpow2.f32 %v3135_v61  ;;  %v1994_v63 = vmul.f32 -1.442695, %v3174_v58 }
  0x52   : > { %v2629_v24 = vpop.eup %2628  ;;  %v1049_v9 = vmul.f32 %v2627_v4, %v3027_v20  ;;  %2648 = vrcp.f32 %v831_v1  ;;  %v3186_v10 = vadd.f32 %v2941_v11, %v539_v59  ;;  %v3189_v13 = vadd.f32 %v2941_v11, %v540_v8 }
  0x53   : > { %v2631_v30 = vpop.eup %2630  ;;  %2439 = vmatmul.mubr.msk.bf16.gmra.mrb[4].mxu0 %vm1122_vm0, %v1077_v6  ;;  %v1018_v15 = vmul.f32 %v2629_v24, %v3038_v37  ;;  %2650 = vpow2.f32 %v3138_v56  ;;  %v2116_v53 = vunpack.c.l.bf16 %v2342_v27  ;;  %v2117_v61 = vunpack.c.h.bf16 %v2342_v27 }
  0x54   : > { %v2633_v45 = vpop.eup %2632  ;;  %v1093_v31 = vpack.c.bf16 %v1049_v9, %v1048_v28  ;;  %v1019_v20 = vmul.f32 %v2631_v30, %v3041_v40  ;;  %2652 = vpow2.f32 %v3152_v12  ;;  %v2025_v50 = vmul.f32 -1.442695, %v3186_v10  ;;  %v2359_v9 = vld [vmem:[%s2926_s17 + $0xd0] sm:$0xff]  }
  0x55   : > { %v2635_v22 = vpop.eup %2634  ;;  %v1050_v23 = vmul.f32 %v2633_v45, %v3053_v51  ;;  %2654 = vpow2.f32 %v3156_v14  ;;  %v2026_v37 = vmul.f32 -1.442695, %v3189_v13  ;;  %v509_v56 = vmul.f32 %v2116_v53, %v2934_v2 }
  0x56   : > { %v2637_v32 = vpop.eup %2636  ;;  %2471 = vmatmul.mubr.msk.bf16.gmra.mrb[4].mxu1 %vm1122_vm0, %v1093_v31  ;;  %v1078_v33 = vpack.c.bf16 %v1019_v20, %v1018_v15  ;;  %v1051_v40 = vmul.f32 %v2635_v22, %v3056_v55  ;;  %2656 = vpow2.f32 %v2023_v0  ;;  %v510_v12 = vmul.f32 %v2117_v61, %v2934_v2 }
  0x57   : > { %v2639_v49 = vpop.eup %2638  ;;  %v1020_v5 = vmul.f32 %v2637_v32, %v3068_v16  ;;  %2658 = vpow2.f32 %v2024_v34  ;;  %v3207_v51 = vadd.f32 %v2941_v11, %v509_v56  ;;  %v2180_v14 = vunpack.c.l.bf16 %v2358_v19  ;;  %v2344_v56 = vld [vmem:[%s2926_s17 + $0x58] sm:$0xff]  }
  0x58   : > { %v2641_v38 = vpop.eup %2640  ;;  %2442 = vmatprep.mubr.msk.bf16.mxu0 %vm1122_vm0, %v1078_v33  ;;  %v1094_v39 = vpack.c.bf16 %v1051_v40, %v1050_v23  ;;  %v1021_v35 = vmul.f32 %v2639_v49, %v3071_v21  ;;  %2660 = vpow2.f32 %v1993_v26  ;;  %v3212_v55 = vadd.f32 %v2941_v11, %v510_v12 }
  0x59   : > { %v2643_v0 = vpop.eup %2642  ;;  %v1052_v41 = vmul.f32 %v2641_v38, %v3080_v43  ;;  %2662 = vpow2.f32 %v1994_v63  ;;  %v1995_v16 = vmul.f32 -1.442695, %v3207_v51  ;;  %v2181_v34 = vunpack.c.h.bf16 %v2358_v19 }
  0x5a   : > { %v2645_v42 = vpop.eup %2644  ;;  %2474 = vmatprep.mubr.msk.bf16.mxu1 %vm1122_vm0, %v1094_v39  ;;  %v1079_v46 = vpack.c.bf16 %v1021_v35, %v1020_v5  ;;  %v1053_v54 = vmul.f32 %v2643_v0, %v3085_v47  ;;  %2664 = vpow2.f32 %v2025_v50  ;;  %v1996_v21 = vmul.f32 -1.442695, %v3212_v55 }
  0x5b   : > { %v2647_v25 = vpop.eup %2646  ;;  %v1022_v57 = vmul.f32 %v2645_v42, %v3103_v29  ;;  %2666 = vpow2.f32 %v2026_v37  ;;  %v541_v43 = vmul.f32 %v2180_v14, %v2934_v2  ;;  %v542_v59 = vmul.f32 %v2181_v34, %v2934_v2 }
  0x5c   : > { %v2649_v62 = vpop.eup %2648  ;;  %2443 = vmatmul.mubr.msk.bf16.gmra.mrb[8].mxu0 %vm1122_vm0, %v1079_v46  ;;  %v1095_v1 = vpack.c.bf16 %v1053_v54, %v1052_v41  ;;  %v862_v26 = vadd.f32 1.0, %v2647_v25  ;;  %2668 = vpow2.f32 %v1995_v16  ;;  %v2120_v8 = vunpack.c.l.bf16 %v2343_v60 }
  0x5d   : > { %v2651_v47 = vpop.eup %2650  ;;  %v1023_v27 = vmul.f32 %v2649_v62, %v3106_v36  ;;  %2670 = vpow2.f32 %v1996_v21  ;;  %v3226_v4 = vadd.f32 %v2941_v11, %v541_v43  ;;  %v3229_v29 = vadd.f32 %v2941_v11, %v542_v59 }
  0x5e   : > { %v2653_v6 = vpop.eup %2652  ;;  %2475 = vmatmul.mubr.msk.bf16.gmra.mrb[8].mxu1 %vm1122_vm0, %v1095_v1  ;;  %v863_v28 = vadd.f32 1.0, %v2651_v47  ;;  %2672 = vrcp.f32 %v862_v26  ;;  %v2121_v63 = vunpack.c.h.bf16 %v2343_v60  ;;  %v511_v24 = vmul.f32 %v2120_v8, %v2934_v2  ;;  %v2345_v26 = vld [vmem:[%s2926_s17 + $0x60] sm:$0xff]  }
  0x5f   : > { %v2655_v30 = vpop.eup %2654  ;;  %v1080_v15 = vpack.c.bf16 %v1023_v27, %v1022_v57  ;;  %v832_v36 = vadd.f32 1.0, %v2653_v6  ;;  %v2027_v53 = vmul.f32 -1.442695, %v3226_v4  ;;  %v3236_v61 = vmul.f32 -1.442695, %v3229_v29  ;;  %v2360_v57 = vld [vmem:[%s2926_s17 + $0xd8] sm:$0xff]  }
  0x60   : > { %v2657_v45 = vpop.eup %2656  ;;  %2674 = vrcp.f32 %v863_v28  ;;  %v833_v31 = vadd.f32 1.0, %v2655_v30  ;;  %v512_v20 = vmul.f32 %v2121_v63, %v2934_v2  ;;  %v3240_v50 = vadd.f32 %v2941_v11, %v511_v24 }
  0x61   : > { %v2659_v19 = vpop.eup %2658  ;;  %2446 = vmatprep.mubr.msk.bf16.mxu0 %vm1122_vm0, %v1080_v15  ;;  %2676 = vrcp.f32 %v832_v36  ;;  %v864_v22 = vadd.f32 1.0, %v2657_v45  ;;  %v2184_v23 = vunpack.c.l.bf16 %v2359_v9  ;;  %v2185_v37 = vunpack.c.h.bf16 %v2359_v9 }
  0x62   : > { %v2661_v32 = vpop.eup %2660  ;;  %2678 = vrcp.f32 %v833_v31  ;;  %v865_v33 = vadd.f32 1.0, %v2659_v19  ;;  %v3245_v40 = vadd.f32 %v2941_v11, %v512_v20  ;;  %v1997_v12 = vmul.f32 -1.442695, %v3240_v50 }
  0x63   : > { %v2663_v49 = vpop.eup %2662  ;;  %2680 = vrcp.f32 %v864_v22  ;;  %v834_v5 = vadd.f32 1.0, %v2661_v32  ;;  %v543_v14 = vmul.f32 %v2184_v23, %v2934_v2  ;;  %v544_v38 = vmul.f32 %v2185_v37, %v2934_v2 }
  0x64   : > { %v2665_v39 = vpop.eup %2664  ;;  %2682 = vrcp.f32 %v865_v33  ;;  %v835_v35 = vadd.f32 1.0, %v2663_v49  ;;  %v1998_v0 = vmul.f32 -1.442695, %v3245_v40  ;;  %v2124_v41 = vunpack.c.l.bf16 %v2344_v56 }
  0x65   : > { %v2667_v16 = vpop.eup %2666  ;;  %2684 = vrcp.f32 %v834_v5  ;;  %v866_v34 = vadd.f32 1.0, %v2665_v39  ;;  %v3252_v60 = vadd.f32 %v2941_v11, %v543_v14  ;;  %v3255_v42 = vadd.f32 %v2941_v11, %v544_v38 }
  0x66   : > { %v2669_v46 = vpop.eup %2668  ;;  %2686 = vrcp.f32 %v835_v35  ;;  %v867_v54 = vadd.f32 1.0, %v2667_v16  ;;  %v2125_v21 = vunpack.c.h.bf16 %v2344_v56  ;;  %v513_v25 = vmul.f32 %v2124_v41, %v2934_v2 }
  0x67   : > { %v2671_v43 = vpop.eup %2670  ;;  %2688 = vrcp.f32 %v866_v34  ;;  %v836_v59 = vadd.f32 1.0, %v2669_v46  ;;  %v2029_v62 = vmul.f32 -1.442695, %v3252_v60  ;;  %v2030_v1 = vmul.f32 -1.442695, %v3255_v42 }
  0x68   : > { %v2673_v8 = vpop.eup %2672  ;;  %2690 = vrcp.f32 %v867_v54  ;;  %v837_v47 = vadd.f32 1.0, %v2671_v43  ;;  %v514_v27 = vmul.f32 %v2125_v21, %v2934_v2  ;;  %v3264_v6 = vadd.f32 %v2941_v11, %v513_v25 }
  0x69   : > { %v1054_v28 = vmul.f32 %v2673_v8, %v3124_v52  ;;  %2692 = vrcp.f32 %v836_v59  ;;  %v2188_v63 = vunpack.c.l.bf16 %v2360_v57  ;;  %v2189_v24 = vunpack.c.h.bf16 %v2360_v57  ;;  %v2346_v59 = vld [vmem:[%s2926_s17 + $0x68] sm:$0xff]  }
  0x6a   : > { %v2675_v9 = vpop.eup %2674  ;;  %2694 = vrcp.f32 %v837_v47  ;;  %v3268_v30 = vadd.f32 %v2941_v11, %v514_v27  ;;  %v1999_v15 = vmul.f32 -1.442695, %v3264_v6  ;;  %v2128_v36 = vunpack.c.l.bf16 %v2345_v26 }
  0x6b   : > { %v2677_v45 = vpop.eup %2676  ;;  %v1055_v31 = vmul.f32 %v2675_v9, %v3127_v44  ;;  %2696 = vpow2.f32 %v2027_v53  ;;  %v545_v20 = vmul.f32 %v2188_v63, %v2934_v2  ;;  %v546_v19 = vmul.f32 %v2189_v24, %v2934_v2 }
  0x6c   : > { %v2679_v52 = vpop.eup %2678  ;;  %v1024_v22 = vmul.f32 %v2677_v45, %v3144_v3  ;;  %2698 = vpow2.f32 %v3236_v61  ;;  %v2000_v23 = vmul.f32 -1.442695, %v3268_v30  ;;  %v2129_v37 = vunpack.c.h.bf16 %v2345_v26 }
  0x6d   : > { %v2681_v56 = vpop.eup %2680  ;;  %v1096_v32 = vpack.c.bf16 %v1055_v31, %v1054_v28  ;;  %v1025_v33 = vmul.f32 %v2679_v52, %v3147_v7  ;;  %2700 = vpow2.f32 %v1997_v12  ;;  %v3279_v44 = vadd.f32 %v2941_v11, %v545_v20  ;;  %v2361_v12 = vld [vmem:[%s2926_s17 + $0xe0] sm:$0xff]  }
  0x6e   : > { %v2683_v53 = vpop.eup %2682  ;;  %v1056_v49 = vmul.f32 %v2681_v56, %v3159_v17  ;;  %2702 = vpow2.f32 %v1998_v0  ;;  %v3283_v3 = vadd.f32 %v2941_v11, %v546_v19  ;;  %v515_v61 = vmul.f32 %v2128_v36, %v2934_v2  ;;  %v3317_v19 = vld [vmem:[%s2931_s20] ss:$0 sm:$0xff] }
  0x6f   : > { %v2685_v5 = vpop.eup %2684  ;;  %2478 = vmatprep.mubr.msk.bf16.mxu1 %vm1122_vm0, %v1096_v32  ;;  %v1081_v14 = vpack.c.bf16 %v1025_v33, %v1024_v22  ;;  %v1057_v38 = vmul.f32 %v2683_v53, %v3162_v18  ;;  %2704 = vpow2.f32 %v2029_v62  ;;  %v2031_v7 = vmul.f32 -1.442695, %v3279_v44  ;;  %v3323_v22 = vld [vmem:[%s2916_s12] ss:$0 sm:$0xff] }
  0x70   : > { %v2687_v39 = vpop.eup %2686  ;;  %v1026_v35 = vmul.f32 %v2685_v5, %v3170_v48  ;;  %2706 = vpow2.f32 %v2030_v1  ;;  %v2032_v17 = vmul.f32 -1.442695, %v3283_v3  ;;  %v516_v0 = vmul.f32 %v2129_v37, %v2934_v2 }
  0x71   : > { %v2689_v41 = vpop.eup %2688  ;;  %2447 = vmatmul.mubr.msk.bf16.gmra.mrb[12].mxu0 %vm1122_vm0, %v1081_v14  ;;  %v1097_v16 = vpack.c.bf16 %v1057_v38, %v1056_v49  ;;  %v1027_v34 = vmul.f32 %v2687_v39, %v3174_v58  ;;  %2708 = vpow2.f32 %v1999_v15  ;;  %v3296_v18 = vadd.f32 %v2941_v11, %v515_v61 }
  0x72   : > { %v2691_v46 = vpop.eup %2690  ;;  %v1058_v54 = vmul.f32 %v2689_v41, %v3186_v10  ;;  %2710 = vpow2.f32 %v2000_v23  ;;  %v3300_v48 = vadd.f32 %v2941_v11, %v516_v0  ;;  %v2192_v21 = vunpack.c.l.bf16 %v2361_v12  ;;  %v2362_v23 = vld [vmem:[%s2926_s17 + $0xe8] sm:$0xff]  }
  0x73   : > { %v2693_v25 = vpop.eup %2692  ;;  %2479 = vmatmul.mubr.msk.bf16.gmra.mrb[12].mxu1 %vm1122_vm0, %v1097_v16  ;;  %v1082_v57 = vpack.c.bf16 %v1027_v34, %v1026_v35  ;;  %v1059_v43 = vmul.f32 %v2691_v46, %v3189_v13  ;;  %2712 = vpow2.f32 %v2031_v7  ;;  %v2001_v58 = vmul.f32 -1.442695, %v3296_v18 }
  0x74   : > { %v2695_v62 = vpop.eup %2694  ;;  %v1028_v1 = vmul.f32 %v2693_v25, %v3207_v51  ;;  %2714 = vpow2.f32 %v2032_v17  ;;  %v2002_v10 = vmul.f32 -1.442695, %v3300_v48  ;;  %v2193_v26 = vunpack.c.h.bf16 %v2361_v12  ;;  %v2347_v12 = vld [vmem:[%s2926_s17 + $0x70] sm:$0xff]  }
  0x75   : > { %v2697_v8 = vpop.eup %2696  ;;  %2450 = vmatprep.mubr.msk.bf16.mxu0 %vm1122_vm0, %v1082_v57  ;;  %v1098_v47 = vpack.c.bf16 %v1059_v43, %v1058_v54  ;;  %v1029_v27 = vmul.f32 %v2695_v62, %v3212_v55  ;;  %2716 = vpow2.f32 %v2001_v58  ;;  %v547_v13 = vmul.f32 %v2192_v21, %v2934_v2 }
  0x76   : > { %v2699_v28 = vpop.eup %2698  ;;  %v868_v63 = vadd.f32 1.0, %v2697_v8  ;;  %2718 = vpow2.f32 %v2002_v10  ;;  %v548_v51 = vmul.f32 %v2193_v26, %v2934_v2  ;;  %v2132_v24 = vunpack.c.l.bf16 %v2346_v59 }
  0x77   : > { %v2701_v9 = vpop.eup %2700  ;;  %2482 = vmatprep.mubr.msk.bf16.mxu1 %vm1122_vm0, %v1098_v47  ;;  %v1083_v15 = vpack.c.bf16 %v1029_v27, %v1028_v1  ;;  %v869_v36 = vadd.f32 1.0, %v2699_v28  ;;  %v3314_v45 = vadd.f32 %v2941_v11, %v547_v13  ;;  %v2133_v55 = vunpack.c.h.bf16 %v2346_v59  ;;  %v2363_v1 = vld [vmem:[%s2926_s17 + $0xf0] sm:$0xff]  }
  0x78   : > { %v2703_v31 = vpop.eup %2702  ;;  %2720 = vrcp.f32 %v868_v63  ;;  %v838_v20 = vadd.f32 1.0, %v2701_v9  ;;  %v3320_v52 = vadd.f32 %v3317_v19, %v548_v51  ;;  %v517_v2 = vmul.f32 %v3323_v22, %v2132_v24 }
  0x79   : > { %v2705_v37 = vpop.eup %2704  ;;  %2451 = vmatmul.mubr.msk.bf16.gmra.mrb[16].mxu0 %vm1122_vm0, %v1083_v15  ;;  %2722 = vrcp.f32 %v869_v36  ;;  %v839_v11 = vadd.f32 1.0, %v2703_v31  ;;  %v2033_v56 = vmul.f32 -1.442695, %v3314_v45  ;;  %v518_v32 = vmul.f32 %v3323_v22, %v2133_v55 }
  0x7a   : > { %v2707_v33 = vpop.eup %2706  ;;  %2724 = vrcp.f32 %v838_v20  ;;  %v870_v53 = vadd.f32 1.0, %v2705_v37  ;;  %v2034_v49 = vmul.f32 -1.442695, %v3320_v52  ;;  %v3332_v61 = vadd.f32 %v3317_v19, %v517_v2 }
  0x7b   : > { %v2709_v5 = vpop.eup %2708  ;;  %2726 = vrcp.f32 %v839_v11  ;;  %v871_v14 = vadd.f32 1.0, %v2707_v33  ;;  %v3335_v38 = vadd.f32 %v3317_v19, %v518_v32  ;;  %v2196_v7 = vunpack.c.l.bf16 %v2362_v23  ;;  %v2348_v11 = vld [vmem:[%s2926_s17 + $0x78] sm:$0xff]  }
  0x7c   : > { %v2711_v39 = vpop.eup %2710  ;;  %2728 = vrcp.f32 %v870_v53  ;;  %v840_v35 = vadd.f32 1.0, %v2709_v5  ;;  %v2003_v17 = vmul.f32 -1.442695, %v3332_v61  ;;  %v2197_v0 = vunpack.c.h.bf16 %v2362_v23 }
  0x7d   : > { %v2713_v41 = vpop.eup %2712  ;;  %2730 = vrcp.f32 %v871_v14  ;;  %v841_v16 = vadd.f32 1.0, %v2711_v39  ;;  %v2004_v34 = vmul.f32 -1.442695, %v3335_v38  ;;  %v549_v46 = vmul.f32 %v3323_v22, %v2196_v7 }
  0x7e   : > { %v2715_v54 = vpop.eup %2714  ;;  %2732 = vrcp.f32 %v840_v35  ;;  %v872_v21 = vadd.f32 1.0, %v2713_v41  ;;  %v550_v25 = vmul.f32 %v3323_v22, %v2197_v0  ;;  %v2136_v57 = vunpack.c.l.bf16 %v2347_v12 }
  0x7f   : > { %v2717_v43 = vpop.eup %2716  ;;  %2734 = vrcp.f32 %v841_v16  ;;  %v873_v58 = vadd.f32 1.0, %v2715_v54  ;;  %v3343_v59 = vadd.f32 %v3317_v19, %v549_v46  ;;  %v2137_v62 = vunpack.c.h.bf16 %v2347_v12 }
  0x80   : > { %v2719_v10 = vpop.eup %2718  ;;  %2736 = vrcp.f32 %v872_v21  ;;  %v842_v26 = vadd.f32 1.0, %v2717_v43  ;;  %v3347_v8 = vadd.f32 %v3317_v19, %v550_v25  ;;  %v519_v47 = vmul.f32 %v3323_v22, %v2136_v57 }
  0x81   : > { %2738 = vrcp.f32 %v873_v58  ;;  %v843_v27 = vadd.f32 1.0, %v2719_v10  ;;  %v2035_v13 = vmul.f32 -1.442695, %v3343_v59  ;;  %v520_v28 = vmul.f32 %v3323_v22, %v2137_v62 }
  0x82   : > { %v2721_v63 = vpop.eup %2720  ;;  %2740 = vrcp.f32 %v842_v26  ;;  %v2036_v51 = vmul.f32 -1.442695, %v3347_v8  ;;  %v3354_v24 = vadd.f32 %v3317_v19, %v519_v47  ;;  %v2200_v9 = vunpack.c.l.bf16 %v2363_v1 }
  0x83   : > { %v2723_v15 = vpop.eup %2722  ;;  %v1060_v36 = vmul.f32 %v2721_v63, %v3226_v4  ;;  %2742 = vrcp.f32 %v843_v27  ;;  %v3358_v55 = vadd.f32 %v3317_v19, %v520_v28  ;;  %v2201_v31 = vunpack.c.h.bf16 %v2363_v1 }
  0x84   : > { %v2725_v20 = vpop.eup %2724  ;;  %v1061_v2 = vmul.f32 %v2723_v15, %v3229_v29  ;;  %2744 = vpow2.f32 %v2033_v56  ;;  %v2005_v23 = vmul.f32 -1.442695, %v3354_v24  ;;  %v551_v37 = vmul.f32 %v3323_v22, %v2200_v9 }
  0x85   : > { %v2727_v32 = vpop.eup %2726  ;;  %v1030_v33 = vmul.f32 %v2725_v20, %v3240_v50  ;;  %2746 = vpow2.f32 %v2034_v49  ;;  %v2006_v4 = vmul.f32 -1.442695, %v3358_v55  ;;  %v552_v53 = vmul.f32 %v3323_v22, %v2201_v31 }
  0x86   : > { %v2729_v5 = vpop.eup %2728  ;;  %v1099_v14 = vpack.c.bf16 %v1061_v2, %v1060_v36  ;;  %v1031_v7 = vmul.f32 %v2727_v32, %v3245_v40  ;;  %2748 = vpow2.f32 %v2003_v17  ;;  %v3369_v29 = vadd.f32 %v3317_v19, %v551_v37  ;;  %v2364_v17 = vld [vmem:[%s2926_s17 + $0xf8] sm:$0xff]  }
  0x87   : > { %v2731_v56 = vpop.eup %2730  ;;  %v1062_v12 = vmul.f32 %v2729_v5, %v3252_v60  ;;  %2750 = vpow2.f32 %v2004_v34  ;;  %v3373_v50 = vadd.f32 %v3317_v19, %v552_v53  ;;  %v2140_v49 = vunpack.c.l.bf16 %v2348_v11 }
  0x88   : > { %v2733_v39 = vpop.eup %2732  ;;  %2483 = vmatmul.mubr.msk.bf16.gmra.mrb[16].mxu1 %vm1122_vm0, %v1099_v14  ;;  %v1084_v35 = vpack.c.bf16 %v1031_v7, %v1030_v33  ;;  %v1063_v0 = vmul.f32 %v2731_v56, %v3255_v42  ;;  %2752 = vpow2.f32 %v2035_v13  ;;  %v2037_v40 = vmul.f32 -1.442695, %v3369_v29 }
  0x89   : > { %v2735_v41 = vpop.eup %2734  ;;  %v1032_v16 = vmul.f32 %v2733_v39, %v3264_v6  ;;  %2754 = vpow2.f32 %v2036_v51  ;;  %v2038_v60 = vmul.f32 -1.442695, %v3373_v50  ;;  %v521_v21 = vmul.f32 %v3323_v22, %v2140_v49 }
  0x8a   : > { %v2737_v34 = vpop.eup %2736  ;;  %2454 = vmatprep.mubr.msk.bf16.mxu0 %vm1122_vm0, %v1084_v35  ;;  %v1100_v46 = vpack.c.bf16 %v1063_v0, %v1062_v12  ;;  %v1033_v54 = vmul.f32 %v2735_v41, %v3268_v30  ;;  %2756 = vpow2.f32 %v2005_v23  ;;  %v2141_v57 = vunpack.c.h.bf16 %v2348_v11 }
  0x8b   : > { %v2739_v42 = vpop.eup %2738  ;;  %v1064_v25 = vmul.f32 %v2737_v34, %v3279_v44  ;;  %2758 = vpow2.f32 %v2006_v4  ;;  %v2204_v43 = vunpack.c.l.bf16 %v2364_v17  ;;  %v3388_v1 = vadd.f32 %v3317_v19, %v521_v21 }
  0x8c   : > { %v2741_v58 = vpop.eup %2740  ;;  %2486 = vmatprep.mubr.msk.bf16.mxu1 %vm1122_vm0, %v1100_v46  ;;  %v1085_v6 = vpack.c.bf16 %v1033_v54, %v1032_v16  ;;  %v1065_v62 = vmul.f32 %v2739_v42, %v3283_v3  ;;  %2760 = vpow2.f32 %v2037_v40  ;;  %v2205_v13 = vunpack.c.h.bf16 %v2364_v17 }
  0x8d   : > { %v2743_v30 = vpop.eup %2742  ;;  %v1034_v10 = vmul.f32 %v2741_v58, %v3296_v18  ;;  %2762 = vpow2.f32 %v2038_v60  ;;  %v2007_v27 = vmul.f32 -1.442695, %v3388_v1  ;;  %v522_v3 = vmul.f32 %v3323_v22, %v2141_v57 }
  0x8e   : > { %v2745_v26 = vpop.eup %2744  ;;  %2455 = vmatmul.mubr.msk.bf16.gmra.mrb[20].mxu0 %vm1122_vm0, %v1085_v6  ;;  %v1101_v44 = vpack.c.bf16 %v1065_v62, %v1064_v25  ;;  %v1035_v47 = vmul.f32 %v2743_v30, %v3300_v48  ;;  %v553_v18 = vmul.f32 %v3323_v22, %v2204_v43  ;;  %v554_v2 = vmul.f32 %v3323_v22, %v2205_v13 }
  0x8f   : > { %v2747_v28 = vpop.eup %2746  ;;  %v874_v63 = vadd.f32 1.0, %v2745_v26  ;;  %2764 = vpow2.f32 %v2007_v27  ;;  %v3400_v11 = vadd.f32 %v3317_v19, %v522_v3 }
  0x90   : > { %v2749_v51 = vpop.eup %2748  ;;  %2487 = vmatmul.mubr.msk.bf16.gmra.mrb[20].mxu1 %vm1122_vm0, %v1101_v44  ;;  %v1086_v9 = vpack.c.bf16 %v1035_v47, %v1034_v10  ;;  %v875_v15 = vadd.f32 1.0, %v2747_v28  ;;  %v3403_v4 = vadd.f32 %v3317_v19, %v553_v18  ;;  %v3406_v22 = vadd.f32 %v3317_v19, %v554_v2 }
  0x91   : > { %v2751_v36 = vpop.eup %2750  ;;  %2766 = vrcp.f32 %v874_v63  ;;  %v844_v31 = vadd.f32 1.0, %v2749_v51  ;;  %v2008_v49 = vmul.f32 -1.442695, %v3400_v11 }
  0x92   : > { %v2753_v20 = vpop.eup %2752  ;;  %2458 = vmatprep.mubr.msk.bf16.mxu0 %vm1122_vm0, %v1086_v9  ;;  %2768 = vrcp.f32 %v875_v15  ;;  %v845_v48 = vadd.f32 1.0, %v2751_v36  ;;  %v2039_v35 = vmul.f32 -1.442695, %v3403_v4  ;;  %v2040_v40 = vmul.f32 -1.442695, %v3406_v22 }
  0x93   : > { %v2755_v23 = vpop.eup %2754  ;;  %2770 = vrcp.f32 %v844_v31  ;;  %v876_v37 = vadd.f32 1.0, %v2753_v20  ;;  %v2207_v20 = vld [vmem:[%s3437_s28] sm:$0xff]  }
  0x94   : > { %v2757_v32 = vpop.eup %2756  ;;  %2772 = vrcp.f32 %v845_v48  ;;  %v877_v33 = vadd.f32 1.0, %v2755_v23  ;;  %v2381_v48 = vld [vmem:[%s3437_s28 + $0x88] sm:$0xff]   ;;  %v2380_v23 = vld [vmem:[%s3437_s28 + $0x80] sm:$0xff]  }
  0x95   : > { %v2759_v53 = vpop.eup %2758  ;;  %2774 = vrcp.f32 %v876_v37  ;;  %v846_v5 = vadd.f32 1.0, %v2757_v32  ;;  %v2208_v37 = vunpack.c.l.bf16 %v2207_v20 }
  0x96   : > { %v2761_v14 = vpop.eup %2760  ;;  %2776 = vrcp.f32 %v877_v33  ;;  %v847_v7 = vadd.f32 1.0, %v2759_v53  ;;  %v2272_v53 = vunpack.c.l.bf16 %v2380_v23 }
  0x97   : > { %v2763_v56 = vpop.eup %2762  ;;  %2778 = vrcp.f32 %v846_v5  ;;  %v878_v12 = vadd.f32 1.0, %v2761_v14  ;;  %v2209_v5 = vunpack.c.h.bf16 %v2207_v20 }
  0x98   : > { %2780 = vrcp.f32 %v847_v7  ;;  %v879_v39 = vadd.f32 1.0, %v2763_v56 }
  0x99   : > { %2782 = vrcp.f32 %v878_v12  ;;  %v2765_v0 = vpop.eup %2764 }
  0x9a   : > { %2784 = vrcp.f32 %v879_v39  ;;  %v848_v43 = vadd.f32 1.0, %v2765_v0  ;;  %v2273_v39 = vunpack.c.h.bf16 %v2380_v23 }
  0x9b   : > { %v2767_v17 = vpop.eup %2766  ;;  %2786 = vpow2.f32 %v2008_v49 }
  0x9c   : > { %v2769_v41 = vpop.eup %2768  ;;  %v1066_v19 = vmul.f32 %v2767_v17, %v3314_v45  ;;  %2788 = vpow2.f32 %v2039_v35 }
  0x9d   : > { %v2771_v16 = vpop.eup %2770  ;;  %v1067_v60 = vmul.f32 %v2769_v41, %v3320_v52  ;;  %2790 = vpow2.f32 %v2040_v40 }
  0x9e   : > { %v2773_v34 = vpop.eup %2772  ;;  %v1036_v46 = vmul.f32 %v2771_v16, %v3332_v61  ;;  %2792 = vrcp.f32 %v848_v43 }
  0x9f   : > { %v2775_v54 = vpop.eup %2774  ;;  %v1102_v21 = vpack.c.bf16 %v1067_v60, %v1066_v19  ;;  %v1037_v42 = vmul.f32 %v2773_v34, %v3335_v38 }
  0xa0   : > { %v2777_v25 = vpop.eup %2776  ;;  %v1068_v57 = vmul.f32 %v2775_v54, %v3343_v59 }
  0xa1   : > { %v2779_v58 = vpop.eup %2778  ;;  %2490 = vmatprep.mubr.msk.bf16.mxu1 %vm1122_vm0, %v1102_v21  ;;  %v1087_v45 = vpack.c.bf16 %v1037_v42, %v1036_v46  ;;  %v1069_v6 = vmul.f32 %v2777_v25, %v3347_v8 }
  0xa2   : > { %v2781_v62 = vpop.eup %2780  ;;  %v1038_v52 = vmul.f32 %v2779_v58, %v3354_v24 }
  0xa3   : > { %v2783_v30 = vpop.eup %2782  ;;  %2459 = vmatmul.mubr.msk.bf16.gmra.mrb[24].mxu0 %vm1122_vm0, %v1087_v45  ;;  %v1103_v61 = vpack.c.bf16 %v1069_v6, %v1068_v57  ;;  %v1039_v10 = vmul.f32 %v2781_v62, %v3358_v55  ;;  %v2367_v6 = vld [vmem:[%s3437_s28 + $0x18] sm:$0xff]   ;;  %v2366_v62 = vld [vmem:[%s3437_s28 + $0x10] sm:$0xff]  }
  0xa4   : > { %v2785_v38 = vpop.eup %2784  ;;  %v1070_v26 = vmul.f32 %v2783_v30, %v3369_v29  ;;  %v2383_v30 = vld [vmem:[%s3437_s28 + $0x98] sm:$0xff]  }
  0xa5   : > { %v2787_v59 = vpop.eup %2786  ;;  %2491 = vmatmul.mubr.msk.bf16.gmra.mrb[24].mxu1 %vm1122_vm0, %v1103_v61  ;;  %v1088_v44 = vpack.c.bf16 %v1039_v10, %v1038_v52  ;;  %v1071_v47 = vmul.f32 %v2785_v38, %v3373_v50  ;;  %v2220_v52 = vunpack.c.l.bf16 %v2367_v6  ;;  %v2216_v61 = vunpack.c.l.bf16 %v2366_v62  ;;  %v2382_v10 = vld [vmem:[%s3437_s28 + $0x90] sm:$0xff]  }
  0xa6   : > { %v2789_v8 = vpop.eup %2788  ;;  %v849_v27 = vadd.f32 1.0, %v2787_v59  ;;  %v2221_v38 = vunpack.c.h.bf16 %v2367_v6  ;;  %v2284_v59 = vunpack.c.l.bf16 %v2383_v30 }
  0xa7   : > { %2462 = vmatprep.mubr.msk.bf16.mxu0 %vm1122_vm0, %v1088_v44  ;;  %v1104_v24 = vpack.c.bf16 %v1071_v47, %v1070_v26  ;;  %v880_v13 = vadd.f32 1.0, %v2789_v8  ;;  %v2791_v28 = vpop.eup %2790  ;;  %v2217_v44 = vunpack.c.h.bf16 %v2366_v62 }
  0xa8   : > { %2794 = vrcp.f32 %v849_v27  ;;  %v881_v55 = vadd.f32 1.0, %v2791_v28  ;;  %v2793_v29 = vpop.eup %2792  ;;  %v2280_v27 = vunpack.c.l.bf16 %v2382_v10  ;;  %v2285_v28 = vunpack.c.h.bf16 %v2383_v30 }
  0xa9   : > { %2494 = vmatprep.mubr.msk.bf16.mxu1 %vm1122_vm0, %v1104_v24  ;;  %2796 = vrcp.f32 %v880_v13  ;;  %v1040_v63 = vmul.f32 %v2793_v29, %v3388_v1  ;;  %v2365_v1 = vld [vmem:[%s3437_s28 + $0x8] sm:$0xff]  }
  0xaa   : > { %2798 = vrcp.f32 %v881_v55  ;;  %v2212_v2 = vunpack.c.l.bf16 %v2365_v1  ;;  %v2213_v32 = vunpack.c.h.bf16 %v2365_v1 }
  0xb2   : > { %v2795_v3 = vpop.eup %2794 }
  0xb3   : > { %v2797_v51 = vpop.eup %2796  ;;  %v1041_v50 = vmul.f32 %v2795_v3, %v3400_v11  ;;  %v2276_v11 = vunpack.c.l.bf16 %v2381_v48 }
  0xb4   : > { %v1072_v9 = vmul.f32 %v2797_v51, %v3403_v4  ;;  %v2799_v15 = vpop.eup %2798  ;;  %v3447_v4 = vld [vmem:[%s3694_s5] ss:$0 sm:$0xff]  ;;  %v2281_v51 = vunpack.c.h.bf16 %v2382_v10 }
  0xb5   : > { %v1089_v18 = vpack.c.bf16 %v1041_v50, %v1040_v63  ;;  %v1073_v36 = vmul.f32 %v2799_v15, %v3406_v22  ;;  %v2277_v22 = vunpack.c.h.bf16 %v2381_v48  ;;  %v2369_v50 = vld [vmem:[%s3437_s28 + $0x28] sm:$0xff]  }
  0xb7   : > { %2463 = vmatmul.mubr.msk.bf16.gmra.mrb[28].mxu0 %vm1122_vm0, %v1089_v18  ;;  %v1105_v31 = vpack.c.bf16 %v1073_v36, %v1072_v9 }
  0xb9   : > { %2495 = vmatmul.mubr.msk.bf16.gmra.mrb[28].mxu1 %vm1122_vm0, %v1105_v31  ;;  %v2368_v31 = vld [vmem:[%s3437_s28 + $0x20] sm:$0xff]  }
 0x112   : > { %v2436_v33 = vpop.f32.mrb[0].mxu0 }
 0x113   : > { %v1638_v14 = vadd.f32 %v2436_v33, %v2212_v2  ;;  %v1253_v7 = vpop.f32.mrb[1].mxu0  ;;  %v2385_v2 = vld [vmem:[%s3437_s28 + $0xa8] sm:$0xff]   ;;  %v2228_v33 = vunpack.c.l.bf16 %v2369_v50 }
 0x114   : > { %v2468_v56 = vpop.f32.mrb[0].mxu1  ;;  %v1636_v12 = vadd.f32 %v2208_v37, %v1253_v7  ;;  %v2437_v49 = vpop.f32.mrb[2].mxu0  ;;  %v2224_v7 = vunpack.c.l.bf16 %v2368_v31 }
 0x115   : > { %v1709_v35 = vadd.f32 %v3447_v4, %v1638_v14  ;;  %v1670_v0 = vadd.f32 %v2468_v56, %v2276_v11  ;;  %v1381_v40 = vpop.f32.mrb[1].mxu1  ;;  %v1639_v17 = vadd.f32 %v2437_v49, %v2213_v32  ;;  %v1256_v41 = vpop.f32.mrb[3].mxu0  ;;  %v2292_v56 = vunpack.c.l.bf16 %v2385_v2 }
 0x116   : > { %v1707_v19 = vadd.f32 %v3447_v4, %v1636_v12  ;;  %v1668_v16 = vadd.f32 %v2272_v53, %v1381_v40  ;;  %v2469_v60 = vpop.f32.mrb[2].mxu1  ;;  %v1637_v34 = vadd.f32 %v2209_v5, %v1256_v41  ;;  %v2384_v53 = vld [vmem:[%s3437_s28 + $0xa0] sm:$0xff]   ;;  %v2229_v12 = vunpack.c.h.bf16 %v2369_v50 }
 0x117   : > { %1773 = vst.msk [vmem:[%s3452_s10 + $0x10] sm:$0xff] %vm1122_vm0, %v1709_v35  ;;  %v1741_v46 = vadd.f32 %v3447_v4, %v1670_v0  ;;  %v1710_v54 = vadd.f32 %v3447_v4, %v1639_v17  ;;  %v1671_v21 = vadd.f32 %v2469_v60, %v2277_v22  ;;  %v1384_v42 = vpop.f32.mrb[3].mxu1  ;;  %v2288_v35 = vunpack.c.l.bf16 %v2384_v53 }
 0x118   : > { %1771 = vst.msk [vmem:[%s3452_s10] sm:$0xff] %vm1122_vm0, %v1707_v19  ;;  %v1739_v25 = vadd.f32 %v3447_v4, %v1668_v16  ;;  %v1708_v57 = vadd.f32 %v3447_v4, %v1637_v34  ;;  %v1669_v43 = vadd.f32 %v2273_v39, %v1384_v42  ;;  %v2225_v0 = vunpack.c.h.bf16 %v2368_v31 }
 0x119   : > { %1805 = vst.msk [vmem:[%s3452_s10 + $0x110] sm:$0xff] %vm1122_vm0, %v1741_v46  ;;  %1774 = vst.msk [vmem:[%s3452_s10 + $0x18] sm:$0xff] %vm1122_vm0, %v1710_v54  ;;  %v1742_v58 = vadd.f32 %v3447_v4, %v1671_v21  ;;  %v2293_v41 = vunpack.c.h.bf16 %v2385_v2  ;;  %v2289_v34 = vunpack.c.h.bf16 %v2384_v53 }
 0x11a   : > { %1803 = vst.msk [vmem:[%s3452_s10 + $0x100] sm:$0xff] %vm1122_vm0, %v1739_v25  ;;  %1772 = vst.msk [vmem:[%s3452_s10 + $0x8] sm:$0xff] %vm1122_vm0, %v1708_v57  ;;  %v1740_v45 = vadd.f32 %v3447_v4, %v1669_v43 }
 0x11b   : > { %1806 = vst.msk [vmem:[%s3452_s10 + $0x118] sm:$0xff] %vm1122_vm0, %v1742_v58 }
 0x11c   : > { %1804 = vst.msk [vmem:[%s3452_s10 + $0x108] sm:$0xff] %vm1122_vm0, %v1740_v45 }
 0x126   : > { %v2440_v26 = vpop.f32.mrb[4].mxu0 }
 0x127   : > { %v1642_v47 = vadd.f32 %v2440_v26, %v2220_v52  ;;  %v1269_v8 = vpop.f32.mrb[5].mxu0 }
 0x128   : > { %v1640_v24 = vadd.f32 %v2216_v61, %v1269_v8  ;;  %v2441_v13 = vpop.f32.mrb[6].mxu0  ;;  %v2387_v8 = vld [vmem:[%s3437_s28 + $0xb8] sm:$0xff]  }
 0x129   : > { %v1713_v55 = vadd.f32 %v3447_v4, %v1642_v47  ;;  %v2472_v29 = vpop.f32.mrb[4].mxu1  ;;  %v1643_v63 = vadd.f32 %v2441_v13, %v2221_v38  ;;  %v1272_v3 = vpop.f32.mrb[7].mxu0  ;;  %v2370_v47 = vld [vmem:[%s3437_s28 + $0x30] sm:$0xff]  }
 0x12a   : > { %v1674_v9 = vadd.f32 %v2472_v29, %v2284_v59  ;;  %v1711_v15 = vadd.f32 %v3447_v4, %v1640_v24  ;;  %v1397_v18 = vpop.f32.mrb[5].mxu1  ;;  %v1641_v36 = vadd.f32 %v2217_v44, %v1272_v3  ;;  %v2371_v44 = vld [vmem:[%s3437_s28 + $0x38] sm:$0xff]   ;;  %v2386_v24 = vld [vmem:[%s3437_s28 + $0xb0] sm:$0xff]   ;;  %v2232_v13 = vunpack.c.l.bf16 %v2370_v47 }
 0x12b   : > { %1777 = vst.msk [vmem:[%s3452_s10 + $0x30] sm:$0xff] %vm1122_vm0, %v1713_v55  ;;  %v1672_v1 = vadd.f32 %v2280_v27, %v1397_v18  ;;  %v1714_v20 = vadd.f32 %v3447_v4, %v1643_v63  ;;  %v2473_v48 = vpop.f32.mrb[6].mxu1  ;;  %v2236_v27 = vunpack.c.l.bf16 %v2371_v44  ;;  %v2237_v55 = vunpack.c.h.bf16 %v2371_v44 }
 0x12c   : > { %v1745_v23 = vadd.f32 %v3447_v4, %v1674_v9  ;;  %1775 = vst.msk [vmem:[%s3452_s10 + $0x20] sm:$0xff] %vm1122_vm0, %v1711_v15  ;;  %v1675_v37 = vadd.f32 %v2473_v48, %v2285_v28  ;;  %v1712_v11 = vadd.f32 %v3447_v4, %v1641_v36  ;;  %v1400_v32 = vpop.f32.mrb[7].mxu1  ;;  %v2300_v28 = vunpack.c.l.bf16 %v2387_v8 }
 0x12d   : > { %v1743_v5 = vadd.f32 %v3447_v4, %v1672_v1  ;;  %1778 = vst.msk [vmem:[%s3452_s10 + $0x38] sm:$0xff] %vm1122_vm0, %v1714_v20  ;;  %v1673_v14 = vadd.f32 %v2281_v51, %v1400_v32  ;;  %v2296_v63 = vunpack.c.l.bf16 %v2386_v24  ;;  %v2233_v3 = vunpack.c.h.bf16 %v2370_v47  ;;  %v2373_v1 = vld [vmem:[%s3437_s28 + $0x48] sm:$0xff]   ;;  %v2374_v47 = vld [vmem:[%s3437_s28 + $0x50] sm:$0xff]  }
 0x12e   : > { %1809 = vst.msk [vmem:[%s3452_s10 + $0x130] sm:$0xff] %vm1122_vm0, %v1745_v23  ;;  %v1746_v22 = vadd.f32 %v3447_v4, %v1675_v37  ;;  %1776 = vst.msk [vmem:[%s3452_s10 + $0x28] sm:$0xff] %vm1122_vm0, %v1712_v11  ;;  %v2301_v9 = vunpack.c.h.bf16 %v2387_v8  ;;  %v2297_v31 = vunpack.c.h.bf16 %v2386_v24  ;;  %v2372_v11 = vld [vmem:[%s3437_s28 + $0x40] sm:$0xff]   ;;  %v2391_v24 = vld [vmem:[%s3437_s28 + $0xd8] sm:$0xff]  }
 0x12f   : > { %1807 = vst.msk [vmem:[%s3452_s10 + $0x120] sm:$0xff] %vm1122_vm0, %v1743_v5  ;;  %v1744_v49 = vadd.f32 %v3447_v4, %v1673_v14  ;;  %v2444_v39 = vpop.f32.mrb[8].mxu0 }
 0x130   : > { %1810 = vst.msk [vmem:[%s3452_s10 + $0x138] sm:$0xff] %vm1122_vm0, %v1746_v22  ;;  %v1646_v40 = vadd.f32 %v2444_v39, %v2228_v33  ;;  %v1285_v17 = vpop.f32.mrb[9].mxu0 }
 0x131   : > { %1808 = vst.msk [vmem:[%s3452_s10 + $0x128] sm:$0xff] %vm1122_vm0, %v1744_v49  ;;  %v2476_v19 = vpop.f32.mrb[8].mxu1  ;;  %v1644_v16 = vadd.f32 %v2224_v7, %v1285_v17  ;;  %v2445_v60 = vpop.f32.mrb[10].mxu0  ;;  %v2245_v17 = vunpack.c.h.bf16 %v2373_v1 }
 0x132   : > { %v1717_v46 = vadd.f32 %v3447_v4, %v1646_v40  ;;  %v1678_v54 = vadd.f32 %v2476_v19, %v2292_v56  ;;  %v1413_v21 = vpop.f32.mrb[9].mxu1  ;;  %v1647_v42 = vadd.f32 %v2445_v60, %v2229_v12  ;;  %v1288_v25 = vpop.f32.mrb[11].mxu0  ;;  %v2244_v12 = vunpack.c.l.bf16 %v2373_v1 }
 0x133   : > { %v1715_v57 = vadd.f32 %v3447_v4, %v1644_v16  ;;  %v1676_v43 = vadd.f32 %v2288_v35, %v1413_v21  ;;  %v2477_v58 = vpop.f32.mrb[10].mxu1  ;;  %v1645_v45 = vadd.f32 %v2225_v0, %v1288_v25  ;;  %v2240_v0 = vunpack.c.l.bf16 %v2372_v11 }
 0x134   : > { %1781 = vst.msk [vmem:[%s3452_s10 + $0x50] sm:$0xff] %vm1122_vm0, %v1717_v46  ;;  %v1749_v6 = vadd.f32 %v3447_v4, %v1678_v54  ;;  %v1718_v62 = vadd.f32 %v3447_v4, %v1647_v42  ;;  %v1679_v52 = vadd.f32 %v2477_v58, %v2293_v41  ;;  %v1416_v30 = vpop.f32.mrb[11].mxu1  ;;  %v2241_v16 = vunpack.c.h.bf16 %v2372_v11 }
 0x135   : > { %1779 = vst.msk [vmem:[%s3452_s10 + $0x40] sm:$0xff] %vm1122_vm0, %v1715_v57  ;;  %v1747_v61 = vadd.f32 %v3447_v4, %v1676_v43  ;;  %v1716_v10 = vadd.f32 %v3447_v4, %v1645_v45  ;;  %v1677_v38 = vadd.f32 %v2289_v34, %v1416_v30 }
 0x136   : > { %1813 = vst.msk [vmem:[%s3452_s10 + $0x150] sm:$0xff] %vm1122_vm0, %v1749_v6  ;;  %1782 = vst.msk [vmem:[%s3452_s10 + $0x58] sm:$0xff] %vm1122_vm0, %v1718_v62  ;;  %v1750_v26 = vadd.f32 %v3447_v4, %v1679_v52  ;;  %v2389_v6 = vld [vmem:[%s3437_s28 + $0xc8] sm:$0xff]   ;;  %v2388_v62 = vld [vmem:[%s3437_s28 + $0xc0] sm:$0xff]  }
 0x137   : > { %1811 = vst.msk [vmem:[%s3452_s10 + $0x140] sm:$0xff] %vm1122_vm0, %v1747_v61  ;;  %1780 = vst.msk [vmem:[%s3452_s10 + $0x48] sm:$0xff] %vm1122_vm0, %v1716_v10  ;;  %v1748_v59 = vadd.f32 %v3447_v4, %v1677_v38  ;;  %v2308_v52 = vunpack.c.l.bf16 %v2389_v6  ;;  %v2304_v30 = vunpack.c.l.bf16 %v2388_v62  ;;  %v2309_v61 = vunpack.c.h.bf16 %v2389_v6 }
 0x138   : > { %1814 = vst.msk [vmem:[%s3452_s10 + $0x158] sm:$0xff] %vm1122_vm0, %v1750_v26  ;;  %v2305_v38 = vunpack.c.h.bf16 %v2388_v62  ;;  %v2375_v26 = vld [vmem:[%s3437_s28 + $0x58] sm:$0xff]  }
 0x139   : > { %1812 = vst.msk [vmem:[%s3452_s10 + $0x148] sm:$0xff] %vm1122_vm0, %v1748_v59 }
 0x144   : > { %v2448_v29 = vpop.f32.mrb[12].mxu0 }
 0x145   : > { %v1650_v51 = vadd.f32 %v2448_v29, %v2236_v27  ;;  %v1301_v50 = vpop.f32.mrb[13].mxu0  ;;  %v2252_v29 = vunpack.c.l.bf16 %v2375_v26 }
 0x146   : > { %v2480_v15 = vpop.f32.mrb[12].mxu1  ;;  %v1648_v18 = vadd.f32 %v2232_v13, %v1301_v50  ;;  %v2449_v36 = vpop.f32.mrb[14].mxu0  ;;  %v2248_v50 = vunpack.c.l.bf16 %v2374_v47 }
 0x147   : > { %v1721_v20 = vadd.f32 %v3447_v4, %v1650_v51  ;;  %v1682_v48 = vadd.f32 %v2480_v15, %v2300_v28  ;;  %v1429_v2 = vpop.f32.mrb[13].mxu1  ;;  %v1651_v23 = vadd.f32 %v2449_v36, %v2237_v55  ;;  %v1304_v37 = vpop.f32.mrb[15].mxu0  ;;  %v2316_v15 = vunpack.c.l.bf16 %v2391_v24 }
 0x148   : > { %v1719_v32 = vadd.f32 %v3447_v4, %v1648_v18  ;;  %v1680_v33 = vadd.f32 %v2296_v63, %v1429_v2  ;;  %v2481_v53 = vpop.f32.mrb[14].mxu1  ;;  %v1649_v5 = vadd.f32 %v2233_v3, %v1304_v37  ;;  %v2390_v63 = vld [vmem:[%s3437_s28 + $0xd0] sm:$0xff]   ;;  %v2253_v18 = vunpack.c.h.bf16 %v2375_v26 }
 0x149   : > { %1785 = vst.msk [vmem:[%s3452_s10 + $0x70] sm:$0xff] %vm1122_vm0, %v1721_v20  ;;  %v1753_v14 = vadd.f32 %v3447_v4, %v1682_v48  ;;  %v1722_v7 = vadd.f32 %v3447_v4, %v1651_v23  ;;  %v1683_v22 = vadd.f32 %v2481_v53, %v2301_v9  ;;  %v1432_v56 = vpop.f32.mrb[15].mxu1  ;;  %v2312_v1 = vunpack.c.l.bf16 %v2390_v63 }
 0x14a   : > { %1783 = vst.msk [vmem:[%s3452_s10 + $0x60] sm:$0xff] %vm1122_vm0, %v1719_v32  ;;  %v1751_v49 = vadd.f32 %v3447_v4, %v1680_v33  ;;  %v1720_v39 = vadd.f32 %v3447_v4, %v1649_v5  ;;  %v1681_v35 = vadd.f32 %v2297_v31, %v1432_v56  ;;  %v2249_v20 = vunpack.c.h.bf16 %v2374_v47 }
 0x14b   : > { %1817 = vst.msk [vmem:[%s3452_s10 + $0x170] sm:$0xff] %vm1122_vm0, %v1753_v14  ;;  %1786 = vst.msk [vmem:[%s3452_s10 + $0x78] sm:$0xff] %vm1122_vm0, %v1722_v7  ;;  %v1754_v40 = vadd.f32 %v3447_v4, %v1683_v22  ;;  %v2317_v23 = vunpack.c.h.bf16 %v2391_v24  ;;  %v2313_v33 = vunpack.c.h.bf16 %v2390_v63 }
 0x14c   : > { %1815 = vst.msk [vmem:[%s3452_s10 + $0x160] sm:$0xff] %vm1122_vm0, %v1751_v49  ;;  %1784 = vst.msk [vmem:[%s3452_s10 + $0x68] sm:$0xff] %vm1122_vm0, %v1720_v39  ;;  %v1752_v41 = vadd.f32 %v3447_v4, %v1681_v35  ;;  %v2452_v19 = vpop.f32.mrb[16].mxu0 }
 0x14d   : > { %1818 = vst.msk [vmem:[%s3452_s10 + $0x178] sm:$0xff] %vm1122_vm0, %v1754_v40  ;;  %v1654_v60 = vadd.f32 %v2452_v19, %v2244_v12  ;;  %v1317_v34 = vpop.f32.mrb[17].mxu0 }
 0x14e   : > { %1816 = vst.msk [vmem:[%s3452_s10 + $0x168] sm:$0xff] %vm1122_vm0, %v1752_v41  ;;  %v1652_v46 = vadd.f32 %v2240_v0, %v1317_v34  ;;  %v2453_v54 = vpop.f32.mrb[18].mxu0 }
 0x14f   : > { %v1725_v21 = vadd.f32 %v3447_v4, %v1654_v60  ;;  %v1655_v42 = vadd.f32 %v2453_v54, %v2245_v17  ;;  %v1320_v25 = vpop.f32.mrb[19].mxu0  ;;  %v2376_v54 = vld [vmem:[%s3437_s28 + $0x60] sm:$0xff]  }
 0x150   : > { %v1723_v57 = vadd.f32 %v3447_v4, %v1652_v46  ;;  %v1653_v43 = vadd.f32 %v2241_v16, %v1320_v25  ;;  %v2377_v46 = vld [vmem:[%s3437_s28 + $0x68] sm:$0xff]   ;;  %v2392_v25 = vld [vmem:[%s3437_s28 + $0xe0] sm:$0xff]   ;;  %v2257_v62 = vunpack.c.h.bf16 %v2376_v54 }
 0x151   : > { %1789 = vst.msk [vmem:[%s3452_s10 + $0x90] sm:$0xff] %vm1122_vm0, %v1725_v21  ;;  %v1726_v58 = vadd.f32 %v3447_v4, %v1655_v42  ;;  %v2393_v21 = vld [vmem:[%s3437_s28 + $0xe8] sm:$0xff]   ;;  %v2260_v42 = vunpack.c.l.bf16 %v2377_v46  ;;  %v2320_v6 = vunpack.c.l.bf16 %v2392_v25 }
 0x152   : > { %1787 = vst.msk [vmem:[%s3452_s10 + $0x80] sm:$0xff] %vm1122_vm0, %v1723_v57  ;;  %v1724_v45 = vadd.f32 %v3447_v4, %v1653_v43  ;;  %v2256_v57 = vunpack.c.l.bf16 %v2376_v54  ;;  %v2324_v43 = vunpack.c.l.bf16 %v2393_v21 }
 0x153   : > { %1790 = vst.msk [vmem:[%s3452_s10 + $0x98] sm:$0xff] %vm1122_vm0, %v1726_v58  ;;  %v2261_v58 = vunpack.c.h.bf16 %v2377_v46 }
 0x154   : > { %1788 = vst.msk [vmem:[%s3452_s10 + $0x88] sm:$0xff] %vm1122_vm0, %v1724_v45 }
 0x15b   : > { %v2484_v10 = vpop.f32.mrb[16].mxu1 }
 0x15c   : > { %v1686_v59 = vadd.f32 %v2484_v10, %v2308_v52  ;;  %v1445_v44 = vpop.f32.mrb[17].mxu1 }
 0x15d   : > { %v1684_v8 = vadd.f32 %v2304_v30, %v1445_v44  ;;  %v2485_v27 = vpop.f32.mrb[18].mxu1 }
 0x15e   : > { %v1757_v13 = vadd.f32 %v3447_v4, %v1686_v59  ;;  %v1687_v28 = vadd.f32 %v2485_v27, %v2309_v61  ;;  %v1448_v55 = vpop.f32.mrb[19].mxu1  ;;  %v2325_v61 = vunpack.c.h.bf16 %v2393_v21  ;;  %v2321_v59 = vunpack.c.h.bf16 %v2392_v25 }
 0x15f   : > { %v1755_v3 = vadd.f32 %v3447_v4, %v1684_v8  ;;  %v1685_v51 = vadd.f32 %v2305_v38, %v1448_v55 }
 0x160   : > { %1821 = vst.msk [vmem:[%s3452_s10 + $0x190] sm:$0xff] %vm1122_vm0, %v1757_v13  ;;  %v1758_v9 = vadd.f32 %v3447_v4, %v1687_v28 }
 0x161   : > { %1819 = vst.msk [vmem:[%s3452_s10 + $0x180] sm:$0xff] %vm1122_vm0, %v1755_v3  ;;  %v1756_v36 = vadd.f32 %v3447_v4, %v1685_v51  ;;  %v2456_v31 = vpop.f32.mrb[20].mxu0 }
 0x162   : > { %1822 = vst.msk [vmem:[%s3452_s10 + $0x198] sm:$0xff] %vm1122_vm0, %v1758_v9  ;;  %v1658_v48 = vadd.f32 %v2456_v31, %v2252_v29  ;;  %v1333_v2 = vpop.f32.mrb[21].mxu0 }
 0x163   : > { %1820 = vst.msk [vmem:[%s3452_s10 + $0x188] sm:$0xff] %vm1122_vm0, %v1756_v36  ;;  %v2488_v37 = vpop.f32.mrb[20].mxu1  ;;  %v1656_v11 = vadd.f32 %v2248_v50, %v1333_v2  ;;  %v2457_v32 = vpop.f32.mrb[22].mxu0  ;;  %v2395_v2 = vld [vmem:[%s3437_s28 + $0xf8] sm:$0xff]  }
 0x164   : > { %v1729_v53 = vadd.f32 %v3447_v4, %v1658_v48  ;;  %v1690_v5 = vadd.f32 %v2488_v37, %v2316_v15  ;;  %v1461_v14 = vpop.f32.mrb[21].mxu1  ;;  %v1659_v7 = vadd.f32 %v2457_v32, %v2253_v18  ;;  %v1336_v22 = vpop.f32.mrb[23].mxu0  ;;  %v2394_v37 = vld [vmem:[%s3437_s28 + $0xf0] sm:$0xff]  }
 0x165   : > { %v1727_v56 = vadd.f32 %v3447_v4, %v1656_v11  ;;  %v1688_v12 = vadd.f32 %v2312_v1, %v1461_v14  ;;  %v2489_v49 = vpop.f32.mrb[22].mxu1  ;;  %v1657_v39 = vadd.f32 %v2249_v20, %v1336_v22  ;;  %v2379_v1 = vld [vmem:[%s3437_s28 + $0x78] sm:$0xff]   ;;  %v2378_v20 = vld [vmem:[%s3437_s28 + $0x70] sm:$0xff]  }
 0x166   : > { %1793 = vst.msk [vmem:[%s3452_s10 + $0xb0] sm:$0xff] %vm1122_vm0, %v1729_v53  ;;  %v1761_v35 = vadd.f32 %v3447_v4, %v1690_v5  ;;  %v1730_v0 = vadd.f32 %v3447_v4, %v1659_v7  ;;  %v1691_v40 = vadd.f32 %v2489_v49, %v2317_v23  ;;  %v1464_v17 = vpop.f32.mrb[23].mxu1  ;;  %v2268_v48 = vunpack.c.l.bf16 %v2379_v1 }
 0x167   : > { %1791 = vst.msk [vmem:[%s3452_s10 + $0xa0] sm:$0xff] %vm1122_vm0, %v1727_v56  ;;  %v1759_v41 = vadd.f32 %v3447_v4, %v1688_v12  ;;  %v1728_v19 = vadd.f32 %v3447_v4, %v1657_v39  ;;  %v1689_v16 = vadd.f32 %v2313_v33, %v1464_v17  ;;  %v2264_v23 = vunpack.c.l.bf16 %v2378_v20 }
 0x168   : > { %1825 = vst.msk [vmem:[%s3452_s10 + $0x1b0] sm:$0xff] %vm1122_vm0, %v1761_v35  ;;  %1794 = vst.msk [vmem:[%s3452_s10 + $0xb8] sm:$0xff] %vm1122_vm0, %v1730_v0  ;;  %v1762_v60 = vadd.f32 %v3447_v4, %v1691_v40  ;;  %v2269_v11 = vunpack.c.h.bf16 %v2379_v1  ;;  %v2332_v33 = vunpack.c.l.bf16 %v2395_v2  ;;  %v2265_v53 = vunpack.c.h.bf16 %v2378_v20 }
 0x169   : > { %1823 = vst.msk [vmem:[%s3452_s10 + $0x1a0] sm:$0xff] %vm1122_vm0, %v1759_v41  ;;  %1792 = vst.msk [vmem:[%s3452_s10 + $0xa8] sm:$0xff] %vm1122_vm0, %v1728_v19  ;;  %v1760_v34 = vadd.f32 %v3447_v4, %v1689_v16  ;;  %v2328_v7 = vunpack.c.l.bf16 %v2394_v37  ;;  %v2333_v12 = vunpack.c.h.bf16 %v2395_v2  ;;  %v2329_v40 = vunpack.c.h.bf16 %v2394_v37 }
 0x16a   : > { %1826 = vst.msk [vmem:[%s3452_s10 + $0x1b8] sm:$0xff] %vm1122_vm0, %v1762_v60 }
 0x16b   : > { %1824 = vst.msk [vmem:[%s3452_s10 + $0x1a8] sm:$0xff] %vm1122_vm0, %v1760_v34 }
 0x176   : > { %v2460_v45 = vpop.f32.mrb[24].mxu0 }
 0x177   : > { %v1662_v52 = vadd.f32 %v2460_v45, %v2260_v42  ;;  %v1349_v30 = vpop.f32.mrb[25].mxu0 }
 0x178   : > { %v2492_v10 = vpop.f32.mrb[24].mxu1  ;;  %v1660_v38 = vadd.f32 %v2256_v57, %v1349_v30  ;;  %v2461_v26 = vpop.f32.mrb[26].mxu0 }
 0x179   : > { %v1733_v44 = vadd.f32 %v3447_v4, %v1662_v52  ;;  %v1694_v47 = vadd.f32 %v2492_v10, %v2324_v43  ;;  %v1477_v8 = vpop.f32.mrb[25].mxu1  ;;  %v1663_v27 = vadd.f32 %v2461_v26, %v2261_v58  ;;  %v1352_v24 = vpop.f32.mrb[27].mxu0 }
 0x17a   : > { %v1731_v13 = vadd.f32 %v3447_v4, %v1660_v38  ;;  %v1692_v28 = vadd.f32 %v2320_v6, %v1477_v8  ;;  %v2493_v55 = vpop.f32.mrb[26].mxu1  ;;  %v1661_v29 = vadd.f32 %v2257_v62, %v1352_v24 }
 0x17b   : > { %1797 = vst.msk [vmem:[%s3452_s10 + $0xd0] sm:$0xff] %vm1122_vm0, %v1733_v44  ;;  %v1765_v63 = vadd.f32 %v3447_v4, %v1694_v47  ;;  %v1734_v3 = vadd.f32 %v3447_v4, %v1663_v27  ;;  %v1695_v51 = vadd.f32 %v2493_v55, %v2325_v61  ;;  %v1480_v50 = vpop.f32.mrb[27].mxu1 }
 0x17c   : > { %1795 = vst.msk [vmem:[%s3452_s10 + $0xc0] sm:$0xff] %vm1122_vm0, %v1731_v13  ;;  %v1763_v9 = vadd.f32 %v3447_v4, %v1692_v28  ;;  %v1732_v15 = vadd.f32 %v3447_v4, %v1661_v29  ;;  %v1693_v18 = vadd.f32 %v2321_v59, %v1480_v50 }
 0x17d   : > { %1829 = vst.msk [vmem:[%s3452_s10 + $0x1d0] sm:$0xff] %vm1122_vm0, %v1765_v63  ;;  %1798 = vst.msk [vmem:[%s3452_s10 + $0xd8] sm:$0xff] %vm1122_vm0, %v1734_v3  ;;  %v1766_v36 = vadd.f32 %v3447_v4, %v1695_v51 }
 0x17e   : > { %1827 = vst.msk [vmem:[%s3452_s10 + $0x1c0] sm:$0xff] %vm1122_vm0, %v1763_v9  ;;  %1796 = vst.msk [vmem:[%s3452_s10 + $0xc8] sm:$0xff] %vm1122_vm0, %v1732_v15  ;;  %v1764_v31 = vadd.f32 %v3447_v4, %v1693_v18 }
 0x17f   : > { %1830 = vst.msk [vmem:[%s3452_s10 + $0x1d8] sm:$0xff] %vm1122_vm0, %v1766_v36 }
 0x180   : > { %1828 = vst.msk [vmem:[%s3452_s10 + $0x1c8] sm:$0xff] %vm1122_vm0, %v1764_v31 }
 0x18a   : > { %v2464_v32 = vpop.f32.mrb[28].mxu0 }
 0x18b   : > { %v1666_v5 = vadd.f32 %v2464_v32, %v2268_v48  ;;  %v1365_v14 = vpop.f32.mrb[29].mxu0 }
 0x18c   : > { %v1664_v22 = vadd.f32 %v2264_v23, %v1365_v14  ;;  %v2465_v56 = vpop.f32.mrb[30].mxu0  ;;  %v2496_v39 = vpop.f32.mrb[28].mxu1 }
 0x18d   : > { %v1737_v49 = vadd.f32 %v3447_v4, %v1666_v5  ;;  %v1667_v35 = vadd.f32 %v2465_v56, %v2269_v11  ;;  %v1368_v0 = vpop.f32.mrb[31].mxu0  ;;  %v1698_v17 = vadd.f32 %v2496_v39, %v2332_v33  ;;  %v1493_v19 = vpop.f32.mrb[29].mxu1 }
 0x18e   : > { %v1735_v41 = vadd.f32 %v3447_v4, %v1664_v22  ;;  %v1665_v16 = vadd.f32 %v2265_v53, %v1368_v0  ;;  %v1696_v60 = vadd.f32 %v2328_v7, %v1493_v19  ;;  %v2497_v46 = vpop.f32.mrb[30].mxu1 }
 0x18f   : > { %1801 = vst.msk [vmem:[%s3452_s10 + $0xf0] sm:$0xff] %vm1122_vm0, %v1737_v49  ;;  %v1738_v34 = vadd.f32 %v3447_v4, %v1667_v35  ;;  %v1769_v54 = vadd.f32 %v3447_v4, %v1698_v17  ;;  %v1699_v21 = vadd.f32 %v2497_v46, %v2333_v12  ;;  %v1496_v25 = vpop.f32.mrb[31].mxu1 }
 0x190   : > { %1799 = vst.msk [vmem:[%s3452_s10 + $0xe0] sm:$0xff] %vm1122_vm0, %v1735_v41  ;;  %v1736_v42 = vadd.f32 %v3447_v4, %v1665_v16  ;;  %v1767_v57 = vadd.f32 %v3447_v4, %v1696_v60  ;;  %v1697_v43 = vadd.f32 %v2329_v40, %v1496_v25 }
 0x191   : > { %1802 = vst.msk [vmem:[%s3452_s10 + $0xf8] sm:$0xff] %vm1122_vm0, %v1738_v34  ;;  %1833 = vst.msk [vmem:[%s3452_s10 + $0x1f0] sm:$0xff] %vm1122_vm0, %v1769_v54  ;;  %v1770_v58 = vadd.f32 %v3447_v4, %v1699_v21 }
 0x192   : > { %1800 = vst.msk [vmem:[%s3452_s10 + $0xe8] sm:$0xff] %vm1122_vm0, %v1736_v42  ;;  %1831 = vst.msk [vmem:[%s3452_s10 + $0x1e0] sm:$0xff] %vm1122_vm0, %v1767_v57  ;;  %v1768_v45 = vadd.f32 %v3447_v4, %v1697_v43 }
 0x193   : > { %1834 = vst.msk [vmem:[%s3452_s10 + $0x1f8] sm:$0xff] %vm1122_vm0, %v1770_v58 }
 0x194   : > { %1832 = vst.msk [vmem:[%s3452_s10 + $0x1e8] sm:$0xff] %vm1122_vm0, %v1768_v45 }
 0x195 PF: > { %s16_s25 = sadd.s32 1, %s2840_s25   ;;  %s3696_s21 = smov %s2832_s23 }
 0x196   : > { %p13_p7 = scmp.ge.s32.totalorder %s16_s25, 6   ;;  %s3697_s22 = smov %s2836_s24 }
 0x197   : > { %s3698_s23 = smov %s3701_s26  ;;  %s3699_s24 = smov %s3705_s27 }
 0x198   :  { %15 = sbr.rel (!%p13_p7) target bundleno = 3 (0x3), region = 83 }

</bundles_post_ra>
